<compile_context>
chip_gen: v6e
topology: v6e:2x2x1
jax: 0.10.0
libtpu: 0.0.40
codegen_flags: <defaults>
</compile_context>

<pallas_src>
import jax
import jax.numpy as jnp
from jax.experimental import pallas as pl
from jax.experimental.pallas import tpu as pltpu

LN2 = 0.6931471805599453
_VMEM_LIMIT = 48 * 1024 * 1024   # explicit scoped-VMEM cap; fits v5e/v6e/v7x


def _round_up(x, m):
    return ((x + m - 1) // m) * m


def _softplus2(x):
    # matgl SoftPlus2: softplus(x) - log(2), numerically stable form.
    return jnp.maximum(x, 0.0) + jnp.log1p(jnp.exp(-jnp.abs(x))) - LN2


def _sigmoid_kernel(x):
    # sigmoid(x) == 0.5*tanh(x/2) + 0.5 (exact identity): a single EUP op
    # instead of exp + reciprocal, keeping the lone EUP slot from saturating.
    return 0.5 * jnp.tanh(0.5 * x) + 0.5


# --------------------------------------------------------------------------
# Kernel 1 (fused): edge update (Eq.4, + residual) AND per-edge node message
#                   (Eq.5) in a single pass over the edges.
# --------------------------------------------------------------------------
def _edge_node_kernel(vij_ref, e_ref, rbf_ref,
                      w1vij_ref, ew1e_ref, eb1_ref, ew2_ref, eb2_ref,
                      nw1e_ref, nb1_ref, nw2_ref, nb2_ref, wr_ref,
                      newe_ref, mess_ref):
    ef = e_ref.shape[1]
    nf = mess_ref.shape[1]
    h2e = eb1_ref.shape[1]

    vij = vij_ref[...]            # (te, 2*NF) bf16
    e_b = e_ref[...]              # (te, EF)   bf16

    # rbf weighting for BOTH branches: one (te, DEG) @ (DEG, EF+NF) bf16 dot.
    wgt = jnp.dot(rbf_ref[...], wr_ref[...], preferred_element_type=jnp.float32)

    # [vi|vj] contribution to the first layer of BOTH gated MLPs: one wide dot.
    hv = jnp.dot(vij, w1vij_ref[...], preferred_element_type=jnp.float32)

    # ---- Eq. 4: edge update. main+gate fused (W1=[w1|g1], W2=blockdiag(w2,g2));
    #      the constant state term is pre-folded into eb1.
    h = _softplus2(hv[:, :h2e]
                   + jnp.dot(e_b, ew1e_ref[...], preferred_element_type=jnp.float32)
                   + eb1_ref[...])
    z = jnp.dot(h.astype(jnp.bfloat16), ew2_ref[...],
                preferred_element_type=jnp.float32) + eb2_ref[...]
    new_e = e_b.astype(jnp.float32) + \
        _softplus2(z[:, :ef]) * _sigmoid_kernel(z[:, ef:]) * wgt[:, :ef]
    newe_ref[...] = new_e

    # ---- Eq. 5: per-edge message for the node update (uses UPDATED edge feats).
    hn = _softplus2(hv[:, h2e:]
                    + jnp.dot(new_e.astype(jnp.bfloat16), nw1e_ref[...],
                              preferred_element_type=jnp.float32)
                    + nb1_ref[...])
    zn = jnp.dot(hn.astype(jnp.bfloat16), nw2_ref[...],
                 preferred_element_type=jnp.float32) + nb2_ref[...]
    mess_ref[...] = (_softplus2(zn[:, :nf]) * _sigmoid_kernel(zn[:, nf:])
                     * wgt[:, ef:]).astype(jnp.bfloat16)


def edge_node_messages(vij, e, rbf, w1vij, ew1e, eb1, ew2, eb2,
                       nw1e, nb1, nw2, nb2, wr, tile_e):
    e_pad = vij.shape[0]
    nf2 = vij.shape[1]
    ef = e.shape[1]
    deg = rbf.shape[1]
    h2e = eb1.shape[1]
    h2n = nb1.shape[1]
    nf = nw2.shape[1] // 2
    row = lambda i: (i, 0)
    full = lambda i: (0, 0)
    return pl.pallas_call(
        _edge_node_kernel,
        out_shape=(jax.ShapeDtypeStruct((e_pad, ef), jnp.float32),
                   jax.ShapeDtypeStruct((e_pad, nf), jnp.bfloat16)),
        grid_spec=pltpu.PrefetchScalarGridSpec(
            num_scalar_prefetch=0,
            grid=(e_pad // tile_e,),
            in_specs=[
                pl.BlockSpec((tile_e, nf2), row),       # [vi | vj]        bf16
                pl.BlockSpec((tile_e, ef), row),        # edge_feat        bf16
                pl.BlockSpec((tile_e, deg), row),       # rbf              bf16
                pl.BlockSpec((nf2, h2e + h2n), full),   # stacked W1 (vi;vj rows, BOTH MLPs)
                pl.BlockSpec((ef, h2e), full),          # edge W1 (e rows)
                pl.BlockSpec((1, h2e), full),           # edge b1 (+ state), f32
                pl.BlockSpec((h2e, 2 * ef), full),      # edge W2 blockdiag
                pl.BlockSpec((1, 2 * ef), full),        # edge b2, f32
                pl.BlockSpec((ef, h2n), full),          # node W1 (e rows)
                pl.BlockSpec((1, h2n), full),           # node b1 (+ state), f32
                pl.BlockSpec((h2n, 2 * nf), full),      # node W2 blockdiag
                pl.BlockSpec((1, 2 * nf), full),        # node b2, f32
                pl.BlockSpec((deg, ef + nf), full),     # [edge_w_rbf | node_w_rbf]
            ],
            out_specs=[pl.BlockSpec((tile_e, ef), row),
                       pl.BlockSpec((tile_e, nf), row)],
        ),
        compiler_params=pltpu.CompilerParams(
            dimension_semantics=("parallel",),
            vmem_limit_bytes=_VMEM_LIMIT),
    )(vij, e, rbf, w1vij, ew1e, eb1, ew2, eb2, nw1e, nb1, nw2, nb2, wr)


# --------------------------------------------------------------------------
# Kernel 2: tiled scatter-sum of edge messages onto destination nodes
#           (fn.copy_e + fn.sum) as a bf16 one-hot matmul, accumulated over the
#           edge axis, with the node residual fused into the k==0 init.
# TODO(synk): CSR (sorted-by-dst) tiling with BoundedSlice edge ranges would
#             make this O(E) and let kernels 1+2 fuse (no mess HBM round-trip).
# --------------------------------------------------------------------------
def _scatter_residual_kernel(dst_ref, mess_ref, vres_ref, o_ref):
    @pl.when(pl.program_id(1) == 0)
    def _():
        o_ref[...] = vres_ref[...]          # node residual as accumulator init

    tn = o_ref.shape[0]
    te = dst_ref.shape[1]
    base = pl.program_id(0) * tn
    node_ids = jax.lax.broadcasted_iota(jnp.int32, (tn, te), 0) + base
    # one-hot in bf16 (exact for 0/1) -> native-rate MXU matmul, f32 accumulate.
    onehot = (node_ids == dst_ref[...]).astype(jnp.bfloat16)  # padded dst=-1 -> 0
    o_ref[...] += jnp.dot(onehot, mess_ref[...], preferred_element_type=jnp.float32)


def scatter_add_residual(dst_row, mess, node_res, tile_n, tile_e):
    n_pad, nf = node_res.shape
    e_pad = mess.shape[0]
    return pl.pallas_call(
        _scatter_residual_kernel,
        out_shape=jax.ShapeDtypeStruct((n_pad, nf), jnp.float32),
        grid_spec=pltpu.PrefetchScalarGridSpec(
            num_scalar_prefetch=0,
            grid=(n_pad // tile_n, e_pad // tile_e),
            in_specs=[
                pl.BlockSpec((1, tile_e), lambda i, k: (0, k)),     # dst ids
                pl.BlockSpec((tile_e, nf), lambda i, k: (k, 0)),    # messages (bf16)
                pl.BlockSpec((tile_n, nf), lambda i, k: (i, 0)),    # node residual
            ],
            out_specs=pl.BlockSpec((tile_n, nf), lambda i, k: (i, 0)),
        ),
        compiler_params=pltpu.CompilerParams(
            dimension_semantics=("parallel", "arbitrary"),
            vmem_limit_bytes=_VMEM_LIMIT),
    )(dst_row, mess, node_res)


# --------------------------------------------------------------------------
# Kernel 3: state (global attribute) update (Eq. 6): mean node readout +
#           2-layer MLP.  Tiled over the node axis with an accumulating grid;
#           the node-sum is a ones-vector MXU dot and 1/N is folded into w1v.
# --------------------------------------------------------------------------
def _state_update_kernel(v_ref, u_ref, w1u_ref, w1v_ref, b1_ref, w2_ref, b2_ref,
                         o_ref, acc_ref):
    @pl.when(pl.program_id(0) == 0)
    def _():
        acc_ref[...] = jnp.zeros_like(acc_ref)

    ones = jnp.ones((1, v_ref.shape[0]), jnp.float32)
    acc_ref[...] += jnp.dot(ones, v_ref[...], preferred_element_type=jnp.float32)

    @pl.when(pl.program_id(0) == pl.num_programs(0) - 1)
    def _():
        h = _softplus2(
            jnp.dot(u_ref[...], w1u_ref[...], preferred_element_type=jnp.float32)
            + jnp.dot(acc_ref[...], w1v_ref[...], preferred_element_type=jnp.float32)
            + b1_ref[...])
        o_ref[...] = _softplus2(
            jnp.dot(h, w2_ref[...], preferred_element_type=jnp.float32) + b2_ref[...])


def state_update(node_feat_pad, state_feat, p, n_real, tile_n):
    n_pad, nf = node_feat_pad.shape
    sf = state_feat.shape[1]
    hs = p["w1u"].shape[1]
    full = lambda i: (0, 0)
    w1v_scaled = p["w1v"] * (1.0 / n_real)     # mean readout: 1/N folded into w1v
    return pl.pallas_call(
        _state_update_kernel,
        out_shape=jax.ShapeDtypeStruct((1, sf), jnp.float32),
        grid_spec=pltpu.PrefetchScalarGridSpec(
            num_scalar_prefetch=0,
            grid=(n_pad // tile_n,),
            in_specs=[pl.BlockSpec((tile_n, nf), lambda i: (i, 0)),
                      pl.BlockSpec((1, sf), full),
                      pl.BlockSpec((sf, hs), full),
                      pl.BlockSpec((nf, hs), full),
                      pl.BlockSpec((1, hs), full),
                      pl.BlockSpec((hs, sf), full),
                      pl.BlockSpec((1, sf), full)],
            out_specs=pl.BlockSpec((1, sf), full),
            scratch_shapes=[pltpu.VMEM((1, nf), jnp.float32)]),
        compiler_params=pltpu.CompilerParams(
            dimension_semantics=("arbitrary",),
            vmem_limit_bytes=_VMEM_LIMIT),
    )(node_feat_pad, state_feat, p["w1u"], w1v_scaled, p["b1"], p["w2"], p["b2"])


# --------------------------------------------------------------------------
# Wrapper-side weight fusion (tiny jnp ops, done once per call)
# --------------------------------------------------------------------------
def _fuse_gated_params(p, nf, ef, state_feat):
    """Fuse main+gate branches; fold the constant state term into the bias."""
    w1g = jnp.concatenate([p["w1"], p["g1"]], axis=1)      # (din, 2H)
    b1g = jnp.concatenate([p["b1"], p["c1"]], axis=1)      # (1, 2H)
    hid = p["w1"].shape[1]
    dout = p["w2"].shape[1]
    w1_vij = w1g[:2 * nf]                                  # rows for [vi | vj]
    w1_e = w1g[2 * nf:2 * nf + ef]                         # rows for e
    w1_u = w1g[2 * nf + ef:]                               # rows for state u
    b1_eff = b1g + state_feat @ w1_u                       # state folded into bias
    z = jnp.zeros((hid, dout), jnp.float32)
    w2_bd = jnp.concatenate(
        [jnp.concatenate([p["w2"], z], axis=1),
         jnp.concatenate([z, p["g2"]], axis=1)], axis=0)   # (2H, 2*dout) blockdiag
    b2_bd = jnp.concatenate([p["b2"], p["c2"]], axis=1)    # (1, 2*dout)
    return dict(w1_vij=w1_vij, w1_e=w1_e, b1=b1_eff, w2_bd=w2_bd, b2=b2_bd)


# --------------------------------------------------------------------------
# Full forward (DIEPGraphConv.forward, include_states=True)
# --------------------------------------------------------------------------
def diep_graph_conv_forward(src, dst, edge_feat, node_feat, rbf, state_feat, params,
                            *, tile_e=1024, tile_n=1024):
    n_nodes, nf = node_feat.shape
    n_edges, ef = edge_feat.shape

    # Edge tiling: big tiles (>=512 reaches ~85% of the HBM roofline), padded to
    # the bf16 sublane granule (16); small graphs collapse to a single tile.
    te = min(tile_e, _round_up(n_edges, 16))
    e_pad = _round_up(n_edges, te)
    pad_e = e_pad - n_edges

    # Node tiling: big tiles so the scatter re-streams the message array at most
    # n_pad/tile_n (ideally 1) times.
    tn = min(tile_n, _round_up(n_nodes, 8))
    n_pad = _round_up(n_nodes, tn)

    # bf16 streams (f32 accumulation inside the kernels). The endpoint gather is
    # done as ONE fused XLA gather+concat producing the already-padded [vi|vj]
    # slab; padded src/dst read node 0 (finite) and padded rbf rows are zero, so
    # padded messages are exactly zero.
    # TODO(synk): pull the gather in-kernel (resident node_feat + jnp.take) and
    #             switch to a CSR sorted-by-dst scatter to drop the mess HBM
    #             round-trip entirely for very large graphs.
    node_b = node_feat.astype(jnp.bfloat16)
    src_p = jnp.pad(src.astype(jnp.int32), (0, pad_e))                 # pad -> node 0
    dst_p = jnp.pad(dst.astype(jnp.int32), (0, pad_e))
    vij = jnp.concatenate([node_b[src_p], node_b[dst_p]], axis=1)      # (e_pad, 2*NF)

    def pad_rows(a, rows, dt):
        return jnp.pad(a.astype(dt), ((0, rows - a.shape[0]), (0, 0)))

    e_b = pad_rows(edge_feat, e_pad, jnp.bfloat16)
    rbf_b = pad_rows(rbf, e_pad, jnp.bfloat16)

    # Fuse main+gate branches, fold the state term into b1, stack the vi/vj
    # first-layer weights of BOTH MLPs into one wide matrix; cast weights bf16.
    fe = _fuse_gated_params(params["edge_mlp"], nf, ef, state_feat)
    fn_ = _fuse_gated_params(params["node_mlp"], nf, ef, state_feat)
    w1vij = jnp.concatenate([fe["w1_vij"], fn_["w1_vij"]], axis=1).astype(jnp.bfloat16)
    wr = jnp.concatenate([params["edge_w_rbf"], params["node_w_rbf"]],
                         axis=1).astype(jnp.bfloat16)
    bf = lambda a: a.astype(jnp.bfloat16)

    # ---- Eq.4 (edge update + residual) and Eq.5 messages in one fused pass ----
    new_e_pad, mess_pad = edge_node_messages(
        vij, e_b, rbf_b, w1vij,
        bf(fe["w1_e"]), fe["b1"], bf(fe["w2_bd"]), fe["b2"],
        bf(fn_["w1_e"]), fn_["b1"], bf(fn_["w2_bd"]), fn_["b2"],
        wr, te)
    new_edge_feat = new_e_pad[:n_edges]

    # ---- Eq.5 aggregation: tiled scatter-sum onto dst nodes + node residual ----
    dst_row = jnp.pad(dst.astype(jnp.int32), (0, pad_e),
                      constant_values=-1).reshape(1, e_pad)            # -1 never matches
    v_res = pad_rows(node_feat, n_pad, jnp.float32)
    new_v_pad = scatter_add_residual(dst_row, mess_pad, v_res, tn, te)
    new_node_feat = new_v_pad[:n_nodes]

    # ---- Eq.6: state update from mean readout of UPDATED node features ----
    # (padded node rows are exactly zero, so the padded sum equals the real sum)
    new_state_feat = state_update(new_v_pad, state_feat, params["state_mlp"],
                                  n_nodes, tn)

    return new_edge_feat, new_node_feat, new_state_feat


# --------------------------------------------------------------------------
# Deterministic parameter construction
# --------------------------------------------------------------------------
def _linear(key, fan_in, fan_out, bias=True):
    kw, kb = jax.random.split(key)
    w = jax.random.normal(kw, (fan_in, fan_out), jnp.float32) / jnp.sqrt(fan_in)
    b = (jax.random.normal(kb, (1, fan_out), jnp.float32) * 0.01) if bias else None
    return w, b


def _gated_mlp_params(key, din, hid, dout):
    k = jax.random.split(key, 4)
    w1, b1 = _linear(k[0], din, hid)
    w2, b2 = _linear(k[1], hid, dout)
    g1, c1 = _linear(k[2], din, hid)
    g2, c2 = _linear(k[3], hid, dout)
    return dict(w1=w1, b1=b1, w2=w2, b2=b2, g1=g1, c1=c1, g2=g2, c2=c2)


def init_params(key, nf, ef, sf, deg, hid, hid_s):
    k = jax.random.split(key, 6)
    din = 2 * nf + ef + sf
    edge_mlp = _gated_mlp_params(k[0], din, hid, ef)
    node_mlp = _gated_mlp_params(k[1], din, hid, nf)
    edge_w_rbf, _ = _linear(k[2], deg, ef, bias=False)
    node_w_rbf, _ = _linear(k[3], deg, nf, bias=False)
    w1, b1 = _linear(k[4], sf + nf, hid_s)
    w2, b2 = _linear(k[5], hid_s, sf)
    state_mlp = dict(w1u=w1[:sf], w1v=w1[sf:], b1=b1, w2=w2, b2=b2)
    return dict(edge_mlp=edge_mlp, node_mlp=node_mlp,
                edge_w_rbf=edge_w_rbf, node_w_rbf=node_w_rbf, state_mlp=state_mlp)


# --------------------------------------------------------------------------
# Pure-JAX reference (mirrors the PyTorch/DGL semantics, full f32)
# --------------------------------------------------------------------------
def _ref_gated(x, p, w_rbf, rbf):
    h = _softplus2(x @ p["w1"] + p["b1"])
    core = _softplus2(h @ p["w2"] + p["b2"])
    g = _softplus2(x @ p["g1"] + p["c1"])
    gate = jax.nn.sigmoid(g @ p["g2"] + p["c2"])
    return core * gate * (rbf @ w_rbf)


def ref_forward(src, dst, edge_feat, node_feat, rbf, state_feat, params):
    n, e = node_feat.shape[0], edge_feat.shape[0]
    sf = state_feat.shape[1]
    vi, vj = node_feat[src], node_feat[dst]
    u_e = jnp.broadcast_to(state_feat, (e, sf))
    x_e = jnp.concatenate([vi, vj, edge_feat, u_e], axis=1)
    e_upd = _ref_gated(x_e, params["edge_mlp"], params["edge_w_rbf"], rbf)
    new_e = edge_feat + e_upd
    x_n = jnp.concatenate([vi, vj, new_e, u_e], axis=1)
    mess = _ref_gated(x_n, params["node_mlp"], params["node_w_rbf"], rbf)
    v_upd = jnp.zeros((n, node_feat.shape[1]), jnp.float32).at[dst].add(mess)
    new_v = node_feat + v_upd
    sp = params["state_mlp"]
    uv = jnp.mean(new_v, axis=0, keepdims=True)
    h = _softplus2(state_feat @ sp["w1u"] + uv @ sp["w1v"] + sp["b1"])
    new_s = _softplus2(h @ sp["w2"] + sp["b2"])
    return new_e, new_v, new_s


if __name__ == "__main__":
    key = jax.random.PRNGKey(0)
    N, E = 16, 100          # nodes, edges (E deliberately NOT a tile multiple)
    NF, EF, SF = 32, 32, 16
    DEG, HID, HID_S = 8, 64, 32

    ks = jax.random.split(key, 7)
    src = jax.random.randint(ks[0], (E,), 0, N, dtype=jnp.int32)
    dst = jax.random.randint(ks[1], (E,), 0, N, dtype=jnp.int32)
    node_feat = jax.random.normal(ks[2], (N, NF), jnp.float32)
    edge_feat = jax.random.normal(ks[3], (E, EF), jnp.float32)
    rbf = jax.random.normal(ks[4], (E, DEG), jnp.float32)
    state_feat = jax.random.normal(ks[5], (1, SF), jnp.float32)
    params = init_params(ks[6], NF, EF, SF, DEG, HID, HID_S)

    fwd = jax.jit(diep_graph_conv_forward)
    e_out, v_out, s_out = fwd(src, dst, edge_feat, node_feat, rbf, state_feat, params)
    jax.block_until_ready((e_out, v_out, s_out))

    e_ref, v_ref, s_ref = ref_forward(
        src, dst, edge_feat, node_feat, rbf, state_feat, params)
    # bf16 streams/weights with f32 accumulation vs. the f32 reference: ~0.5-1%
    # element error (the all-f32 variant of this kernel passes at 2e-2).
    assert jnp.allclose(e_out, e_ref, atol=5e-2, rtol=5e-2)
    assert jnp.allclose(v_out, v_ref, atol=5e-2, rtol=5e-2)
    assert jnp.allclose(s_out, s_ref, atol=5e-2, rtol=5e-2)

    print("KERNEL_OK")
</pallas_src>

<mosaic_0001>
module attributes {stable_mosaic.version = 11 : i64} {
  func.func @_scatter_residual_kernel(%arg0: i32, %arg1: i32, %arg2: memref<1x112xi32, #tpu.memory_space<vmem>>, %arg3: memref<112x32xbf16, #tpu.memory_space<vmem>>, %arg4: memref<16x32xf32, #tpu.memory_space<vmem>>, %arg5: memref<16x32xf32, #tpu.memory_space<vmem>>) attributes {dimension_semantics = [#tpu.dimension_semantics<parallel>, #tpu.dimension_semantics<arbitrary>], iteration_bounds = array<i64: 1, 1>, scalar_prefetch = 0 : i64, scratch_operands = 0 : i64, tpu.core_type = #tpu.core_type<tc>, window_params = [{transform_indices = @transform_0, window_bounds = array<i64: 1, 112>}, {transform_indices = @transform_1, window_bounds = array<i64: 112, 32>}, {transform_indices = @transform_2, window_bounds = array<i64: 16, 32>}, {transform_indices = @transform_3, window_bounds = array<i64: 16, 32>}]} {
    %c0_i32 = arith.constant 0 : i32
    %0 = arith.cmpi eq, %arg1, %c0_i32 : i32
    %1 = arith.extui %0 : i1 to i32
    %c0_i32_0 = arith.constant 0 : i32
    %2 = arith.cmpi ne, %1, %c0_i32_0 : i32
    scf.if %2 {
      %c0_8 = arith.constant 0 : index
      %c0_9 = arith.constant 0 : index
      %18 = vector.load %arg4[%c0_8, %c0_9] : memref<16x32xf32, #tpu.memory_space<vmem>>, vector<16x32xf32>
      %c0_10 = arith.constant 0 : index
      %c0_11 = arith.constant 0 : index
      %19 = vector.load %arg5[%c0_10, %c0_11] : memref<16x32xf32, #tpu.memory_space<vmem>>, vector<16x32xf32>
      tpu.vector_store %arg5[%c0_10, %c0_11], %18 {strides = array<i32>} : memref<16x32xf32, #tpu.memory_space<vmem>>, vector<16x32xf32>,
    } else {
    }
    %c16_i32 = arith.constant 16 : i32
    %3 = arith.muli %arg0, %c16_i32 : i32
    %4 = tpu.iota {dimensions = array<i32: 0>} : vector<16x112xi32>
    %5 = vector.broadcast %3 : i32 to vector<16x112xi32>
    %6 = arith.addi %4, %5 : vector<16x112xi32>
    %c0 = arith.constant 0 : index
    %c0_1 = arith.constant 0 : index
    %7 = vector.load %arg2[%c0, %c0_1] : memref<1x112xi32, #tpu.memory_space<vmem>>, vector<1x112xi32>
    %8 = vector.broadcast %7 : vector<1x112xi32> to vector<16x112xi32>
    %9 = arith.cmpi eq, %6, %8 : vector<16x112xi32>
    %10 = arith.extui %9 : vector<16x112xi1> to vector<16x112xi32>
    %11 = arith.sitofp %10 : vector<16x112xi32> to vector<16x112xf32>
    %12 = arith.truncf %11 : vector<16x112xf32> to vector<16x112xbf16>
    %c0_2 = arith.constant 0 : index
    %c0_3 = arith.constant 0 : index
    %13 = vector.load %arg5[%c0_2, %c0_3] : memref<16x32xf32, #tpu.memory_space<vmem>>, vector<16x32xf32>
    %c0_4 = arith.constant 0 : index
    %c0_5 = arith.constant 0 : index
    %14 = vector.load %arg3[%c0_4, %c0_5] : memref<112x32xbf16, #tpu.memory_space<vmem>>, vector<112x32xbf16>
    %cst = arith.constant dense<0.000000e+00> : vector<16x32xf32>
    %15 = tpu.matmul %12, %14, %cst {dimension_numbers = #tpu.dot_dimension_numbers<[1], [0], [0], [1], [0, 0, 1, 1], [], []>} : vector<16x112xbf16>, vector<112x32xbf16>, vector<16x32xf32> -> vector<16x32xf32>
    %16 = arith.addf %13, %15 : vector<16x32xf32>
    %c0_6 = arith.constant 0 : index
    %c0_7 = arith.constant 0 : index
    %17 = vector.load %arg5[%c0_6, %c0_7] : memref<16x32xf32, #tpu.memory_space<vmem>>, vector<16x32xf32>
    tpu.vector_store %arg5[%c0_6, %c0_7], %16 {strides = array<i32>} : memref<16x32xf32, #tpu.memory_space<vmem>>, vector<16x32xf32>,
    return
  }
  func.func @transform_0(%arg0: i32, %arg1: i32) -> (i32, i32) {
    %c0_i32 = arith.constant 0 : i32
    %c0_i32_0 = arith.constant 0 : i32
    return %c0_i32, %arg1 : i32, i32
  }
  func.func @transform_1(%arg0: i32, %arg1: i32) -> (i32, i32) {
    %c0_i32 = arith.constant 0 : i32
    %c0_i32_0 = arith.constant 0 : i32
    return %arg1, %c0_i32 : i32, i32
  }
  func.func @transform_2(%arg0: i32, %arg1: i32) -> (i32, i32) {
    %c0_i32 = arith.constant 0 : i32
    %c0_i32_0 = arith.constant 0 : i32
    return %arg0, %c0_i32 : i32, i32
  }
  func.func @transform_3(%arg0: i32, %arg1: i32) -> (i32, i32) {
    %c0_i32 = arith.constant 0 : i32
    %c0_i32_0 = arith.constant 0 : i32
    return %arg0, %c0_i32 : i32, i32
  }
}

module attributes {stable_mosaic.version = 11 : i64} {
  func.func @_edge_node_kernel(%arg0: i32, %arg1: memref<112x64xbf16, #tpu.memory_space<vmem>>, %arg2: memref<112x32xbf16, #tpu.memory_space<vmem>>, %arg3: memref<112x8xbf16, #tpu.memory_space<vmem>>, %arg4: memref<64x256xbf16, #tpu.memory_space<vmem>>, %arg5: memref<32x128xbf16, #tpu.memory_space<vmem>>, %arg6: memref<1x128xf32, #tpu.memory_space<vmem>>, %arg7: memref<128x64xbf16, #tpu.memory_space<vmem>>, %arg8: memref<1x64xf32, #tpu.memory_space<vmem>>, %arg9: memref<32x128xbf16, #tpu.memory_space<vmem>>, %arg10: memref<1x128xf32, #tpu.memory_space<vmem>>, %arg11: memref<128x64xbf16, #tpu.memory_space<vmem>>, %arg12: memref<1x64xf32, #tpu.memory_space<vmem>>, %arg13: memref<8x64xbf16, #tpu.memory_space<vmem>>, %arg14: memref<112x32xf32, #tpu.memory_space<vmem>>, %arg15: memref<112x32xbf16, #tpu.memory_space<vmem>>) attributes {dimension_semantics = [#tpu.dimension_semantics<parallel>], iteration_bounds = array<i64: 1>, scalar_prefetch = 0 : i64, scratch_operands = 0 : i64, tpu.core_type = #tpu.core_type<tc>, window_params = [{transform_indices = @transform_0, window_bounds = array<i64: 112, 64>}, {transform_indices = @transform_1, window_bounds = array<i64: 112, 32>}, {transform_indices = @transform_2, window_bounds = array<i64: 112, 8>}, {pipeline_mode = #tpu.pipeline_mode<synchronous>, transform_indices = @transform_3, window_bounds = array<i64: 64, 256>}, {pipeline_mode = #tpu.pipeline_mode<synchronous>, transform_indices = @transform_4, window_bounds = array<i64: 32, 128>}, {pipeline_mode = #tpu.pipeline_mode<synchronous>, transform_indices = @transform_5, window_bounds = array<i64: 1, 128>}, {pipeline_mode = #tpu.pipeline_mode<synchronous>, transform_indices = @transform_6, window_bounds = array<i64: 128, 64>}, {pipeline_mode = #tpu.pipeline_mode<synchronous>, transform_indices = @transform_7, window_bounds = array<i64: 1, 64>}, {pipeline_mode = #tpu.pipeline_mode<synchronous>, transform_indices = @transform_8, window_bounds = array<i64: 32, 128>}, {pipeline_mode = #tpu.pipeline_mode<synchronous>, transform_indices = @transform_9, window_bounds = array<i64: 1, 128>}, {pipeline_mode = #tpu.pipeline_mode<synchronous>, transform_indices = @transform_10, window_bounds = array<i64: 128, 64>}, {pipeline_mode = #tpu.pipeline_mode<synchronous>, transform_indices = @transform_11, window_bounds = array<i64: 1, 64>}, {pipeline_mode = #tpu.pipeline_mode<synchronous>, transform_indices = @transform_12, window_bounds = array<i64: 8, 64>}, {transform_indices = @transform_13, window_bounds = array<i64: 112, 32>}, {transform_indices = @transform_14, window_bounds = array<i64: 112, 32>}]} {
    %c0 = arith.constant 0 : index
    %c0_0 = arith.constant 0 : index
    %0 = vector.load %arg1[%c0, %c0_0] : memref<112x64xbf16, #tpu.memory_space<vmem>>, vector<112x64xbf16>
    %c0_1 = arith.constant 0 : index
    %c0_2 = arith.constant 0 : index
    %1 = vector.load %arg2[%c0_1, %c0_2] : memref<112x32xbf16, #tpu.memory_space<vmem>>, vector<112x32xbf16>
    %c0_3 = arith.constant 0 : index
    %c0_4 = arith.constant 0 : index
    %2 = vector.load %arg3[%c0_3, %c0_4] : memref<112x8xbf16, #tpu.memory_space<vmem>>, vector<112x8xbf16>
    %c0_5 = arith.constant 0 : index
    %c0_6 = arith.constant 0 : index
    %3 = vector.load %arg13[%c0_5, %c0_6] : memref<8x64xbf16, #tpu.memory_space<vmem>>, vector<8x64xbf16>
    %cst = arith.constant dense<0.000000e+00> : vector<112x64xf32>
    %4 = tpu.matmul %2, %3, %cst {dimension_numbers = #tpu.dot_dimension_numbers<[1], [0], [0], [1], [0, 0, 1, 1], [], []>} : vector<112x8xbf16>, vector<8x64xbf16>, vector<112x64xf32> -> vector<112x64xf32>
    %c0_7 = arith.constant 0 : index
    %c0_8 = arith.constant 0 : index
    %5 = vector.load %arg4[%c0_7, %c0_8] : memref<64x256xbf16, #tpu.memory_space<vmem>>, vector<64x256xbf16>
    %cst_9 = arith.constant dense<0.000000e+00> : vector<112x256xf32>
    %6 = tpu.matmul %0, %5, %cst_9 {dimension_numbers = #tpu.dot_dimension_numbers<[1], [0], [0], [1], [0, 0, 1, 1], [], []>} : vector<112x64xbf16>, vector<64x256xbf16>, vector<112x256xf32> -> vector<112x256xf32>
    %7 = vector.extract_strided_slice %6 {offsets = [0, 0], sizes = [112, 128], strides = [1, 1]} : vector<112x256xf32> to vector<112x128xf32>
    %c0_10 = arith.constant 0 : index
    %c0_11 = arith.constant 0 : index
    %8 = vector.load %arg5[%c0_10, %c0_11] : memref<32x128xbf16, #tpu.memory_space<vmem>>, vector<32x128xbf16>
    %cst_12 = arith.constant dense<0.000000e+00> : vector<112x128xf32>
    %9 = tpu.matmul %1, %8, %cst_12 {dimension_numbers = #tpu.dot_dimension_numbers<[1], [0], [0], [1], [0, 0, 1, 1], [], []>} : vector<112x32xbf16>, vector<32x128xbf16>, vector<112x128xf32> -> vector<112x128xf32>
    %10 = arith.addf %7, %9 : vector<112x128xf32>
    %c0_13 = arith.constant 0 : index
    %c0_14 = arith.constant 0 : index
    %11 = vector.load %arg6[%c0_13, %c0_14] : memref<1x128xf32, #tpu.memory_space<vmem>>, vector<1x128xf32>
    %12 = vector.broadcast %11 : vector<1x128xf32> to vector<112x128xf32>
    %13 = arith.addf %10, %12 : vector<112x128xf32>
    %cst_15 = arith.constant 0.000000e+00 : f32
    %14 = vector.broadcast %cst_15 : f32 to vector<112x128xf32>
    %15 = arith.maximumf %13, %14 : vector<112x128xf32>
    %16 = math.absf %13 : vector<112x128xf32>
    %cst_16 = arith.constant 0.000000e+00 : f32
    %17 = vector.broadcast %cst_16 : f32 to vector<112x128xf32>
    %18 = arith.subf %17, %16 : vector<112x128xf32>
    %19 = math.exp %18 : vector<112x128xf32>
    %20 = math.log1p %19 : vector<112x128xf32>
    %21 = arith.addf %15, %20 : vector<112x128xf32>
    %cst_17 = arith.constant 0.693147182 : f32
    %22 = vector.broadcast %cst_17 : f32 to vector<112x128xf32>
    %23 = arith.subf %21, %22 : vector<112x128xf32>
    %24 = arith.truncf %23 : vector<112x128xf32> to vector<112x128xbf16>
    %c0_18 = arith.constant 0 : index
    %c0_19 = arith.constant 0 : index
    %25 = vector.load %arg7[%c0_18, %c0_19] : memref<128x64xbf16, #tpu.memory_space<vmem>>, vector<128x64xbf16>
    %cst_20 = arith.constant dense<0.000000e+00> : vector<112x64xf32>
    %26 = tpu.matmul %24, %25, %cst_20 {dimension_numbers = #tpu.dot_dimension_numbers<[1], [0], [0], [1], [0, 0, 1, 1], [], []>} : vector<112x128xbf16>, vector<128x64xbf16>, vector<112x64xf32> -> vector<112x64xf32>
    %c0_21 = arith.constant 0 : index
    %c0_22 = arith.constant 0 : index
    %27 = vector.load %arg8[%c0_21, %c0_22] : memref<1x64xf32, #tpu.memory_space<vmem>>, vector<1x64xf32>
    %28 = vector.broadcast %27 : vector<1x64xf32> to vector<112x64xf32>
    %29 = arith.addf %26, %28 : vector<112x64xf32>
    %30 = arith.extf %1 : vector<112x32xbf16> to vector<112x32xf32>
    %31 = vector.extract_strided_slice %29 {offsets = [0, 0], sizes = [112, 32], strides = [1, 1]} : vector<112x64xf32> to vector<112x32xf32>
    %cst_23 = arith.constant 0.000000e+00 : f32
    %32 = vector.broadcast %cst_23 : f32 to vector<112x32xf32>
    %33 = arith.maximumf %31, %32 : vector<112x32xf32>
    %34 = math.absf %31 : vector<112x32xf32>
    %cst_24 = arith.constant 0.000000e+00 : f32
    %35 = vector.broadcast %cst_24 : f32 to vector<112x32xf32>
    %36 = arith.subf %35, %34 : vector<112x32xf32>
    %37 = math.exp %36 : vector<112x32xf32>
    %38 = math.log1p %37 : vector<112x32xf32>
    %39 = arith.addf %33, %38 : vector<112x32xf32>
    %cst_25 = arith.constant 0.693147182 : f32
    %40 = vector.broadcast %cst_25 : f32 to vector<112x32xf32>
    %41 = arith.subf %39, %40 : vector<112x32xf32>
    %42 = vector.extract_strided_slice %29 {offsets = [0, 32], sizes = [112, 32], strides = [1, 1]} : vector<112x64xf32> to vector<112x32xf32>
    %cst_26 = arith.constant 5.000000e-01 : f32
    %43 = vector.broadcast %cst_26 : f32 to vector<112x32xf32>
    %44 = arith.mulf %43, %42 : vector<112x32xf32>
    %45 = math.tanh %44 : vector<112x32xf32>
    %cst_27 = arith.constant 5.000000e-01 : f32
    %46 = vector.broadcast %cst_27 : f32 to vector<112x32xf32>
    %47 = arith.mulf %46, %45 : vector<112x32xf32>
    %cst_28 = arith.constant 5.000000e-01 : f32
    %48 = vector.broadcast %cst_28 : f32 to vector<112x32xf32>
    %49 = arith.addf %47, %48 : vector<112x32xf32>
    %50 = arith.mulf %41, %49 : vector<112x32xf32>
    %51 = vector.extract_strided_slice %4 {offsets = [0, 0], sizes = [112, 32], strides = [1, 1]} : vector<112x64xf32> to vector<112x32xf32>
    %52 = arith.mulf %50, %51 : vector<112x32xf32>
    %53 = arith.addf %30, %52 : vector<112x32xf32>
    %c0_29 = arith.constant 0 : index
    %c0_30 = arith.constant 0 : index
    %54 = vector.load %arg14[%c0_29, %c0_30] : memref<112x32xf32, #tpu.memory_space<vmem>>, vector<112x32xf32>
    tpu.vector_store %arg14[%c0_29, %c0_30], %53 {strides = array<i32>} : memref<112x32xf32, #tpu.memory_space<vmem>>, vector<112x32xf32>,
    %55 = vector.extract_strided_slice %6 {offsets = [0, 128], sizes = [112, 128], strides = [1, 1]} : vector<112x256xf32> to vector<112x128xf32>
    %56 = arith.truncf %53 : vector<112x32xf32> to vector<112x32xbf16>
    %c0_31 = arith.constant 0 : index
    %c0_32 = arith.constant 0 : index
    %57 = vector.load %arg9[%c0_31, %c0_32] : memref<32x128xbf16, #tpu.memory_space<vmem>>, vector<32x128xbf16>
    %cst_33 = arith.constant dense<0.000000e+00> : vector<112x128xf32>
    %58 = tpu.matmul %56, %57, %cst_33 {dimension_numbers = #tpu.dot_dimension_numbers<[1], [0], [0], [1], [0, 0, 1, 1], [], []>} : vector<112x32xbf16>, vector<32x128xbf16>, vector<112x128xf32> -> vector<112x128xf32>
    %59 = arith.addf %55, %58 : vector<112x128xf32>
    %c0_34 = arith.constant 0 : index
    %c0_35 = arith.constant 0 : index
    %60 = vector.load %arg10[%c0_34, %c0_35] : memref<1x128xf32, #tpu.memory_space<vmem>>, vector<1x128xf32>
    %61 = vector.broadcast %60 : vector<1x128xf32> to vector<112x128xf32>
    %62 = arith.addf %59, %61 : vector<112x128xf32>
    %cst_36 = arith.constant 0.000000e+00 : f32
    %63 = vector.broadcast %cst_36 : f32 to vector<112x128xf32>
    %64 = arith.maximumf %62, %63 : vector<112x128xf32>
    %65 = math.absf %62 : vector<112x128xf32>
    %cst_37 = arith.constant 0.000000e+00 : f32
    %66 = vector.broadcast %cst_37 : f32 to vector<112x128xf32>
    %67 = arith.subf %66, %65 : vector<112x128xf32>
    %68 = math.exp %67 : vector<112x128xf32>
    %69 = math.log1p %68 : vector<112x128xf32>
    %70 = arith.addf %64, %69 : vector<112x128xf32>
    %cst_38 = arith.constant 0.693147182 : f32
    %71 = vector.broadcast %cst_38 : f32 to vector<112x128xf32>
    %72 = arith.subf %70, %71 : vector<112x128xf32>
    %73 = arith.truncf %72 : vector<112x128xf32> to vector<112x128xbf16>
    %c0_39 = arith.constant 0 : index
    %c0_40 = arith.constant 0 : index
    %74 = vector.load %arg11[%c0_39, %c0_40] : memref<128x64xbf16, #tpu.memory_space<vmem>>, vector<128x64xbf16>
    %cst_41 = arith.constant dense<0.000000e+00> : vector<112x64xf32>
    %75 = tpu.matmul %73, %74, %cst_41 {dimension_numbers = #tpu.dot_dimension_numbers<[1], [0], [0], [1], [0, 0, 1, 1], [], []>} : vector<112x128xbf16>, vector<128x64xbf16>, vector<112x64xf32> -> vector<112x64xf32>
    %c0_42 = arith.constant 0 : index
    %c0_43 = arith.constant 0 : index
    %76 = vector.load %arg12[%c0_42, %c0_43] : memref<1x64xf32, #tpu.memory_space<vmem>>, vector<1x64xf32>
    %77 = vector.broadcast %76 : vector<1x64xf32> to vector<112x64xf32>
    %78 = arith.addf %75, %77 : vector<112x64xf32>
    %79 = vector.extract_strided_slice %78 {offsets = [0, 0], sizes = [112, 32], strides = [1, 1]} : vector<112x64xf32> to vector<112x32xf32>
    %cst_44 = arith.constant 0.000000e+00 : f32
    %80 = vector.broadcast %cst_44 : f32 to vector<112x32xf32>
    %81 = arith.maximumf %79, %80 : vector<112x32xf32>
    %82 = math.absf %79 : vector<112x32xf32>
    %cst_45 = arith.constant 0.000000e+00 : f32
    %83 = vector.broadcast %cst_45 : f32 to vector<112x32xf32>
    %84 = arith.subf %83, %82 : vector<112x32xf32>
    %85 = math.exp %84 : vector<112x32xf32>
    %86 = math.log1p %85 : vector<112x32xf32>
    %87 = arith.addf %81, %86 : vector<112x32xf32>
    %cst_46 = arith.constant 0.693147182 : f32
    %88 = vector.broadcast %cst_46 : f32 to vector<112x32xf32>
    %89 = arith.subf %87, %88 : vector<112x32xf32>
    %90 = vector.extract_strided_slice %78 {offsets = [0, 32], sizes = [112, 32], strides = [1, 1]} : vector<112x64xf32> to vector<112x32xf32>
    %cst_47 = arith.constant 5.000000e-01 : f32
    %91 = vector.broadcast %cst_47 : f32 to vector<112x32xf32>
    %92 = arith.mulf %91, %90 : vector<112x32xf32>
    %93 = math.tanh %92 : vector<112x32xf32>
    %cst_48 = arith.constant 5.000000e-01 : f32
    %94 = vector.broadcast %cst_48 : f32 to vector<112x32xf32>
    %95 = arith.mulf %94, %93 : vector<112x32xf32>
    %cst_49 = arith.constant 5.000000e-01 : f32
    %96 = vector.broadcast %cst_49 : f32 to vector<112x32xf32>
    %97 = arith.addf %95, %96 : vector<112x32xf32>
    %98 = arith.mulf %89, %97 : vector<112x32xf32>
    %99 = vector.extract_strided_slice %4 {offsets = [0, 32], sizes = [112, 32], strides = [1, 1]} : vector<112x64xf32> to vector<112x32xf32>
    %100 = arith.mulf %98, %99 : vector<112x32xf32>
    %101 = arith.truncf %100 : vector<112x32xf32> to vector<112x32xbf16>
    %c0_50 = arith.constant 0 : index
    %c0_51 = arith.constant 0 : index
    %102 = vector.load %arg15[%c0_50, %c0_51] : memref<112x32xbf16, #tpu.memory_space<vmem>>, vector<112x32xbf16>
    tpu.vector_store %arg15[%c0_50, %c0_51], %101 {strides = array<i32>} : memref<112x32xbf16, #tpu.memory_space<vmem>>, vector<112x32xbf16>,
    return
  }
  func.func @transform_0(%arg0: i32) -> (i32, i32) {
    %c0_i32 = arith.constant 0 : i32
    %c0_i32_0 = arith.constant 0 : i32
    return %arg0, %c0_i32 : i32, i32
  }
  func.func @transform_1(%arg0: i32) -> (i32, i32) {
    %c0_i32 = arith.constant 0 : i32
    %c0_i32_0 = arith.constant 0 : i32
    return %arg0, %c0_i32 : i32, i32
  }
  func.func @transform_2(%arg0: i32) -> (i32, i32) {
    %c0_i32 = arith.constant 0 : i32
    %c0_i32_0 = arith.constant 0 : i32
    return %arg0, %c0_i32 : i32, i32
  }
  func.func @transform_3(%arg0: i32) -> (i32, i32) {
    %c0_i32 = arith.constant 0 : i32
    %c0_i32_0 = arith.constant 0 : i32
    %c0_i32_1 = arith.constant 0 : i32
    return %c0_i32, %c0_i32_0 : i32, i32
  }
  func.func @transform_4(%arg0: i32) -> (i32, i32) {
    %c0_i32 = arith.constant 0 : i32
    %c0_i32_0 = arith.constant 0 : i32
    %c0_i32_1 = arith.constant 0 : i32
    return %c0_i32, %c0_i32_0 : i32, i32
  }
  func.func @transform_5(%arg0: i32) -> (i32, i32) {
    %c0_i32 = arith.constant 0 : i32
    %c0_i32_0 = arith.constant 0 : i32
    %c0_i32_1 = arith.constant 0 : i32
    return %c0_i32, %c0_i32_0 : i32, i32
  }
  func.func @transform_6(%arg0: i32) -> (i32, i32) {
    %c0_i32 = arith.constant 0 : i32
    %c0_i32_0 = arith.constant 0 : i32
    %c0_i32_1 = arith.constant 0 : i32
    return %c0_i32, %c0_i32_0 : i32, i32
  }
  func.func @transform_7(%arg0: i32) -> (i32, i32) {
    %c0_i32 = arith.constant 0 : i32
    %c0_i32_0 = arith.constant 0 : i32
    %c0_i32_1 = arith.constant 0 : i32
    return %c0_i32, %c0_i32_0 : i32, i32
  }
  func.func @transform_8(%arg0: i32) -> (i32, i32) {
    %c0_i32 = arith.constant 0 : i32
    %c0_i32_0 = arith.constant 0 : i32
    %c0_i32_1 = arith.constant 0 : i32
    return %c0_i32, %c0_i32_0 : i32, i32
  }
  func.func @transform_9(%arg0: i32) -> (i32, i32) {
    %c0_i32 = arith.constant 0 : i32
    %c0_i32_0 = arith.constant 0 : i32
    %c0_i32_1 = arith.constant 0 : i32
    return %c0_i32, %c0_i32_0 : i32, i32
  }
  func.func @transform_10(%arg0: i32) -> (i32, i32) {
    %c0_i32 = arith.constant 0 : i32
    %c0_i32_0 = arith.constant 0 : i32
    %c0_i32_1 = arith.constant 0 : i32
    return %c0_i32, %c0_i32_0 : i32, i32
  }
  func.func @transform_11(%arg0: i32) -> (i32, i32) {
    %c0_i32 = arith.constant 0 : i32
    %c0_i32_0 = arith.constant 0 : i32
    %c0_i32_1 = arith.constant 0 : i32
    return %c0_i32, %c0_i32_0 : i32, i32
  }
  func.func @transform_12(%arg0: i32) -> (i32, i32) {
    %c0_i32 = arith.constant 0 : i32
    %c0_i32_0 = arith.constant 0 : i32
    %c0_i32_1 = arith.constant 0 : i32
    return %c0_i32, %c0_i32_0 : i32, i32
  }
  func.func @transform_13(%arg0: i32) -> (i32, i32) {
    %c0_i32 = arith.constant 0 : i32
    %c0_i32_0 = arith.constant 0 : i32
    return %arg0, %c0_i32 : i32, i32
  }
  func.func @transform_14(%arg0: i32) -> (i32, i32) {
    %c0_i32 = arith.constant 0 : i32
    %c0_i32_0 = arith.constant 0 : i32
    return %arg0, %c0_i32 : i32, i32
  }
}

module attributes {stable_mosaic.version = 11 : i64} {
  func.func @_state_update_kernel(%arg0: i32, %arg1: memref<16x32xf32, #tpu.memory_space<vmem>>, %arg2: memref<1x16xf32, #tpu.memory_space<vmem>>, %arg3: memref<16x32xf32, #tpu.memory_space<vmem>>, %arg4: memref<32x32xf32, #tpu.memory_space<vmem>>, %arg5: memref<1x32xf32, #tpu.memory_space<vmem>>, %arg6: memref<32x16xf32, #tpu.memory_space<vmem>>, %arg7: memref<1x16xf32, #tpu.memory_space<vmem>>, %arg8: memref<1x16xf32, #tpu.memory_space<vmem>>, %arg9: memref<1x32xf32, #tpu.memory_space<vmem>>) attributes {dimension_semantics = [#tpu.dimension_semantics<arbitrary>], iteration_bounds = array<i64: 1>, scalar_prefetch = 0 : i64, scratch_operands = 1 : i64, tpu.core_type = #tpu.core_type<tc>, window_params = [{transform_indices = @transform_0, window_bounds = array<i64: 16, 32>}, {pipeline_mode = #tpu.pipeline_mode<synchronous>, transform_indices = @transform_1, window_bounds = array<i64: 1, 16>}, {pipeline_mode = #tpu.pipeline_mode<synchronous>, transform_indices = @transform_2, window_bounds = array<i64: 16, 32>}, {pipeline_mode = #tpu.pipeline_mode<synchronous>, transform_indices = @transform_3, window_bounds = array<i64: 32, 32>}, {pipeline_mode = #tpu.pipeline_mode<synchronous>, transform_indices = @transform_4, window_bounds = array<i64: 1, 32>}, {pipeline_mode = #tpu.pipeline_mode<synchronous>, transform_indices = @transform_5, window_bounds = array<i64: 32, 16>}, {pipeline_mode = #tpu.pipeline_mode<synchronous>, transform_indices = @transform_6, window_bounds = array<i64: 1, 16>}, {pipeline_mode = #tpu.pipeline_mode<synchronous>, transform_indices = @transform_7, window_bounds = array<i64: 1, 16>}]} {
    %c0_i32 = arith.constant 0 : i32
    %0 = arith.cmpi eq, %arg0, %c0_i32 : i32
    %1 = arith.extui %0 : i1 to i32
    %c0_i32_0 = arith.constant 0 : i32
    %2 = arith.cmpi ne, %1, %c0_i32_0 : i32
    scf.if %2 {
      %cst_9 = arith.constant 0.000000e+00 : f32
      %12 = vector.broadcast %cst_9 : f32 to vector<1x32xf32>
      %c0_10 = arith.constant 0 : index
      %c0_11 = arith.constant 0 : index
      %13 = vector.load %arg9[%c0_10, %c0_11] : memref<1x32xf32, #tpu.memory_space<vmem>>, vector<1x32xf32>
      tpu.vector_store %arg9[%c0_10, %c0_11], %12 {strides = array<i32>} : memref<1x32xf32, #tpu.memory_space<vmem>>, vector<1x32xf32>,
    } else {
    }
    %cst = arith.constant 1.000000e+00 : f32
    %3 = vector.broadcast %cst : f32 to vector<1x16xf32>
    %c0 = arith.constant 0 : index
    %c0_1 = arith.constant 0 : index
    %4 = vector.load %arg9[%c0, %c0_1] : memref<1x32xf32, #tpu.memory_space<vmem>>, vector<1x32xf32>
    %c0_2 = arith.constant 0 : index
    %c0_3 = arith.constant 0 : index
    %5 = vector.load %arg1[%c0_2, %c0_3] : memref<16x32xf32, #tpu.memory_space<vmem>>, vector<16x32xf32>
    %cst_4 = arith.constant dense<0.000000e+00> : vector<1x32xf32>
    %6 = tpu.matmul %3, %5, %cst_4 {dimension_numbers = #tpu.dot_dimension_numbers<[1], [0], [0], [1], [0, 0, 1, 1], [], []>} : vector<1x16xf32>, vector<16x32xf32>, vector<1x32xf32> -> vector<1x32xf32>
    %7 = arith.addf %4, %6 : vector<1x32xf32>
    %c0_5 = arith.constant 0 : index
    %c0_6 = arith.constant 0 : index
    %8 = vector.load %arg9[%c0_5, %c0_6] : memref<1x32xf32, #tpu.memory_space<vmem>>, vector<1x32xf32>
    tpu.vector_store %arg9[%c0_5, %c0_6], %7 {strides = array<i32>} : memref<1x32xf32, #tpu.memory_space<vmem>>, vector<1x32xf32>,
    %c0_i32_7 = arith.constant 0 : i32
    %9 = arith.cmpi eq, %arg0, %c0_i32_7 : i32
    %10 = arith.extui %9 : i1 to i32
    %c0_i32_8 = arith.constant 0 : i32
    %11 = arith.cmpi ne, %10, %c0_i32_8 : i32
    scf.if %11 {
      %c0_9 = arith.constant 0 : index
      %c0_10 = arith.constant 0 : index
      %12 = vector.load %arg2[%c0_9, %c0_10] : memref<1x16xf32, #tpu.memory_space<vmem>>, vector<1x16xf32>
      %c0_11 = arith.constant 0 : index
      %c0_12 = arith.constant 0 : index
      %13 = vector.load %arg3[%c0_11, %c0_12] : memref<16x32xf32, #tpu.memory_space<vmem>>, vector<16x32xf32>
      %cst_13 = arith.constant dense<0.000000e+00> : vector<1x32xf32>
      %14 = tpu.matmul %12, %13, %cst_13 {dimension_numbers = #tpu.dot_dimension_numbers<[1], [0], [0], [1], [0, 0, 1, 1], [], []>} : vector<1x16xf32>, vector<16x32xf32>, vector<1x32xf32> -> vector<1x32xf32>
      %c0_14 = arith.constant 0 : index
      %c0_15 = arith.constant 0 : index
      %15 = vector.load %arg9[%c0_14, %c0_15] : memref<1x32xf32, #tpu.memory_space<vmem>>, vector<1x32xf32>
      %c0_16 = arith.constant 0 : index
      %c0_17 = arith.constant 0 : index
      %16 = vector.load %arg4[%c0_16, %c0_17] : memref<32x32xf32, #tpu.memory_space<vmem>>, vector<32x32xf32>
      %cst_18 = arith.constant dense<0.000000e+00> : vector<1x32xf32>
      %17 = tpu.matmul %15, %16, %cst_18 {dimension_numbers = #tpu.dot_dimension_numbers<[1], [0], [0], [1], [0, 0, 1, 1], [], []>} : vector<1x32xf32>, vector<32x32xf32>, vector<1x32xf32> -> vector<1x32xf32>
      %18 = arith.addf %14, %17 : vector<1x32xf32>
      %c0_19 = arith.constant 0 : index
      %c0_20 = arith.constant 0 : index
      %19 = vector.load %arg5[%c0_19, %c0_20] : memref<1x32xf32, #tpu.memory_space<vmem>>, vector<1x32xf32>
      %20 = arith.addf %18, %19 : vector<1x32xf32>
      %cst_21 = arith.constant 0.000000e+00 : f32
      %21 = vector.broadcast %cst_21 : f32 to vector<1x32xf32>
      %22 = arith.maximumf %20, %21 : vector<1x32xf32>
      %23 = math.absf %20 : vector<1x32xf32>
      %cst_22 = arith.constant 0.000000e+00 : f32
      %24 = vector.broadcast %cst_22 : f32 to vector<1x32xf32>
      %25 = arith.subf %24, %23 : vector<1x32xf32>
      %26 = math.exp %25 : vector<1x32xf32>
      %27 = math.log1p %26 : vector<1x32xf32>
      %28 = arith.addf %22, %27 : vector<1x32xf32>
      %cst_23 = arith.constant 0.693147182 : f32
      %29 = vector.broadcast %cst_23 : f32 to vector<1x32xf32>
      %30 = arith.subf %28, %29 : vector<1x32xf32>
      %c0_24 = arith.constant 0 : index
      %c0_25 = arith.constant 0 : index
      %31 = vector.load %arg6[%c0_24, %c0_25] : memref<32x16xf32, #tpu.memory_space<vmem>>, vector<32x16xf32>
      %cst_26 = arith.constant dense<0.000000e+00> : vector<1x16xf32>
      %32 = tpu.matmul %30, %31, %cst_26 {dimension_numbers = #tpu.dot_dimension_numbers<[1], [0], [0], [1], [0, 0, 1, 1], [], []>} : vector<1x32xf32>, vector<32x16xf32>, vector<1x16xf32> -> vector<1x16xf32>
      %c0_27 = arith.constant 0 : index
      %c0_28 = arith.constant 0 : index
      %33 = vector.load %arg7[%c0_27, %c0_28] : memref<1x16xf32, #tpu.memory_space<vmem>>, vector<1x16xf32>
      %34 = arith.addf %32, %33 : vector<1x16xf32>
      %cst_29 = arith.constant 0.000000e+00 : f32
      %35 = vector.broadcast %cst_29 : f32 to vector<1x16xf32>
      %36 = arith.maximumf %34, %35 : vector<1x16xf32>
      %37 = math.absf %34 : vector<1x16xf32>
      %cst_30 = arith.constant 0.000000e+00 : f32
      %38 = vector.broadcast %cst_30 : f32 to vector<1x16xf32>
      %39 = arith.subf %38, %37 : vector<1x16xf32>
      %40 = math.exp %39 : vector<1x16xf32>
      %41 = math.log1p %40 : vector<1x16xf32>
      %42 = arith.addf %36, %41 : vector<1x16xf32>
      %cst_31 = arith.constant 0.693147182 : f32
      %43 = vector.broadcast %cst_31 : f32 to vector<1x16xf32>
      %44 = arith.subf %42, %43 : vector<1x16xf32>
      %c0_32 = arith.constant 0 : index
      %c0_33 = arith.constant 0 : index
      %45 = vector.load %arg8[%c0_32, %c0_33] : memref<1x16xf32, #tpu.memory_space<vmem>>, vector<1x16xf32>
      tpu.vector_store %arg8[%c0_32, %c0_33], %44 {strides = array<i32>} : memref<1x16xf32, #tpu.memory_space<vmem>>, vector<1x16xf32>,
    } else {
    }
    return
  }
  func.func @transform_0(%arg0: i32) -> (i32, i32) {
    %c0_i32 = arith.constant 0 : i32
    %c0_i32_0 = arith.constant 0 : i32
    return %arg0, %c0_i32 : i32, i32
  }
  func.func @transform_1(%arg0: i32) -> (i32, i32) {
    %c0_i32 = arith.constant 0 : i32
    %c0_i32_0 = arith.constant 0 : i32
    %c0_i32_1 = arith.constant 0 : i32
    return %c0_i32, %c0_i32_0 : i32, i32
  }
  func.func @transform_2(%arg0: i32) -> (i32, i32) {
    %c0_i32 = arith.constant 0 : i32
    %c0_i32_0 = arith.constant 0 : i32
    %c0_i32_1 = arith.constant 0 : i32
    return %c0_i32, %c0_i32_0 : i32, i32
  }
  func.func @transform_3(%arg0: i32) -> (i32, i32) {
    %c0_i32 = arith.constant 0 : i32
    %c0_i32_0 = arith.constant 0 : i32
    %c0_i32_1 = arith.constant 0 : i32
    return %c0_i32, %c0_i32_0 : i32, i32
  }
  func.func @transform_4(%arg0: i32) -> (i32, i32) {
    %c0_i32 = arith.constant 0 : i32
    %c0_i32_0 = arith.constant 0 : i32
    %c0_i32_1 = arith.constant 0 : i32
    return %c0_i32, %c0_i32_0 : i32, i32
  }
  func.func @transform_5(%arg0: i32) -> (i32, i32) {
    %c0_i32 = arith.constant 0 : i32
    %c0_i32_0 = arith.constant 0 : i32
    %c0_i32_1 = arith.constant 0 : i32
    return %c0_i32, %c0_i32_0 : i32, i32
  }
  func.func @transform_6(%arg0: i32) -> (i32, i32) {
    %c0_i32 = arith.constant 0 : i32
    %c0_i32_0 = arith.constant 0 : i32
    %c0_i32_1 = arith.constant 0 : i32
    return %c0_i32, %c0_i32_0 : i32, i32
  }
  func.func @transform_7(%arg0: i32) -> (i32, i32) {
    %c0_i32 = arith.constant 0 : i32
    %c0_i32_0 = arith.constant 0 : i32
    %c0_i32_1 = arith.constant 0 : i32
    return %c0_i32, %c0_i32_0 : i32, i32
  }
}

</mosaic_0001>

<bundles_post_ra>
// kernel: diep_graph_conv_forward.4
= control target key start
LH: loop header
LB: loop body
LE: loop exit
PB: predicated region body
PF: predicated region fallthrough
CT: control target
= control target key end

     0   :  { %v201_v0 = vmov 0.0   ;;  %vm202_vm0 = vmmov 0   ;;  %vm21_vm1 = vcmask 261120   ;;  %v25_v4 = vlaneseq  ;;  %s275_s1 = inlined_call_operand.vmem [shape: bf16[112,32], index: 1, kind: input, shape index: {}]   ;;  %s276_s2 = inlined_call_operand.vmem [shape: f32[16,32], index: 2, kind: input, shape index: {}]   ;;  %s277_s3 = inlined_call_operand.vmem [shape: f32[16,32], index: 3, kind: output, shape index: {}]   ;;  %s278_s0 = inlined_call_operand.vmem [shape: s32[1,112], index: 0, kind: input, shape index: {}]  }
   0x1   :  { %174 = vmatprep.subr.bf16.mxu0 %v201_v0  ;;  %v194_v1 = vld [vmem:[%s275_s1 + $0x30] sm:$0xff]   ;;  %188 = vmatprep.mubr.msk.bf16.mxu0 %vm202_vm0, %v201_v0  ;;  %v195_v2 = vld [vmem:[%s275_s1 + $0x28] sm:$0xff]   ;;  %v196_v3 = vld [vmem:[%s275_s1 + $0x20] sm:$0xff]   ;;  %vm101_vm4 = vcmask 916480  }
   0x2   :  { %175 = vmatpush3.bf16.msra.mxu0 %v194_v1  ;;  %v19_v5 = vld [vmem:[%s276_s2] sm:$0xff]  ;;  %v197_v6 = vld [vmem:[%s275_s1 + $0x18] sm:$0xff]   ;;  %v26_v7 = vshrl.u32 %v25_v4, 7  ;;  %v198_v8 = vld [vmem:[%s275_s1 + $0x10] sm:$0xff]  }
   0x3   :  { %176 = vmatprep.subr.bf16.mxu0 %v201_v0  ;;  %22 = vst.msk [vmem:[%s277_s3] sm:$0xff] %vm21_vm1, %v19_v5  ;;  %v155_v10 = vld [vmem:[%s278_s0] ss:$0 sm:$0xff]  ;;  %v199_v11 = vld [vmem:[%s275_s1 + $0x8] sm:$0xff]  }
   0x4   :  { %v27_v9 = vadd.s32 8, %v26_v7  ;;  %vm36_vm2 = vcmp.eq.s32.totalorder %v26_v7, %v155_v10  ;;  %v200_v12 = vld [vmem:[%s275_s1] sm:$0xff]   ;;  %v20_v16 = vld [vmem:[%s276_s2 + $0x8] sm:$0xff] }
   0x5   :  { %v156_v13 = vsel %vm36_vm2, 1.0, %v201_v0  ;;  %23 = vst.msk [vmem:[%s277_s3 + $0x8] sm:$0xff] %vm21_vm1, %v20_v16 }
   0x6   :  { %177 = vmatpush3.bf16.msra.mxu0 %v195_v2  ;;  %vm37_vm3 = vcmp.eq.s32.totalorder %v27_v9, %v155_v10 }
   0x7   :  { %178 = vmatprep.subr.bf16.mxu0 %v201_v0  ;;  %v157_v14 = vsel %vm37_vm3, 1.0, %v201_v0 }
   0x8   :  { %v42_v15 = vpack.c.bf16 %v157_v14, %v156_v13 }
   0xa   :  { %179 = vmatpush3.bf16.msra.mxu0 %v196_v3  ;;  %v43_v17 = vld [vmem:[%s277_s3] sm:$0xff] }
   0xb   :  { %180 = vmatprep.subr.bf16.mxu0 %v201_v0 }
   0xc   :  { %v44_v21 = vld [vmem:[%s277_s3 + $0x8] sm:$0xff] }
   0xe   :  { %181 = vmatpush3.bf16.msra.mxu0 %v197_v6 }
   0xf   :  { %182 = vmatprep.subr.bf16.mxu0 %v201_v0 }
  0x12   :  { %183 = vmatpush3.bf16.msra.mxu0 %v198_v8 }
  0x13   :  { %184 = vmatprep.subr.bf16.mxu0 %v201_v0 }
  0x16   :  { %185 = vmatpush3.bf16.msra.mxu0 %v199_v11 }
  0x17   :  { %186 = vmatprep.subr.bf16.mxu0 %v201_v0 }
  0x1a   :  { %187 = vmatpush3.bf16.msra.mxu0 %v200_v12 }
  0x1d   :  { %189 = vmatmul.mubr.msk.bf16.vlgmr.msra.gmra.mxu0 %vm101_vm4, %v42_v15 }
  0xdd   :  { %v139_v18 = vpop.f32.mrf.mxu0 }
  0xde   :  { %v146_v19 = vadd.f32 %v139_v18, %v43_v17 }
  0xdf   :  { %v190_v20 = vpop.f32.mrf.mxu0 }
  0xe0   :  { %149 = vst.msk [vmem:[%s277_s3] sm:$0xff] %vm21_vm1, %v146_v19 }
  0xe1   :  { %v142_v22 = vpop.f32.mrf.mxu0 }
  0xe2   :  { %v147_v23 = vadd.f32 %v142_v22, %v44_v21 }
  0xe3   :  { %v191_v24 = vpop.f32.mrf.mxu0 }
  0xe4   :  { %150 = vst.msk [vmem:[%s277_s3 + $0x8] sm:$0xff] %vm21_vm1, %v147_v23 }

// kernel: diep_graph_conv_forward.5
= control target key start
LH: loop header
LB: loop body
LE: loop exit
PB: predicated region body
PF: predicated region fallthrough
CT: control target
= control target key end

     0   :  { %v491_v1 = vmov 0.0   ;;  %vm492_vm0 = vmmov 0   ;;  %vm31_vm1 = vcmask 253952   ;;  %s593_s0 = inlined_call_operand.vmem [shape: f32[16,32], index: 0, kind: input, shape index: {}]   ;;  %s594_s1 = inlined_call_operand.vmem [shape: f32[1,16], index: 1, kind: input, shape index: {}]   ;;  %s595_s2 = inlined_call_operand.vmem [shape: f32[16,32], index: 2, kind: input, shape index: {}]   ;;  %s596_s3 = inlined_call_operand.vmem [shape: f32[32,32], index: 3, kind: input, shape index: {}]   ;;  %s597_s4 = inlined_call_operand.vmem [shape: f32[1,32], index: 4, kind: input, shape index: {}]   ;;  %s598_s5 = inlined_call_operand.vmem [shape: f32[32,16], index: 5, kind: input, shape index: {}]   ;;  %s599_s6 = inlined_call_operand.vmem [shape: f32[1,16], index: 6, kind: input, shape index: {}]   ;;  %s600_s7 = inlined_call_operand.hbm [shape: f32[1,16], index: 7, kind: output, shape index: {}]  }
   0x1   :  { %v35_v0 = vld [vmem:[%s593_s0 + $0x8] sm:$0xff]  ;;  %421 = vmatprep.subr.mxu1 %v491_v1  ;;  %v34_v2 = vld [vmem:[%s593_s0] sm:$0xff]  ;;  %425 = vmatprep.mubr.msk.f32.mxu1 %vm492_vm0, %v491_v1 }
   0x2   :  { %12 = vsyncpa [#allocation4], 0  ;;  %422 = vmatpush3.msra.mxu1 %v35_v0  ;;  %vm36_vm2 = vcmask 130048   ;;  %32 = vst.msk [vmem:[#allocation2] sm:$0x1] %vm31_vm1, %v491_v1  ;;  %439 = vmatprep.subr.mxu0 %v491_v1  ;;  %v493_v3 = vmov 1.0  }
   0x3   :  { %423 = vmatprep.subr.mxu1 %v491_v1  ;;  %443 = vmatprep.mubr.msk.f32.mxu0 %vm492_vm0, %v491_v1  ;;  %v123_v4 = vld [vmem:[%s596_s3 + $0x18] sm:$0xff]  ;;  %v122_v5 = vld [vmem:[%s596_s3 + $0x10] sm:$0xff]  ;;  %v118_v6 = vld [vmem:[%s595_s2 + $0x8] sm:$0xff]  ;;  %vm124_vm3 = vcmask 261120   ;;  %vm383_vm6 = vcmask 122880  }
   0x4   :  { %424 = vmatpush3.msra.mxu1 %v34_v2  ;;  %440 = vmatpush3.msra.mxu0 %v118_v6  ;;  %v117_v7 = vld [vmem:[%s595_s2] sm:$0xff]  ;;  %v121_v9 = vld [vmem:[%s596_s3 + $0x8] sm:$0xff]  ;;  %v292_v18 = vld [vmem:[%s598_s5 + $0x18] sm:$0xff] }
   0x5   :  { %426 = vmatmul.mubr.msk.f32.vlgmr.msra.gmra.mxu1 %vm36_vm2, %v493_v3  ;;  %428 = vmatprep.subr.mxu1 %v491_v1  ;;  %v116_v8 = vld [vmem:[%s594_s1] sm:$0x1]  ;;  %v291_v19 = vld [vmem:[%s598_s5 + $0x10] sm:$0xff]  ;;  %v290_v20 = vld [vmem:[%s598_s5 + $0x8] sm:$0xff] }
   0x6   :  { %436 = vmatprep.mubr.msk.f32.mxu1 %vm492_vm0, %v491_v1  ;;  %429 = vmatpush3.msra.mxu1 %v123_v4  ;;  %v120_v10 = vld [vmem:[%s596_s3] sm:$0xff] }
   0x7   :  { %430 = vmatprep.subr.mxu1 %v491_v1  ;;  %441 = vmatprep.subr.mxu0 %v491_v1  ;;  %v289_v21 = vld [vmem:[%s598_s5] sm:$0xff] }
   0x8   :  { %431 = vmatpush3.msra.mxu1 %v122_v5  ;;  %442 = vmatpush3.msra.mxu0 %v117_v7  ;;  %v271_v23 = vld [vmem:[%s597_s4] sm:$0x1] }
   0x9   :  { %432 = vmatprep.subr.mxu1 %v491_v1  ;;  %444 = vmatmul.mubr.msk.f32.vlgmr.msra.gmra.mxu0 %vm36_vm2, %v116_v8  ;;  %v33_v11 = vld [vmem:[#allocation2] sm:$0x1] }
   0xa   :  { %433 = vmatpush3.msra.mxu1 %v121_v9  ;;  %446 = vmatprep.subr.mxu0 %v491_v1  ;;  %v293_v42 = vld [vmem:[%s599_s6] sm:$0x1]  ;;  %s494_s6 = smov [#allocation3]  }
   0xb   :  { %434 = vmatprep.subr.mxu1 %v491_v1  ;;  %454 = vmatprep.mubr.msk.f32.mxu0 %vm492_vm0, %v491_v1  ;;  %s391_s25 = sshll.u32 %s494_s6, 4  ;;  %s392_s25 = int_to_ptr.vmem [resolvable:$true] %s391_s25 }
   0xc   :  { %435 = vmatpush3.msra.mxu1 %v120_v10  ;;  %447 = vmatpush3.msra.mxu0 %v292_v18  ;;  %s469_s26 = scalar_lea.vmem %s392_s25, 16  ;;  %s473_s27 = scalar_lea.vmem %s392_s25, 32 }
   0xd   :  { %448 = vmatprep.subr.mxu0 %v491_v1  ;;  %p470_p0 = scmp.ne.s32.totalorder %s392_s25, %s469_s26  ;;  %p474_p1 = scmp.lt.s32.totalorder %s392_s25, %s392_s25 }
   0xe   :  { %449 = vmatpush3.msra.mxu0 %v291_v19  ;;  %p475_p2 = scmp.lt.s32.totalorder %s473_s27, %s469_s26 }
   0xf   :  { %450 = vmatprep.subr.mxu0 %v491_v1 }
  0x10   :  { %451 = vmatpush3.msra.mxu0 %v290_v20  ;;  %p476_p3 = por %p475_p2, %p474_p1 }
  0x11   :  { %452 = vmatprep.subr.mxu0 %v491_v1 }
  0x12   :  { %453 = vmatpush3.msra.mxu0 %v289_v21  ;;  %p477_p4 = pnand %p476_p3, %p470_p0 }
  0xc5   :  { %v106_v12 = vpop.f32.mrf.mxu1 }
  0xc6   :  { %v110_v13 = vadd.f32 %v106_v12, %v33_v11 }
  0xc7   :  { %v427_v14 = vpop.f32.mrf.mxu1 }
  0xc8   :  { %112 = vst.msk [vmem:[#allocation2] sm:$0x1] %vm31_vm1, %v110_v13 }
  0xc9   :  { %v267_v16 = vpop.f32.mrf.mxu0 }
  0xcb   :  { %v445_v17 = vpop.f32.mrf.mxu0 }
  0xcf   :  { %v119_v15 = vld [vmem:[#allocation2] sm:$0x1] }
  0xd0   :  { %437 = vmatmul.mubr.msk.f32.vlgmr.msra.gmra.mxu1 %vm124_vm3, %v119_v15 }
 0x190   :  { %v194_v22 = vpop.f32.mrf.mxu1 }
 0x191   :  { %v268_v24 = vadd.f32 %v267_v16, %v194_v22 }
 0x192   :  { %v438_v25 = vpop.f32.mrf.mxu1 }
 0x193   :  { %v272_v26 = vadd.f32 %v271_v23, %v268_v24 }
 0x195   :  { %v274_v27 = vand.u32 2147483647, %v272_v26  ;;  %v273_v38 = vmax.f32 %v272_v26, 0.0 }
 0x197   :  { %v275_v28 = vsub.f32 0.0, %v274_v27 }
 0x199   :  { %v276_v29 = vmul.f32 1.442695, %v275_v28 }
 0x19b   :  { %461 = vpow2.f32 %v276_v29 }
 0x1a8   :  { %v462_v30 = vpop.eup %461 }
 0x1a9   :  { %v278_v31 = vadd.f32 1.0, %v462_v30  ;;  %v281_v32 = vmul.f32 -0.5, %v462_v30  ;;  %v284_v34 = vand.u32 2147483647, %v462_v30 }
 0x1ab   :  { %463 = vlog2.f32 %v278_v31  ;;  %v282_v33 = vadd.f32 1.0, %v281_v32  ;;  %vm285_vm4 = vcmp.lt.f32.partialorder %v284_v34, 0.0004427343 }
 0x1ad   :  { %v283_v37 = vmul.f32 %v462_v30, %v282_v33 }
 0x1b8   :  { %v464_v35 = vpop.eup %463 }
 0x1b9   :  { %v280_v36 = vmul.f32 0.6931472, %v464_v35 }
 0x1bb   :  { %v286_v39 = vsel %vm285_vm4, %v283_v37, %v280_v36 }
 0x1bc   :  { %v287_v40 = vadd.f32 %v286_v39, %v273_v38 }
 0x1be   :  { %v402_v41 = vadd.f32 -0.6931472, %v287_v40 }
 0x1c0   :  { %455 = vmatmul.mubr.msk.f32.vlgmr.msra.gmra.mxu0 %vm124_vm3, %v402_v41 }
 0x280   :  { %v363_v43 = vpop.f32.mrf.mxu0 }
 0x281   :  { %v364_v44 = vadd.f32 %v363_v43, %v293_v42 }
 0x282   :  { %v456_v45 = vpop.f32.mrf.mxu0 }
 0x283   :  { %v368_v46 = vand.u32 2147483647, %v364_v44  ;;  %v367_v57 = vmax.f32 %v364_v44, 0.0 }
 0x285   :  { %v369_v47 = vsub.f32 0.0, %v368_v46 }
 0x287   :  { %v370_v48 = vmul.f32 1.442695, %v369_v47 }
 0x289   :  { %465 = vpow2.f32 %v370_v48 }
 0x296   :  { %v466_v49 = vpop.eup %465 }
 0x297   :  { %v372_v50 = vadd.f32 1.0, %v466_v49  ;;  %v375_v51 = vmul.f32 -0.5, %v466_v49  ;;  %v378_v53 = vand.u32 2147483647, %v466_v49 }
 0x299   :  { %467 = vlog2.f32 %v372_v50  ;;  %v376_v52 = vadd.f32 1.0, %v375_v51  ;;  %vm379_vm5 = vcmp.lt.f32.partialorder %v378_v53, 0.0004427343 }
 0x29b   :  { %v377_v56 = vmul.f32 %v466_v49, %v376_v52 }
 0x2a6   :  { %v468_v54 = vpop.eup %467 }
 0x2a7   :  { %v374_v55 = vmul.f32 0.6931472, %v468_v54 }
 0x2a9   :  { %v380_v58 = vsel %vm379_vm5, %v377_v56, %v374_v55 }
 0x2aa   :  { %v381_v59 = vadd.f32 %v380_v58, %v367_v57 }
 0x2ac   :  { %v404_v60 = vadd.f32 -0.6931472, %v381_v59 }
 0x2ae   :  { %384 = vst.msk [vmem:[#allocation3] sm:$0x1] %vm383_vm6, %v404_v60 }
 0x2af   :  { %480 = shalt.err (!%p477_p4)
}
 0x2b0   :  { %394 = dma.vmem_to_hbm [thread:$0]  %s392_s25, 16, %s600_s7, [#allocation4]  }
 0x2b1   :  { %489 = dma.done.wait [#allocation4], 16  }
 0x2b2   :  { %490 = vsyncadd [#allocation4], 4294967280 }
 0x2b3   :  { %398 = vsyncpa [#allocation4], 1 }

// kernel: diep_graph_conv_forward.3
= control target key start
LH: loop header
LB: loop body
LE: loop exit
PB: predicated region body
PF: predicated region fallthrough
CT: control target
= control target key end

     0   :  { %vm147_vm0 = vcmask 1043456   ;;  %vm125_vm1 = vcmask 64512   ;;  %v4735_v0 = vmov 0.0   ;;  %vm3255_vm2 = vmmov 0   ;;  %s4720_s12 = inlined_call_operand.vmem [shape: bf16[8,64], index: 12, kind: input, shape index: {}]   ;;  %s4721_s2 = inlined_call_operand.vmem [shape: bf16[112,8], index: 2, kind: input, shape index: {}]   ;;  %s4722_s4 = inlined_call_operand.vmem [shape: bf16[32,128], index: 4, kind: input, shape index: {}]   ;;  %s4723_s3 = inlined_call_operand.vmem [shape: bf16[64,256], index: 3, kind: input, shape index: {}]   ;;  %s4724_s0 = inlined_call_operand.vmem [shape: bf16[112,64], index: 0, kind: input, shape index: {}]   ;;  %s4725_s1 = inlined_call_operand.vmem [shape: bf16[112,32], index: 1, kind: input, shape index: {}]   ;;  %s4726_s6 = inlined_call_operand.vmem [shape: bf16[128,64], index: 6, kind: input, shape index: {}]   ;;  %s4727_s5 = inlined_call_operand.vmem [shape: f32[1,128], index: 5, kind: input, shape index: {}]   ;;  %s4728_s8 = inlined_call_operand.vmem [shape: bf16[32,128], index: 8, kind: input, shape index: {}]   ;;  %s4729_s7 = inlined_call_operand.vmem [shape: f32[1,64], index: 7, kind: input, shape index: {}]   ;;  %s4730_s10 = inlined_call_operand.vmem [shape: bf16[128,64], index: 10, kind: input, shape index: {}]   ;;  %s4731_s13 = inlined_call_operand.vmem [shape: f32[112,32], index: 13, kind: output, shape index: {0}]   ;;  %s4732_s9 = inlined_call_operand.vmem [shape: f32[1,128], index: 9, kind: input, shape index: {}]   ;;  %s4733_s11 = inlined_call_operand.vmem [shape: f32[1,64], index: 11, kind: input, shape index: {}]   ;;  %s4734_s14 = inlined_call_operand.vmem [shape: bf16[112,32], index: 14, kind: output, shape index: {1}]  }
   0x1   :  { %2721 = vmatprep.subr.bf16.mxu0 %v4735_v0  ;;  %v89_v1 = vld [vmem:[%s4720_s12] sm:$0xf]  ;;  %2723 = vmatprep.mubr.msk.bf16.mxu0 %vm3255_vm2, %v4735_v0  ;;  %v2908_v4 = vld [vmem:[%s4722_s4 + $0x8] sm:$0xff]   ;;  %v3256_v5 = vmov 0   ;;  %v2914_v8 = vld [vmem:[%s4723_s3 + $0x34] ss:$8 sps:$4 sm:$0xff]  }
   0x2   :  { %v149_v2 = vsel %vm147_vm0, %v89_v1, 0  ;;  %v2907_v3 = vld [vmem:[%s4721_s2] sm:$0xff]   ;;  %377 = vmatprep.mubr.bf16.mxu1 %v3256_v5  ;;  %v2909_v7 = vld [vmem:[%s4721_s2 + $0x8] sm:$0xff]   ;;  %v2916_v9 = vld [vmem:[%s4723_s3 + $0x30] ss:$8 sps:$4 sm:$0xff]   ;;  %353 = vmatprep.subr.bf16.mxu1 %v2914_v8  ;;  %vm323_vm3 = vcmask 523264  }
   0x3   :  { %2722 = vmatpush3.bf16.msra.mxu0 %v149_v2  ;;  %v2912_v6 = vld [vmem:[%s4722_s4] sm:$0xff]   ;;  %354 = vmatpush1.bf16.msra.mxu1 %v2916_v9  ;;  %v2921_v12 = vld [vmem:[%s4723_s3 + $0x14] ss:$8 sps:$4 sm:$0xff]   ;;  %v2923_v13 = vld [vmem:[%s4723_s3 + $0x10] ss:$8 sps:$4 sm:$0xff]   ;;  %vm499_vm4 = vcmask 261120  }
   0x4   :  { %2751 = vmatprep.subr.bf16.mxu0 %v4735_v0  ;;  %v2917_v10 = vld [vmem:[%s4723_s3 + $0x24] ss:$8 sps:$4 sm:$0xff]   ;;  %v2920_v11 = vld [vmem:[%s4723_s3 + $0x20] ss:$8 sps:$4 sm:$0xff]   ;;  %v2910_v15 = vld [vmem:[%s4721_s2 + $0x10] sm:$0xff]  }
   0x5   :  { %355 = vmatprep.subr.bf16.mxu1 %v2917_v10  ;;  %v2924_v14 = vld [vmem:[%s4723_s3 + $0x4] ss:$8 sps:$4 sm:$0xff]   ;;  %v2927_v16 = vld [vmem:[%s4723_s3] ss:$8 sps:$4 sm:$0xff]   ;;  %v2911_v18 = vld [vmem:[%s4721_s2 + $0x18] sm:$0xff]  }
   0x6   :  { %2724 = vmatmul.mubr.msk.bf16.vlgmr.msra.gmra.mxu0 %vm125_vm1, %v2907_v3  ;;  %v2928_v17 = vld [vmem:[%s4724_s0] sm:$0xff]   ;;  %v2930_v19 = vld [vmem:[%s4724_s0 + $0x8] sm:$0xff]   ;;  %v2932_v21 = vld [vmem:[%s4724_s0 + $0x10] sm:$0xff]  }
   0x7   :  { %2752 = vmatpush3.bf16.msra.mxu0 %v2908_v4  ;;  %2727 = vmatprep.mubr.msk.bf16.mxu0 %vm3255_vm2, %v4735_v0  ;;  %v2913_v20 = vld [vmem:[%s4721_s2 + $0x20] sm:$0xff]   ;;  %v2919_v22 = vld [vmem:[%s4721_s2 + $0x28] sm:$0xff]   ;;  %v2934_v23 = vld [vmem:[%s4724_s0 + $0x18] sm:$0xff]  }
   0x8   :  { %2753 = vmatprep.subr.bf16.mxu0 %v4735_v0  ;;  %356 = vmatpush1.bf16.msra.mxu1 %v2920_v11  ;;  %v2926_v24 = vld [vmem:[%s4721_s2 + $0x30] sm:$0xff]   ;;  %v61_v25 = vld [vmem:[%s4725_s1] sm:$0xff]   ;;  %v63_v27 = vld [vmem:[%s4725_s1 + $0x8] sm:$0xff]  }
   0x9   :  { %357 = vmatprep.subr.bf16.mxu1 %v2921_v12  ;;  %v2936_v26 = vld [vmem:[%s4724_s0 + $0x20] sm:$0xff]   ;;  %v2938_v28 = vld [vmem:[%s4724_s0 + $0x28] sm:$0xff]   ;;  %v65_v29 = vld [vmem:[%s4725_s1 + $0x10] sm:$0xff]  }
   0xa   :  { %v2940_v30 = vld [vmem:[%s4724_s0 + $0x30] sm:$0xff]   ;;  %v67_v31 = vld [vmem:[%s4725_s1 + $0x18] sm:$0xff]   ;;  %v69_v32 = vld [vmem:[%s4725_s1 + $0x20] sm:$0xff]  }
   0xb   :  { %2754 = vmatpush3.bf16.msra.mxu0 %v2912_v6  ;;  %v71_v33 = vld [vmem:[%s4725_s1 + $0x28] sm:$0xff]   ;;  %v73_v34 = vld [vmem:[%s4725_s1 + $0x30] sm:$0xff]   ;;  %v2942_v35 = vld [vmem:[%s4726_s6 + $0x38] sm:$0xff]  }
   0xc   :  { %2827 = vmatprep.subr.bf16.mxu0 %v4735_v0  ;;  %358 = vmatpush1.bf16.msra.mxu1 %v2923_v13  ;;  %v2943_v36 = vld [vmem:[%s4726_s6 + $0x30] sm:$0xff]   ;;  %v2944_v37 = vld [vmem:[%s4726_s6 + $0x28] sm:$0xff]   ;;  %v2945_v38 = vld [vmem:[%s4726_s6 + $0x20] sm:$0xff]  }
   0xd   :  { %359 = vmatprep.subr.bf16.mxu1 %v2924_v14  ;;  %v2946_v39 = vld [vmem:[%s4726_s6 + $0x18] sm:$0xff]   ;;  %v2947_v40 = vld [vmem:[%s4726_s6 + $0x10] sm:$0xff]   ;;  %v2948_v41 = vld [vmem:[%s4726_s6 + $0x8] sm:$0xff]  }
   0xe   :  { %2728 = vmatmul.mubr.msk.bf16.gmra.mxu0 %vm125_vm1, %v2909_v7  ;;  %v2949_v42 = vld [vmem:[%s4726_s6] sm:$0xff]  }
   0xf   :  { %2731 = vmatprep.mubr.msk.bf16.mxu0 %vm3255_vm2, %v4735_v0 }
  0x10   :  { %360 = vmatpush1.bf16.msra.mxu1 %v2927_v16 }
  0x11   :  { %2783 = vmatprep.subr.bf16.mxu1 %v4735_v0 }
  0x13   :  { %2529 = vmatmul.mubr.msk.bf16.vlgmr.msra.gmra.mxu1 %vm323_vm3, %v2928_v17 }
  0x14   :  { %387 = vmatprep.mubr.bf16.mxu1 %v3256_v5  ;;  %2784 = vmatpush3.bf16.msra.mxu1 %v2942_v35 }
  0x15   :  { %2785 = vmatprep.subr.bf16.mxu1 %v4735_v0 }
  0x16   :  { %2732 = vmatmul.mubr.msk.bf16.gmra.mxu0 %vm125_vm1, %v2910_v15 }
  0x17   :  { %2735 = vmatprep.mubr.msk.bf16.mxu0 %vm3255_vm2, %v4735_v0 }
  0x18   :  { %2786 = vmatpush3.bf16.msra.mxu1 %v2943_v36 }
  0x19   :  { %2787 = vmatprep.subr.bf16.mxu1 %v4735_v0 }
  0x1b   :  { %2530 = vmatmul.mubr.msk.bf16.gmra.mxu1 %vm323_vm3, %v2930_v19 }
  0x1c   :  { %397 = vmatprep.mubr.bf16.mxu1 %v3256_v5  ;;  %2788 = vmatpush3.bf16.msra.mxu1 %v2944_v37 }
  0x1d   :  { %2789 = vmatprep.subr.bf16.mxu1 %v4735_v0 }
  0x1e   :  { %2736 = vmatmul.mubr.msk.bf16.gmra.mxu0 %vm125_vm1, %v2911_v18 }
  0x1f   :  { %2739 = vmatprep.mubr.msk.bf16.mxu0 %vm3255_vm2, %v4735_v0 }
  0x20   :  { %2790 = vmatpush3.bf16.msra.mxu1 %v2945_v38 }
  0x21   :  { %2791 = vmatprep.subr.bf16.mxu1 %v4735_v0 }
  0x23   :  { %2531 = vmatmul.mubr.msk.bf16.gmra.mxu1 %vm323_vm3, %v2932_v21 }
  0x24   :  { %407 = vmatprep.mubr.bf16.mxu1 %v3256_v5  ;;  %2792 = vmatpush3.bf16.msra.mxu1 %v2946_v39 }
  0x25   :  { %2793 = vmatprep.subr.bf16.mxu1 %v4735_v0 }
  0x26   :  { %2740 = vmatmul.mubr.msk.bf16.gmra.mxu0 %vm125_vm1, %v2913_v20 }
  0x27   :  { %2743 = vmatprep.mubr.msk.bf16.mxu0 %vm3255_vm2, %v4735_v0 }
  0x28   :  { %2794 = vmatpush3.bf16.msra.mxu1 %v2947_v40 }
  0x29   :  { %2795 = vmatprep.subr.bf16.mxu1 %v4735_v0 }
  0x2b   :  { %2532 = vmatmul.mubr.msk.bf16.gmra.mxu1 %vm323_vm3, %v2934_v23 }
  0x2c   :  { %417 = vmatprep.mubr.bf16.mxu1 %v3256_v5  ;;  %2796 = vmatpush3.bf16.msra.mxu1 %v2948_v41 }
  0x2d   :  { %2797 = vmatprep.subr.bf16.mxu1 %v4735_v0 }
  0x2e   :  { %2744 = vmatmul.mubr.msk.bf16.gmra.mxu0 %vm125_vm1, %v2919_v22  ;;  %v3569_v22 = vld [vmem:[%s4727_s5] ss:$0 sm:$0xff] }
  0x2f   :  { %2747 = vmatprep.mubr.msk.bf16.mxu0 %vm3255_vm2, %v4735_v0 }
  0x30   :  { %2798 = vmatpush3.bf16.msra.mxu1 %v2949_v42 }
  0x31   :  { %2859 = vmatprep.subr.bf16.mxu1 %v4735_v0 }
  0x33   :  { %2533 = vmatmul.mubr.msk.bf16.gmra.mxu1 %vm323_vm3, %v2936_v26 }
  0x34   :  { %427 = vmatprep.mubr.bf16.mxu1 %v3256_v5 }
  0x36   :  { %2748 = vmatmul.mubr.msk.bf16.gmra.mxu0 %vm125_vm1, %v2926_v24 }
  0x37   :  { %2755 = vmatprep.mubr.msk.bf16.mxu0 %vm3255_vm2, %v4735_v0 }
  0x3b   :  { %2534 = vmatmul.mubr.msk.bf16.gmra.mxu1 %vm323_vm3, %v2938_v28 }
  0x3c   :  { %437 = vmatprep.mubr.bf16.mxu1 %v3256_v5 }
  0x3e   :  { %2756 = vmatmul.mubr.msk.bf16.vlgmr.msra.gmra.mxu0 %vm499_vm4, %v61_v25 }
  0x3f   :  { %2759 = vmatprep.mubr.msk.bf16.mxu0 %vm3255_vm2, %v4735_v0 }
  0x43   :  { %2535 = vmatmul.mubr.msk.bf16.gmra.mxu1 %vm323_vm3, %v2940_v30 }
  0x44   :  { %2799 = vmatprep.mubr.msk.bf16.mxu1 %vm3255_vm2, %v4735_v0 }
  0x46   :  { %2760 = vmatmul.mubr.msk.bf16.gmra.mxu0 %vm499_vm4, %v63_v27 }
  0x47   :  { %2763 = vmatprep.mubr.msk.bf16.mxu0 %vm3255_vm2, %v4735_v0 }
  0x4e   :  { %2764 = vmatmul.mubr.msk.bf16.gmra.mxu0 %vm499_vm4, %v65_v29 }
  0x4f   :  { %2767 = vmatprep.mubr.msk.bf16.mxu0 %vm3255_vm2, %v4735_v0 }
  0x56   :  { %2768 = vmatmul.mubr.msk.bf16.gmra.mxu0 %vm499_vm4, %v67_v31 }
  0x57   :  { %2771 = vmatprep.mubr.msk.bf16.mxu0 %vm3255_vm2, %v4735_v0 }
  0x5e   :  { %2772 = vmatmul.mubr.msk.bf16.gmra.mxu0 %vm499_vm4, %v69_v32 }
  0x5f   :  { %2775 = vmatprep.mubr.msk.bf16.mxu0 %vm3255_vm2, %v4735_v0 }
  0x66   :  { %2776 = vmatmul.mubr.msk.bf16.gmra.mxu0 %vm499_vm4, %v71_v33 }
  0x67   :  { %2779 = vmatprep.mubr.msk.bf16.mxu0 %vm3255_vm2, %v4735_v0 }
  0x6e   :  { %2780 = vmatmul.mubr.msk.bf16.gmra.mxu0 %vm499_vm4, %v73_v34 }
  0x6f   :  { %2831 = vmatprep.mubr.msk.bf16.mxu0 %vm3255_vm2, %v4735_v0 }
  0xc6   :  { %v3526_v43 = vpop.f32.mrf.mxu0 }
  0xc8   :  { %v2725_v44 = vpop.f32.mrf.mxu0 }
  0xca   :  { %v3528_v45 = vpop.f32.mrf.mxu0 }
  0xcc   :  { %v2726_v46 = vpop.f32.mrf.mxu0 }
  0xce   :  { %v3530_v47 = vpop.f32.mrf.mxu0 }
  0xd0   :  { %v2729_v48 = vpop.f32.mrf.mxu0 }
  0xd2   :  { %v3532_v49 = vpop.f32.mrf.mxu0 }
  0xd3   :  { %v379_v54 = vpop.f32.mrf.mxu1 }
  0xd4   :  { %v2730_v50 = vpop.f32.mrf.mxu0 }
  0xd5   :  { %v3538_v56 = vpop.f32.mrf.mxu1 }
  0xd6   :  { %v3534_v51 = vpop.f32.mrf.mxu0 }
  0xd7   :  { %v383_v58 = vpop.f32.mrf.mxu1 }
  0xd8   :  { %v2733_v52 = vpop.f32.mrf.mxu0 }
  0xd9   :  { %v3542_v60 = vpop.f32.mrf.mxu1 }
  0xda   :  { %v3536_v53 = vpop.f32.mrf.mxu0 }
  0xdb   :  { %v389_v62 = vpop.f32.mrf.mxu1 }
  0xdc   :  { %v2734_v55 = vpop.f32.mrf.mxu0 }
  0xdd   :  { %v3546_v1 = vpop.f32.mrf.mxu1 }
  0xde   :  { %v3540_v57 = vpop.f32.mrf.mxu0 }
  0xdf   :  { %v393_v3 = vpop.f32.mrf.mxu1 }
  0xe0   :  { %v2737_v59 = vpop.f32.mrf.mxu0 }
  0xe1   :  { %v3550_v5 = vpop.f32.mrf.mxu1 }
  0xe2   :  { %v3544_v61 = vpop.f32.mrf.mxu0 }
  0xe3   :  { %v399_v7 = vpop.f32.mrf.mxu1 }
  0xe4   :  { %v2738_v63 = vpop.f32.mrf.mxu0 }
  0xe5   :  { %v3556_v10 = vpop.f32.mrf.mxu1 }
  0xe6   :  { %v3548_v2 = vpop.f32.mrf.mxu0  ;;  %4737 = vst [vmem:[#allocation2_spill] sm:$0xff] %v3556_v10 }
  0xe7   :  { %v403_v13 = vpop.f32.mrf.mxu1 }
  0xe8   :  { %v2741_v4 = vpop.f32.mrf.mxu0 }
  0xe9   :  { %v3562_v16 = vpop.f32.mrf.mxu1 }
  0xea   :  { %v3552_v6 = vpop.f32.mrf.mxu0  ;;  %4738 = vst [vmem:[#allocation3_spill] sm:$0xff] %v3562_v16 }
  0xeb   :  { %v409_v19 = vpop.f32.mrf.mxu1 }
  0xec   :  { %v2742_v8 = vpop.f32.mrf.mxu0 }
  0xed   :  { %v3571_v23 = vpop.f32.mrf.mxu1 }
  0xee   :  { %v3554_v9 = vpop.f32.mrf.mxu0  ;;  %4739 = vst [vmem:[#allocation4_spill] sm:$0xff] %v3571_v23 }
  0xef   :  { %v413_v28 = vpop.f32.mrf.mxu1 }
  0xf0   :  { %v2745_v11 = vpop.f32.mrf.mxu0 }
  0xf1   :  { %v3580_v35 = vpop.f32.mrf.mxu1 }
  0xf2   :  { %v3558_v12 = vpop.f32.mrf.mxu0  ;;  %4740 = vst [vmem:[#allocation5_spill] sm:$0xff] %v3580_v35 }
  0xf3   :  { %v419_v44 = vpop.f32.mrf.mxu1 }
  0xf4   :  { %v2746_v14 = vpop.f32.mrf.mxu0 }
  0xf5   :  { %v3590_v59 = vpop.f32.mrf.mxu1 }
  0xf6   :  { %v3560_v15 = vpop.f32.mrf.mxu0  ;;  %4741 = vst [vmem:[#allocation6_spill] sm:$0xff] %v3590_v59 }
  0xf8   :  { %v2749_v17 = vpop.f32.mrf.mxu0 }
  0xf9   :  { %v423_v17 = vpop.f32.mrf.mxu1 }
  0xfa   :  { %v3564_v18 = vpop.f32.mrf.mxu0 }
  0xfc   :  { %v2750_v20 = vpop.f32.mrf.mxu0 }
  0xfe   :  { %v555_v21 = vpop.f32.mrf.mxu0 }
  0xff   :  { %v610_v24 = vadd.f32 %v555_v21, %v379_v54 }
 0x100   :  { %v2757_v25 = vpop.f32.mrf.mxu0 }
 0x101   :  { %v3574_v26 = vadd.f32 %v3569_v22, %v610_v24 }
 0x102   :  { %v558_v27 = vpop.f32.mrf.mxu0 }
 0x103   :  { %v659_v29 = vand.u32 2147483647, %v3574_v26  ;;  %v611_v30 = vadd.f32 %v558_v27, %v383_v58 }
 0x104   :  { %v2758_v31 = vpop.f32.mrf.mxu0 }
 0x105   :  { %v673_v32 = vsub.f32 0.0, %v659_v29  ;;  %v3578_v33 = vadd.f32 %v3569_v22, %v611_v30  ;;  %v3602_v31 = vpop.f32.mrf.mxu1 }
 0x106   :  { %v563_v34 = vpop.f32.mrf.mxu0  ;;  %4742 = vst [vmem:[#allocation7_spill] sm:$0xff] %v3602_v31 }
 0x107   :  { %v687_v36 = vmul.f32 1.442695, %v673_v32  ;;  %v660_v37 = vand.u32 2147483647, %v3578_v33  ;;  %v612_v38 = vadd.f32 %v563_v34, %v389_v62 }
 0x108   :  { %v2761_v39 = vpop.f32.mrf.mxu0 }
 0x109   :  { %2967 = vpow2.f32 %v687_v36  ;;  %v674_v40 = vsub.f32 0.0, %v660_v37  ;;  %v3584_v41 = vadd.f32 %v3569_v22, %v612_v38 }
 0x10a   :  { %v566_v42 = vpop.f32.mrf.mxu0 }
 0x10b   :  { %v689_v46 = vmul.f32 1.442695, %v674_v40  ;;  %v661_v48 = vand.u32 2147483647, %v3584_v41  ;;  %v613_v50 = vadd.f32 %v566_v42, %v393_v3 }
 0x10c   :  { %v2762_v52 = vpop.f32.mrf.mxu0 }
 0x10d   :  { %2969 = vpow2.f32 %v689_v46  ;;  %v675_v54 = vsub.f32 0.0, %v661_v48  ;;  %v3588_v55 = vadd.f32 %v3569_v22, %v613_v50  ;;  %v429_v46 = vpop.f32.mrf.mxu1 }
 0x10e   :  { %v571_v58 = vpop.f32.mrf.mxu0 }
 0x10f   :  { %v691_v62 = vmul.f32 1.442695, %v675_v54  ;;  %v662_v63 = vand.u32 2147483647, %v3588_v55  ;;  %v614_v4 = vadd.f32 %v571_v58, %v399_v7 }
 0x110   :  { %v2765_v8 = vpop.f32.mrf.mxu0 }
 0x111   :  { %2971 = vpow2.f32 %v691_v62  ;;  %v676_v11 = vsub.f32 0.0, %v662_v63  ;;  %v3594_v14 = vadd.f32 %v3569_v22, %v614_v4 }
 0x112   :  { %v574_v3 = vpop.f32.mrf.mxu0 }
 0x113   :  { %v693_v20 = vmul.f32 1.442695, %v676_v11  ;;  %v663_v21 = vand.u32 2147483647, %v3594_v14  ;;  %v615_v24 = vadd.f32 %v574_v3, %v403_v13  ;;  %v3619_v11 = vpop.f32.mrf.mxu1 }
 0x114   :  { %v2766_v25 = vpop.f32.mrf.mxu0  ;;  %4743 = vst [vmem:[#allocation8_spill] sm:$0xff] %v3619_v11 }
 0x115   :  { %2973 = vpow2.f32 %v693_v20  ;;  %v677_v27 = vsub.f32 0.0, %v663_v21  ;;  %v3598_v29 = vadd.f32 %v3569_v22, %v615_v24 }
 0x116   :  { %v3600_v30 = vpop.eup %2967  ;;  %v579_v7 = vpop.f32.mrf.mxu0 }
 0x117   :  { %v715_v32 = vadd.f32 1.0, %v3600_v30  ;;  %v695_v34 = vmul.f32 1.442695, %v677_v27  ;;  %v664_v36 = vand.u32 2147483647, %v3598_v29  ;;  %v616_v37 = vadd.f32 %v579_v7, %v409_v19 }
 0x118   :  { %v2769_v38 = vpop.f32.mrf.mxu0  ;;  %v718_v62 = vmul.f32 -0.5, %v3600_v30 }
 0x119   :  { %2975 = vlog2.f32 %v715_v32  ;;  %v678_v39 = vsub.f32 0.0, %v664_v36  ;;  %v3609_v40 = vadd.f32 %v3569_v22, %v616_v37  ;;  %v433_v37 = vpop.f32.mrf.mxu1 }
 0x11a   :  { %v3606_v13 = vpop.eup %2969  ;;  %2977 = vpow2.f32 %v695_v34  ;;  %v582_v42 = vpop.f32.mrf.mxu0  ;;  %v719_v7 = vadd.f32 1.0, %v718_v62 }
 0x11b   :  { %v724_v48 = vadd.f32 1.0, %v3606_v13  ;;  %v697_v50 = vmul.f32 1.442695, %v678_v39  ;;  %v665_v52 = vand.u32 2147483647, %v3609_v40  ;;  %v617_v54 = vadd.f32 %v582_v42, %v413_v28 }
 0x11c   :  { %v2770_v58 = vpop.f32.mrf.mxu0  ;;  %v727_v32 = vmul.f32 -0.5, %v3606_v13  ;;  %v721_v39 = vand.u32 2147483647, %v3600_v30 }
 0x11d   :  { %2979 = vlog2.f32 %v724_v48  ;;  %v679_v63 = vsub.f32 0.0, %v665_v52  ;;  %v3617_v4 = vadd.f32 %v3569_v22, %v617_v54 }
 0x11e   :  { %v3613_v19 = vpop.eup %2971  ;;  %2981 = vpow2.f32 %v697_v50  ;;  %v587_v8 = vpop.f32.mrf.mxu0  ;;  %vm3643_vm5 = vcmp.lt.f32.partialorder %v721_v39, 0.0004427343 }
 0x11f   :  { %v618_v3 = vadd.f32 %v587_v8, %v419_v44  ;;  %v733_v20 = vadd.f32 1.0, %v3613_v19  ;;  %v699_v21 = vmul.f32 1.442695, %v679_v63  ;;  %v666_v28 = vand.u32 2147483647, %v3617_v4 }
 0x120   :  { %v2773_v24 = vpop.f32.mrf.mxu0  ;;  %v736_v58 = vmul.f32 -0.5, %v3613_v19  ;;  %v720_v63 = vmul.f32 %v3600_v30, %v719_v7  ;;  %v728_v8 = vadd.f32 1.0, %v727_v32 }
 0x121   :  { %v3624_v25 = vadd.f32 %v3569_v22, %v618_v3  ;;  %2983 = vlog2.f32 %v733_v20  ;;  %v680_v34 = vsub.f32 0.0, %v666_v28  ;;  %v730_v3 = vand.u32 2147483647, %v3606_v13 }
 0x122   :  { %v3626_v27 = vpop.eup %2973  ;;  %2985 = vpow2.f32 %v699_v21  ;;  %v590_v36 = vpop.f32.mrf.mxu0  ;;  %v729_v39 = vmul.f32 %v3606_v13, %v728_v8 }
 0x123   :  { %v667_v44 = vand.u32 2147483647, %v3624_v25  ;;  %v619_v38 = vadd.f32 %v590_v36, %v423_v17  ;;  %v701_v42 = vmul.f32 1.442695, %v680_v34  ;;  %v742_v50 = vadd.f32 1.0, %v3626_v27  ;;  %v3638_v17 = vpop.f32.mrf.mxu1 }
 0x124   :  { %v2774_v48 = vpop.f32.mrf.mxu0  ;;  %4744 = vst [vmem:[#allocation9_spill] sm:$0xff] %v3638_v17  ;;  %v645_v36 = vmax.f32 %v3574_v26, 0.0  ;;  %v646_v26 = vmax.f32 %v3578_v33, 0.0  ;;  %vm3656_vm6 = vcmp.lt.f32.partialorder %v730_v3, 0.0004427343 }
 0x125   :  { %v681_v52 = vsub.f32 0.0, %v667_v44  ;;  %v3633_v54 = vadd.f32 %v3569_v22, %v619_v38  ;;  %2987 = vpow2.f32 %v701_v42  ;;  %v737_v48 = vadd.f32 1.0, %v736_v58 }
 0x126   :  { %v2976_v62 = vpop.eup %2975  ;;  %v595_v20 = vpop.f32.mrf.mxu0  ;;  %2989 = vlog2.f32 %v742_v50  ;;  %v739_v33 = vand.u32 2147483647, %v3613_v19 }
 0x127   :  { %v3640_v21 = vpop.eup %2977  ;;  %v717_v28 = vmul.f32 0.6931472, %v2976_v62  ;;  %v703_v24 = vmul.f32 1.442695, %v681_v52  ;;  %v620_v34 = vadd.f32 %v595_v20, %v429_v46  ;;  %v668_v30 = vand.u32 2147483647, %v3633_v54  ;;  %v439_v50 = vpop.f32.mrf.mxu1 }
 0x128   :  { %v2777_v7 = vpop.f32.mrf.mxu0  ;;  %v751_v42 = vadd.f32 1.0, %v3640_v21  ;;  %vm3681_vm7 = vcmp.lt.f32.partialorder %v739_v33, 0.0004427343  ;;  %v647_v33 = vmax.f32 %v3584_v41, 0.0 }
 0x129   :  { %v723_v32 = vsel %vm3643_vm5, %v720_v63, %v717_v28  ;;  %v3651_v38 = vadd.f32 %v3569_v22, %v620_v34  ;;  %v682_v62 = vsub.f32 0.0, %v668_v30  ;;  %2991 = vpow2.f32 %v703_v24  ;;  %v3670_v17 = vpop.f32.mrf.mxu1 }
 0x12a   :  { %v2980_v46 = vpop.eup %2979  ;;  %v598_v20 = vpop.f32.mrf.mxu0  ;;  %v841_v34 = vadd.f32 %v723_v32, %v645_v36  ;;  %2993 = vlog2.f32 %v751_v42  ;;  %v738_v30 = vmul.f32 %v3613_v19, %v737_v48  ;;  %4749 = vst [vmem:[#allocation10_spill] sm:$0xff] %v3670_v17 }
 0x12b   :  { %v3660_v44 = vpop.eup %2981  ;;  %v726_v63 = vmul.f32 0.6931472, %v2980_v46  ;;  %v669_v58 = vand.u32 2147483647, %v3651_v38  ;;  %v621_v28 = vadd.f32 %v598_v20, %v433_v37  ;;  %v705_v7 = vmul.f32 1.442695, %v682_v62 }
 0x12c   :  { %v2778_v0 = vpop.f32.mrf.mxu0  ;;  %v760_v36 = vadd.f32 1.0, %v3660_v44  ;;  %v754_v62 = vmul.f32 -0.5, %v3640_v21  ;;  %v2553_v20 = vadd.f32 -0.6931472, %v841_v34 }
 0x12d   :  { %v732_v13 = vsel %vm3656_vm6, %v729_v39, %v726_v63  ;;  %v683_v8 = vsub.f32 0.0, %v669_v58  ;;  %v3667_v3 = vadd.f32 %v3569_v22, %v621_v28  ;;  %2995 = vpow2.f32 %v705_v7 }
 0x12e   :  { %v2984_v46 = vpop.eup %2983  ;;  %v842_v24 = vadd.f32 %v732_v13, %v646_v26  ;;  %v603_v37 = vpop.f32.mrf.mxu0  ;;  %v745_v0 = vmul.f32 -0.5, %v3626_v27  ;;  %2997 = vlog2.f32 %v760_v36  ;;  %v4752_v28 = vmov 0.0  }
 0x12f   :  { %v3674_v32 = vpop.eup %2985  ;;  %v707_v42 = vmul.f32 1.442695, %v683_v8  ;;  %v670_v39 = vand.u32 2147483647, %v3667_v3  ;;  %v622_v52 = vadd.f32 %v603_v37, %v439_v50  ;;  %v735_v26 = vmul.f32 0.6931472, %v2984_v46  ;;  %v443_v13 = vpop.f32.mrf.mxu1 }
 0x130   :  { %v2554_v19 = vadd.f32 -0.6931472, %v842_v24  ;;  %v2781_v48 = vpop.f32.mrf.mxu0  ;;  %v746_v50 = vadd.f32 1.0, %v745_v0  ;;  %v748_v37 = vand.u32 2147483647, %v3626_v27  ;;  %v769_v34 = vadd.f32 1.0, %v3674_v32 }
 0x131   :  { %2999 = vpow2.f32 %v707_v42  ;;  %v684_v63 = vsub.f32 0.0, %v670_v39  ;;  %v3679_v58 = vadd.f32 %v3569_v22, %v622_v52  ;;  %v741_v42 = vsel %vm3681_vm7, %v738_v30, %v735_v26 }
 0x132   :  { %v869_v7 = vpack.c.bf16 %v2554_v19, %v2553_v20  ;;  %v606_v8 = vpop.f32.mrf.mxu0  ;;  %v3690_v39 = vpop.eup %2987  ;;  %v755_v20 = vadd.f32 1.0, %v754_v62  ;;  %v757_v0 = vand.u32 2147483647, %v3640_v21  ;;  %3001 = vlog2.f32 %v769_v34 }
 0x133   :  { %v709_v24 = vmul.f32 1.442695, %v684_v63  ;;  %v671_v46 = vand.u32 2147483647, %v3679_v58  ;;  %v623_v36 = vadd.f32 %v606_v8, %v443_v13  ;;  %v2990_v19 = vpop.eup %2989  ;;  %v648_v48 = vmax.f32 %v3588_v55, 0.0 }
 0x134   :  { %v2782_v52 = vpop.f32.mrf.mxu0  ;;  %2800 = vmatmul.mubr.bf16.vlgmr.msra.gmra.mxu1 %v869_v7  ;;  %v744_v30 = vmul.f32 0.6931472, %v2990_v19  ;;  %v747_v41 = vmul.f32 %v3626_v27, %v746_v50  ;;  %v843_v26 = vadd.f32 %v741_v42, %v647_v33  ;;  %v763_v62 = vmul.f32 -0.5, %v3660_v44 }
 0x135   :  { %3003 = vpow2.f32 %v709_v24  ;;  %v685_v63 = vsub.f32 0.0, %v671_v46  ;;  %v3696_v13 = vadd.f32 %v3569_v22, %v623_v36  ;;  %2803 = vmatprep.mubr.msk.bf16.mxu1 %vm3255_vm2, %v4752_v28  ;;  %vm749_vm8 = vcmp.lt.f32.partialorder %v748_v37, 0.0004427343 }
 0x136   :  { %v3703_v34 = vpop.eup %2991  ;;  %v750_v55 = vsel %vm749_vm8, %v747_v41, %v744_v30  ;;  %v756_v24 = vmul.f32 %v3640_v21, %v755_v20  ;;  %vm3706_vm9 = vcmp.lt.f32.partialorder %v757_v0, 0.0004427343  ;;  %v778_v46 = vadd.f32 1.0, %v3690_v39 }
 0x137   :  { %v711_v7 = vmul.f32 1.442695, %v685_v63  ;;  %v672_v8 = vand.u32 2147483647, %v3696_v13  ;;  %v2994_v36 = vpop.eup %2993  ;;  %v844_v50 = vadd.f32 %v750_v55, %v648_v48  ;;  %v766_v42 = vand.u32 2147483647, %v3660_v44 }
 0x138   :  { %v2555_v33 = vadd.f32 -0.6931472, %v843_v26  ;;  %v753_v52 = vmul.f32 0.6931472, %v2994_v36  ;;  %v764_v37 = vadd.f32 1.0, %v763_v62  ;;  %v772_v20 = vmul.f32 -0.5, %v3674_v32 }
 0x139   :  { %3005 = vpow2.f32 %v711_v7  ;;  %v686_v27 = vsub.f32 0.0, %v672_v8  ;;  %v2556_v21 = vadd.f32 -0.6931472, %v844_v50  ;;  %v787_v0 = vadd.f32 1.0, %v3703_v34 }
 0x13a   :  { %3007 = vlog2.f32 %v778_v46  ;;  %v3712_v19 = vpop.eup %2995  ;;  %v759_v30 = vsel %vm3706_vm9, %v756_v24, %v753_v52  ;;  %v649_v48 = vmax.f32 %v3594_v14, 0.0  ;;  %v765_v8 = vmul.f32 %v3660_v44, %v764_v37 }
 0x13b   :  { %v713_v63 = vmul.f32 1.442695, %v686_v27  ;;  %v2998_v41 = vpop.eup %2997  ;;  %v870_v7 = vpack.c.bf16 %v2556_v21, %v2555_v33  ;;  %v796_v55 = vadd.f32 1.0, %v3712_v19  ;;  %v650_v46 = vmax.f32 %v3598_v29, 0.0 }
 0x13c   :  { %v762_v62 = vmul.f32 0.6931472, %v2998_v41  ;;  %vm767_vm10 = vcmp.lt.f32.partialorder %v766_v42, 0.0004427343  ;;  %v845_v36 = vadd.f32 %v759_v30, %v649_v48  ;;  %v773_v22 = vadd.f32 1.0, %v772_v20 }
 0x13d   :  { %3009 = vpow2.f32 %v713_v63  ;;  %2804 = vmatmul.mubr.bf16.gmra.mxu1 %v870_v7  ;;  %v781_v24 = vmul.f32 -0.5, %v3690_v39  ;;  %v775_v33 = vand.u32 2147483647, %v3674_v32  ;;  %v784_v48 = vand.u32 2147483647, %v3690_v39 }
 0x13e   :  { %v3719_v26 = vpop.eup %2999  ;;  %3011 = vlog2.f32 %v787_v0  ;;  %2807 = vmatprep.mubr.msk.bf16.mxu1 %vm3255_vm2, %v4752_v28  ;;  %v768_v14 = vsel %vm767_vm10, %v765_v8, %v762_v62  ;;  %v2557_v42 = vadd.f32 -0.6931472, %v845_v36  ;;  %v774_v21 = vmul.f32 %v3674_v32, %v773_v22 }
 0x13f   :  { %3013 = vlog2.f32 %v796_v55  ;;  %v805_v27 = vadd.f32 1.0, %v3719_v26  ;;  %v3002_v50 = vpop.eup %3001  ;;  %v846_v44 = vadd.f32 %v768_v14, %v650_v46  ;;  %v782_v20 = vadd.f32 1.0, %v781_v24 }
 0x140   :  { %v771_v29 = vmul.f32 0.6931472, %v3002_v50  ;;  %v790_v0 = vmul.f32 -0.5, %v3703_v34  ;;  %vm3734_vm11 = vcmp.lt.f32.partialorder %v775_v33, 0.0004427343  ;;  %v799_v8 = vmul.f32 -0.5, %v3712_v19 }
 0x141   :  { %3015 = vlog2.f32 %v805_v27  ;;  %v2558_v37 = vadd.f32 -0.6931472, %v846_v44  ;;  %v651_v32 = vmax.f32 %v3609_v40, 0.0  ;;  %v783_v22 = vmul.f32 %v3690_v39, %v782_v20 }
 0x142   :  { %v3729_v52 = vpop.eup %3003  ;;  %v777_v62 = vsel %vm3734_vm11, %v774_v21, %v771_v29  ;;  %v791_v14 = vadd.f32 1.0, %v790_v0  ;;  %v793_v24 = vand.u32 2147483647, %v3703_v34  ;;  %v652_v27 = vmax.f32 %v3617_v4, 0.0 }
 0x143   :  { %v814_v63 = vadd.f32 1.0, %v3729_v52  ;;  %v871_v30 = vpack.c.bf16 %v2558_v37, %v2557_v42  ;;  %vm785_vm12 = vcmp.lt.f32.partialorder %v784_v48, 0.0004427343  ;;  %v847_v50 = vadd.f32 %v777_v62, %v651_v32 }
 0x144   :  { %v653_v40 = vmax.f32 %v3624_v25, 0.0  ;;  %v800_v29 = vadd.f32 1.0, %v799_v8  ;;  %v808_v42 = vmul.f32 -0.5, %v3719_v26  ;;  %v802_v39 = vand.u32 2147483647, %v3712_v19 }
 0x145   :  { %3017 = vlog2.f32 %v814_v63  ;;  %2808 = vmatmul.mubr.bf16.gmra.mxu1 %v871_v30  ;;  %v817_v21 = vmul.f32 -0.5, %v3729_v52  ;;  %v654_v4 = vmax.f32 %v3633_v54, 0.0  ;;  %v792_v30 = vmul.f32 %v3703_v34, %v791_v14 }
 0x146   :  { %v3739_v7 = vpop.eup %3005  ;;  %2811 = vmatprep.mubr.msk.bf16.mxu1 %vm3255_vm2, %v4752_v28  ;;  %vm794_vm13 = vcmp.lt.f32.partialorder %v793_v24, 0.0004427343  ;;  %v2559_v25 = vadd.f32 -0.6931472, %v847_v50  ;;  %v811_v62 = vand.u32 2147483647, %v3719_v26  ;;  %v801_v32 = vmul.f32 %v3712_v19, %v800_v29 }
 0x147   :  { %v3008_v55 = vpop.eup %3007  ;;  %v823_v46 = vadd.f32 1.0, %v3739_v7  ;;  %vm803_vm14 = vcmp.lt.f32.partialorder %v802_v39, 0.0004427343  ;;  %v818_v54 = vadd.f32 1.0, %v817_v21  ;;  %v820_v34 = vand.u32 2147483647, %v3729_v52 }
 0x148   :  { %v780_v36 = vmul.f32 0.6931472, %v3008_v55  ;;  %vm3766_vm15 = vcmp.lt.f32.partialorder %v811_v62, 0.0004427343  ;;  %v826_v29 = vmul.f32 -0.5, %v3739_v7 }
 0x149   :  { %3019 = vlog2.f32 %v823_v46  ;;  %v809_v46 = vadd.f32 1.0, %v808_v42  ;;  %v819_v21 = vmul.f32 %v3729_v52, %v818_v54  ;;  %vm821_vm0 = vcmp.lt.f32.partialorder %v820_v34, 0.0004427343 }
 0x14a   :  { %v3751_v44 = vpop.eup %3009  ;;  %v786_v33 = vsel %vm785_vm12, %v783_v22, %v780_v36  ;;  %v658_v54 = vmax.f32 %v3696_v13, 0.0  ;;  %v2950_v13 = vld [vmem:[%s4728_s8 + $0x8] sm:$0xff]  }
 0x14b   :  { %v3012_v37 = vpop.eup %3011  ;;  %v848_v63 = vadd.f32 %v786_v33, %v652_v27  ;;  %v832_v20 = vadd.f32 1.0, %v3751_v44  ;;  %v810_v50 = vmul.f32 %v3719_v26, %v809_v46  ;;  %v655_v26 = vmax.f32 %v3651_v38, 0.0  ;;  %2828 = vmatpush3.bf16.msra.mxu0 %v2950_v13 }
 0x14c   :  { %v789_v0 = vmul.f32 0.6931472, %v3012_v37  ;;  %v3014_v41 = vpop.eup %3013  ;;  %v838_v52 = vand.u32 2147483647, %v3751_v44  ;;  %2829 = vmatprep.subr.bf16.mxu0 %v4752_v28 }
 0x14d   :  { %v2560_v48 = vadd.f32 -0.6931472, %v848_v63  ;;  %3021 = vlog2.f32 %v832_v20  ;;  %v798_v55 = vmul.f32 0.6931472, %v3014_v41  ;;  %v656_v20 = vmax.f32 %v3667_v3, 0.0 }
 0x14e   :  { %v795_v8 = vsel %vm794_vm13, %v792_v30, %v789_v0  ;;  %v3016_v36 = vpop.eup %3015  ;;  %vm839_vm3 = vcmp.lt.f32.partialorder %v838_v52, 0.0004427343 }
 0x14f   :  { %v872_v22 = vpack.c.bf16 %v2560_v48, %v2559_v25  ;;  %v849_v27 = vadd.f32 %v795_v8, %v653_v40  ;;  %v804_v33 = vsel %vm803_vm14, %v801_v32, %v798_v55  ;;  %v807_v37 = vmul.f32 0.6931472, %v3016_v36 }
 0x150   :  { %v850_v14 = vadd.f32 %v804_v33, %v654_v4  ;;  %v835_v40 = vmul.f32 -0.5, %v3751_v44  ;;  %v827_v48 = vadd.f32 1.0, %v826_v29  ;;  %v829_v8 = vand.u32 2147483647, %v3739_v7 }
 0x151   :  { %2812 = vmatmul.mubr.bf16.gmra.mxu1 %v872_v22  ;;  %v2561_v42 = vadd.f32 -0.6931472, %v849_v27  ;;  %v813_v4 = vsel %vm3766_vm15, %v810_v50, %v807_v37  ;;  %v657_v37 = vmax.f32 %v3679_v58, 0.0  ;;  %v2951_v58 = vld [vmem:[%s4728_s8] sm:$0xff]  }
 0x152   :  { %v3018_v24 = vpop.eup %3017  ;;  %2815 = vmatprep.mubr.msk.bf16.mxu1 %vm3255_vm2, %v4752_v28  ;;  %v2562_v63 = vadd.f32 -0.6931472, %v850_v14  ;;  %v851_v62 = vadd.f32 %v813_v4, %v655_v26  ;;  %v836_v55 = vadd.f32 1.0, %v835_v40  ;;  %v828_v38 = vmul.f32 %v3739_v7, %v827_v48  ;;  %2830 = vmatpush3.bf16.msra.mxu0 %v2951_v58  ;;  %v3801_v40 = vld [vmem:[%s4729_s7] ss:$0 sm:$0xff]  ;;  %s3257_s7 = smov 96  }
 0x153   :  { %v816_v39 = vmul.f32 0.6931472, %v3018_v24  ;;  %vm830_vm1 = vcmp.lt.f32.partialorder %v829_v8, 0.0004427343 }
 0x154   :  { %v873_v0 = vpack.c.bf16 %v2562_v63, %v2561_v42  ;;  %v2563_v36 = vadd.f32 -0.6931472, %v851_v62  ;;  %v837_v27 = vmul.f32 %v3751_v44, %v836_v55  ;;  %v3796_v44 = vpop.f32.mrf.mxu1 }
 0x155   :  { %v822_v30 = vsel %vm821_vm0, %v819_v21, %v816_v39  ;;  %4759 = vst [vmem:[#allocation11_spill] sm:$0xff] %v3796_v44 }
 0x156   :  { %v3020_v41 = vpop.eup %3019  ;;  %v852_v25 = vadd.f32 %v822_v30, %v656_v20 }
 0x157   :  { %v825_v32 = vmul.f32 0.6931472, %v3020_v41 }
 0x158   :  { %v2564_v3 = vadd.f32 -0.6931472, %v852_v25 }
 0x159   :  { %2816 = vmatmul.mubr.bf16.gmra.mxu1 %v873_v0  ;;  %v831_v33 = vsel %vm830_vm1, %v828_v38, %v825_v32 }
 0x15a   :  { %v3022_v46 = vpop.eup %3021  ;;  %2819 = vmatprep.mubr.msk.bf16.mxu1 %vm3255_vm2, %v4752_v28  ;;  %v874_v34 = vpack.c.bf16 %v2564_v3, %v2563_v36  ;;  %v853_v50 = vadd.f32 %v831_v33, %v657_v37 }
 0x15b   :  { %v834_v22 = vmul.f32 0.6931472, %v3022_v46 }
 0x15c   :  { %v2565_v7 = vadd.f32 -0.6931472, %v853_v50 }
 0x15d   :  { %v840_v14 = vsel %vm839_vm3, %v837_v27, %v834_v22 }
 0x15e   :  { %v854_v24 = vadd.f32 %v840_v14, %v658_v54 }
 0x160   :  { %v2566_v19 = vadd.f32 -0.6931472, %v854_v24 }
 0x161   :  { %2820 = vmatmul.mubr.bf16.gmra.mxu1 %v874_v34 }
 0x162   :  { %2823 = vmatprep.mubr.msk.bf16.mxu1 %vm3255_vm2, %v4752_v28  ;;  %v875_v29 = vpack.c.bf16 %v2566_v19, %v2565_v7 }
 0x169   :  { %2824 = vmatmul.mubr.bf16.gmra.mxu1 %v875_v29 }
 0x16a   :  { %2875 = vmatprep.mubr.msk.bf16.mxu1 %vm3255_vm2, %v4752_v28 }
 0x1f4   :  { %v981_v42 = vpop.f32.mrf.mxu1 }
 0x1f5   :  { %v3804_v63 = vadd.f32 %v3801_v40, %v981_v42 }
 0x1f6   :  { %v2801_v39 = vpop.f32.mrf.mxu1 }
 0x1f7   :  { %v1274_v21 = vmul.f32 0.5, %v3804_v63  ;;  %v1050_v31 = vmax.f32 %v3804_v63, 0.0 }
 0x1f8   :  { %v984_v20 = vpop.f32.mrf.mxu1 }
 0x1f9   :  { %v3808_v4 = vadd.f32 %v3801_v40, %v984_v20  ;;  %3023 = vtanh.f32 %v1274_v21 }
 0x1fa   :  { %v2802_v26 = vpop.f32.mrf.mxu1 }
 0x1fb   :  { %v1275_v0 = vmul.f32 0.5, %v3808_v4 }
 0x1fd   :  { %3025 = vtanh.f32 %v1275_v0  ;;  %v989_v30 = vpop.f32.mrf.mxu1 }
 0x1fe   :  { %v3812_v41 = vadd.f32 %v3801_v40, %v989_v30 }
 0x1ff   :  { %v2805_v25 = vpop.f32.mrf.mxu1 }
 0x200   :  { %v1276_v48 = vmul.f32 0.5, %v3812_v41  ;;  %v1052_v23 = vmax.f32 %v3812_v41, 0.0 }
 0x201   :  { %v992_v62 = vpop.f32.mrf.mxu1 }
 0x202   :  { %v3816_v8 = vadd.f32 %v3801_v40, %v992_v62  ;;  %3027 = vtanh.f32 %v1276_v48 }
 0x203   :  { %v2806_v55 = vpop.f32.mrf.mxu1 }
 0x204   :  { %v1277_v52 = vmul.f32 0.5, %v3816_v8 }
 0x205   :  { %v997_v3 = vpop.f32.mrf.mxu1 }
 0x206   :  { %v3024_v32 = vpop.eup %3023  ;;  %v3820_v38 = vadd.f32 %v3801_v40, %v997_v3  ;;  %3029 = vtanh.f32 %v1277_v52 }
 0x207   :  { %v1302_v46 = vmul.f32 0.5, %v3024_v32  ;;  %v2809_v36 = vpop.f32.mrf.mxu1 }
 0x208   :  { %v1278_v27 = vmul.f32 0.5, %v3820_v38 }
 0x209   :  { %v1316_v22 = vadd.f32 0.5, %v1302_v46  ;;  %v1000_v33 = vpop.f32.mrf.mxu1 }
 0x20a   :  { %v3026_v54 = vpop.eup %3025  ;;  %v3825_v37 = vadd.f32 %v3801_v40, %v1000_v33  ;;  %3031 = vtanh.f32 %v1278_v27 }
 0x20b   :  { %1344 = vrot.lane.b32.xlu0 %v1316_v22, %s3257_s7  ;;  %v1303_v34 = vmul.f32 0.5, %v3026_v54  ;;  %v2810_v14 = vpop.f32.mrf.mxu1 }
 0x20c   :  { %v1279_v24 = vmul.f32 0.5, %v3825_v37 }
 0x20d   :  { %v1317_v50 = vadd.f32 0.5, %v1303_v34 }
 0x20e   :  { %3033 = vtanh.f32 %v1279_v24 }
 0x20f   :  { %1346 = vrot.lane.b32.xlu0 %v1317_v50, %s3257_s7  ;;  %v3028_v19 = vpop.eup %3027 }
 0x210   :  { %v1304_v13 = vmul.f32 0.5, %v3028_v19 }
 0x211   :  { %v1005_v7 = vpop.f32.mrf.mxu1 }
 0x212   :  { %v3830_v29 = vadd.f32 %v3801_v40, %v1005_v7  ;;  %v1318_v39 = vadd.f32 0.5, %v1304_v13 }
 0x213   :  { %v2813_v58 = vpop.f32.mrf.mxu1  ;;  %v3030_v20 = vpop.eup %3029 }
 0x214   :  { %v1280_v42 = vmul.f32 0.5, %v3830_v29  ;;  %1348 = vrot.lane.b32.xlu1 %v1318_v39, %s3257_s7  ;;  %v1305_v30 = vmul.f32 0.5, %v3030_v20 }
 0x215   :  { %v1008_v21 = vpop.f32.mrf.mxu1 }
 0x216   :  { %3035 = vtanh.f32 %v1280_v42  ;;  %v3834_v26 = vadd.f32 %v3801_v40, %v1008_v21  ;;  %v1319_v62 = vadd.f32 0.5, %v1305_v30 }
 0x217   :  { %v2814_v0 = vpop.f32.mrf.mxu1  ;;  %v3032_v55 = vpop.eup %3031 }
 0x218   :  { %v1281_v25 = vmul.f32 0.5, %v3834_v26  ;;  %1350 = vrot.lane.b32.xlu1 %v1319_v62, %s3257_s7  ;;  %v1306_v3 = vmul.f32 0.5, %v3032_v55 }
 0x219   :  { %v1013_v48 = vpop.f32.mrf.mxu1 }
 0x21a   :  { %v3839_v32 = vadd.f32 %v3801_v40, %v1013_v48  ;;  %3037 = vtanh.f32 %v1281_v25  ;;  %v1320_v22 = vadd.f32 0.5, %v1306_v3 }
 0x21b   :  { %v2817_v52 = vpop.f32.mrf.mxu1  ;;  %v3034_v27 = vpop.eup %3033 }
 0x21c   :  { %v1282_v46 = vmul.f32 0.5, %v3839_v32  ;;  %1352 = vrot.lane.b32.xlu0 %v1320_v22, %s3257_s7  ;;  %v1307_v34 = vmul.f32 0.5, %v3034_v27 }
 0x21d   :  { %v1016_v36 = vpop.f32.mrf.mxu1 }
 0x21e   :  { %v3844_v54 = vadd.f32 %v3801_v40, %v1016_v36  ;;  %3039 = vtanh.f32 %v1282_v46  ;;  %v1321_v50 = vadd.f32 0.5, %v1307_v34 }
 0x21f   :  { %v2818_v33 = vpop.f32.mrf.mxu1 }
 0x220   :  { %v1283_v14 = vmul.f32 0.5, %v3844_v54  ;;  %1354 = vrot.lane.b32.xlu1 %v1321_v50, %s3257_s7 }
 0x221   :  { %v1021_v24 = vpop.f32.mrf.mxu1 }
 0x222   :  { %v3849_v19 = vadd.f32 %v3801_v40, %v1021_v24  ;;  %3041 = vtanh.f32 %v1283_v14 }
 0x223   :  { %v3036_v7 = vpop.eup %3035  ;;  %v2821_v13 = vpop.f32.mrf.mxu1 }
 0x224   :  { %v1284_v58 = vmul.f32 0.5, %v3849_v19  ;;  %v1308_v42 = vmul.f32 0.5, %v3036_v7 }
 0x225   :  { %v1024_v39 = vpop.f32.mrf.mxu1 }
 0x226   :  { %v3854_v21 = vadd.f32 %v3801_v40, %v1024_v39  ;;  %v1322_v20 = vadd.f32 0.5, %v1308_v42  ;;  %3043 = vtanh.f32 %v1284_v58 }
 0x227   :  { %v2822_v0 = vpop.f32.mrf.mxu1  ;;  %v3038_v30 = vpop.eup %3037 }
 0x228   :  { %v1285_v25 = vmul.f32 0.5, %v3854_v21  ;;  %1356 = vrot.lane.b32.xlu0 %v1322_v20, %s3257_s7  ;;  %v1309_v62 = vmul.f32 0.5, %v3038_v30 }
 0x229   :  { %v1029_v48 = vpop.f32.mrf.mxu1 }
 0x22a   :  { %v3859_v55 = vadd.f32 %v3801_v40, %v1029_v48  ;;  %3045 = vtanh.f32 %v1285_v25  ;;  %v1323_v3 = vadd.f32 0.5, %v1309_v62 }
 0x22b   :  { %v2825_v52 = vpop.f32.mrf.mxu1  ;;  %v3040_v46 = vpop.eup %3039 }
 0x22c   :  { %v1286_v36 = vmul.f32 0.5, %v3859_v55  ;;  %1358 = vrot.lane.b32.xlu1 %v1323_v3, %s3257_s7  ;;  %v1310_v27 = vmul.f32 0.5, %v3040_v46  ;;  %v1064_v52 = vand.u32 2147483647, %v3804_v63 }
 0x22d   :  { %v1032_v22 = vpop.f32.mrf.mxu1 }
 0x22e   :  { %v3864_v33 = vadd.f32 %v3801_v40, %v1032_v22  ;;  %3047 = vtanh.f32 %v1286_v36  ;;  %v1324_v14 = vadd.f32 0.5, %v1310_v27  ;;  %v1078_v36 = vsub.f32 0.0, %v1064_v52 }
 0x22f   :  { %v2826_v34 = vpop.f32.mrf.mxu1  ;;  %v3042_v24 = vpop.eup %3041  ;;  %v1065_v22 = vand.u32 2147483647, %v3808_v4  ;;  %v1070_v52 = vand.u32 2147483647, %v3830_v29 }
 0x230   :  { %v1287_v50 = vmul.f32 0.5, %v3864_v33  ;;  %1360 = vrot.lane.b32.xlu0 %v1324_v14, %s3257_s7  ;;  %v1311_v7 = vmul.f32 0.5, %v3042_v24  ;;  %v1092_v27 = vmul.f32 1.442695, %v1078_v36  ;;  %v1066_v14 = vand.u32 2147483647, %v3812_v41 }
 0x231   :  { %v1079_v34 = vsub.f32 0.0, %v1065_v22  ;;  %v1084_v36 = vsub.f32 0.0, %v1070_v52  ;;  %v1077_v63 = vand.u32 2147483647, %v3864_v33 }
 0x232   :  { %3049 = vtanh.f32 %v1287_v50  ;;  %v1325_v13 = vadd.f32 0.5, %v1311_v7  ;;  %v1080_v50 = vsub.f32 0.0, %v1066_v14  ;;  %v1067_v7 = vand.u32 2147483647, %v3816_v8 }
 0x233   :  { %v3044_v58 = vpop.eup %3043  ;;  %3051 = vpow2.f32 %v1092_v27  ;;  %v1094_v24 = vmul.f32 1.442695, %v1079_v34  ;;  %v1071_v27 = vand.u32 2147483647, %v3834_v26  ;;  %v1104_v14 = vmul.f32 1.442695, %v1084_v36 }
 0x234   :  { %1362 = vrot.lane.b32.xlu1 %v1325_v13, %s3257_s7  ;;  %v1312_v42 = vmul.f32 0.5, %v3044_v58  ;;  %v2952_v13 = vld [vmem:[%s4730_s10 + $0x38] sm:$0xff]   ;;  %v1096_v58 = vmul.f32 1.442695, %v1080_v50  ;;  %v1072_v50 = vand.u32 2147483647, %v3839_v32 }
 0x235   :  { %3053 = vpow2.f32 %v1094_v24  ;;  %2860 = vmatpush3.bf16.msra.mxu1 %v2952_v13  ;;  %v1085_v24 = vsub.f32 0.0, %v1071_v27 }
 0x236   :  { %v1326_v39 = vadd.f32 0.5, %v1312_v42  ;;  %v1081_v42 = vsub.f32 0.0, %v1067_v7  ;;  %2861 = vmatprep.subr.bf16.mxu1 %v4752_v28  ;;  %3055 = vpow2.f32 %v1096_v58 }
 0x237   :  { %v3046_v20 = vpop.eup %3045 }
 0x238   :  { %1364 = vrot.lane.b32.xlu0 %v1326_v39, %s3257_s7  ;;  %v1313_v40 = vmul.f32 0.5, %v3046_v20  ;;  %v1068_v39 = vand.u32 2147483647, %v3820_v38 }
 0x23a   :  { %v1327_v0 = vadd.f32 0.5, %v1313_v40  ;;  %v1098_v40 = vmul.f32 1.442695, %v1081_v42  ;;  %v1106_v42 = vmul.f32 1.442695, %v1085_v24 }
 0x23b   :  { %v3048_v30 = vpop.eup %3047 }
 0x23c   :  { %1366 = vrot.lane.b32.xlu1 %v1327_v0, %s3257_s7  ;;  %v1314_v25 = vmul.f32 0.5, %v3048_v30  ;;  %v1082_v0 = vsub.f32 0.0, %v1068_v39  ;;  %v1069_v30 = vand.u32 2147483647, %v3825_v37  ;;  %3057 = vpow2.f32 %v1098_v40 }
 0x23d   :  { %v1086_v39 = vsub.f32 0.0, %v1072_v50  ;;  %v1073_v40 = vand.u32 2147483647, %v3844_v54 }
 0x23e   :  { %v1328_v48 = vadd.f32 0.5, %v1314_v25 }
 0x23f   :  { %v3050_v62 = vpop.eup %3049  ;;  %v1087_v52 = vsub.f32 0.0, %v1073_v40 }
 0x240   :  { %1368 = vrot.lane.b32.xlu0 %v1328_v48, %s3257_s7  ;;  %v1315_v3 = vmul.f32 0.5, %v3050_v62  ;;  %v3052_v20 = vpop.eup %3051  ;;  %v1100_v48 = vmul.f32 1.442695, %v1082_v0  ;;  %v1083_v62 = vsub.f32 0.0, %v1069_v30 }
 0x241   :  { %v1120_v25 = vadd.f32 1.0, %v3052_v20  ;;  %v1123_v58 = vmul.f32 -0.5, %v3052_v20  ;;  %v1126_v36 = vand.u32 2147483647, %v3052_v20  ;;  %v1110_v44 = vmul.f32 1.442695, %v1087_v52 }
 0x242   :  { %v1329_v46 = vadd.f32 0.5, %v1315_v3  ;;  %v3054_v3 = vpop.eup %3053 }
 0x243   :  { %3059 = vlog2.f32 %v1120_v25  ;;  %v1129_v22 = vadd.f32 1.0, %v3054_v3  ;;  %v3909_v34 = vpop.eup %3055  ;;  %vm1127_vm5 = vcmp.lt.f32.partialorder %v1126_v36, 0.0004427343 }
 0x244   :  { %2365 = vrot.lane.b32.xlu0 %v3526_v43, %s3257_s7  ;;  %1370 = vrot.lane.b32.xlu1 %v1329_v46, %s3257_s7  ;;  %3061 = vpow2.f32 %v1100_v48  ;;  %v1102_v46 = vmul.f32 1.442695, %v1083_v62  ;;  %v1138_v7 = vadd.f32 1.0, %v3909_v34  ;;  %v1124_v48 = vadd.f32 1.0, %v1123_v58 }
 0x245   :  { %v1108_v62 = vmul.f32 1.442695, %v1086_v39  ;;  %v1075_v58 = vand.u32 2147483647, %v3854_v21  ;;  %v1135_v39 = vand.u32 2147483647, %v3054_v3 }
 0x246   :  { %3063 = vpow2.f32 %v1102_v46  ;;  %v1074_v46 = vand.u32 2147483647, %v3849_v19  ;;  %v1125_v50 = vmul.f32 %v3052_v20, %v1124_v48  ;;  %v1141_v11 = vmul.f32 -0.5, %v3909_v34 }
 0x247   :  { %3065 = vlog2.f32 %v1129_v22  ;;  %v1132_v22 = vmul.f32 -0.5, %v3054_v3  ;;  %v1089_v52 = vsub.f32 0.0, %v1075_v58  ;;  %vm3930_vm6 = vcmp.lt.f32.partialorder %v1135_v39, 0.0004427343 }
 0x248   :  { %2369 = vrot.lane.b32.xlu0 %v3530_v47, %s3257_s7  ;;  %2367 = vrot.lane.b32.xlu1 %v3528_v45, %s3257_s7  ;;  %3067 = vpow2.f32 %v1104_v14  ;;  %v1088_v17 = vsub.f32 0.0, %v1074_v46 }
 0x249   :  { %v3913_v13 = vpop.eup %3057  ;;  %3069 = vlog2.f32 %v1138_v7 }
 0x24a   :  { %v1147_v30 = vadd.f32 1.0, %v3913_v13  ;;  %3071 = vpow2.f32 %v1106_v42  ;;  %v1133_v42 = vadd.f32 1.0, %v1132_v22 }
 0x24c   :  { %2373 = vrot.lane.b32.xlu0 %v3534_v51, %s3257_s7  ;;  %2371 = vrot.lane.b32.xlu1 %v3532_v49, %s3257_s7  ;;  %3073 = vlog2.f32 %v1147_v30  ;;  %v1076_v30 = vand.u32 2147483647, %v3859_v55  ;;  %v1134_v36 = vmul.f32 %v3054_v3, %v1133_v42  ;;  %v1144_v3 = vand.u32 2147483647, %v3909_v34 }
 0x24d   :  { %3075 = vpow2.f32 %v1108_v62  ;;  %v1112_v62 = vmul.f32 1.442695, %v1088_v17 }
 0x24e   :  { %v1090_v59 = vsub.f32 0.0, %v1076_v30  ;;  %vm3949_vm7 = vcmp.lt.f32.partialorder %v1144_v3, 0.0004427343 }
 0x250   :  { %2377 = vrot.lane.b32.xlu0 %v3540_v57, %s3257_s7  ;;  %2375 = vrot.lane.b32.xlu1 %v3536_v53, %s3257_s7  ;;  %v3060_v0 = vpop.eup %3059 }
 0x251   :  { %v3917_v25 = vpop.eup %3061  ;;  %v1122_v27 = vmul.f32 0.6931472, %v3060_v0 }
 0x252   :  { %v1156_v14 = vadd.f32 1.0, %v3917_v25 }
 0x253   :  { %v3921_v24 = vpop.eup %3063  ;;  %v1128_v40 = vsel %vm1127_vm5, %v1125_v50, %v1122_v27  ;;  %v1150_v50 = vmul.f32 -0.5, %v3913_v13  ;;  %v1091_v27 = vsub.f32 0.0, %v1077_v63 }
 0x254   :  { %2381 = vrot.lane.b32.xlu0 %v3548_v2, %s3257_s7  ;;  %2379 = vrot.lane.b32.xlu1 %v3544_v61, %s3257_s7  ;;  %v3066_v7 = vpop.eup %3065  ;;  %3077 = vlog2.f32 %v1156_v14  ;;  %v1165_v0 = vadd.f32 1.0, %v3921_v24  ;;  %v1246_v46 = vadd.f32 %v1128_v40, %v1050_v31  ;;  %v1142_v14 = vadd.f32 1.0, %v1141_v11  ;;  %v3247_v11 = vld [vmem:[%s4725_s1] sm:$0xff]  }
 0x255   :  { %v1131_v20 = vmul.f32 0.6931472, %v3066_v7  ;;  %v3928_v48 = vpop.eup %3067  ;;  %3079 = vpow2.f32 %v1110_v44  ;;  %v1114_v31 = vmul.f32 1.442695, %v1089_v52  ;;  %v1051_v44 = vmax.f32 %v3808_v4, 0.0 }
 0x256   :  { %v3070_v22 = vpop.eup %3069  ;;  %3081 = vlog2.f32 %v1165_v0  ;;  %v1174_v17 = vadd.f32 1.0, %v3928_v48  ;;  %v1036_v42 = vunpack.c.l.bf16 %v3247_v11  ;;  %v2576_v39 = vadd.f32 -0.6931472, %v1246_v46 }
 0x257   :  { %v1137_v7 = vsel %vm3930_vm6, %v1134_v36, %v1131_v20  ;;  %3083 = vpow2.f32 %v1112_v62  ;;  %v3941_v58 = vpop.eup %3071  ;;  %v1140_v40 = vmul.f32 0.6931472, %v3070_v22  ;;  %v1143_v20 = vmul.f32 %v3909_v34, %v1142_v14 }
 0x258   :  { %2385 = vrot.lane.b32.xlu0 %v3554_v9, %s3257_s7  ;;  %2383 = vrot.lane.b32.xlu1 %v3552_v6, %s3257_s7  ;;  %v1247_v30 = vadd.f32 %v1137_v7, %v1051_v44  ;;  %v1151_v36 = vadd.f32 1.0, %v1150_v50  ;;  %v1159_v62 = vmul.f32 -0.5, %v3917_v25  ;;  %v1116_v4 = vmul.f32 1.442695, %v1090_v59 }
 0x259   :  { %v3074_v52 = vpop.eup %3073  ;;  %3085 = vlog2.f32 %v1174_v17  ;;  %v1183_v46 = vadd.f32 1.0, %v3941_v58  ;;  %v1037_v14 = vunpack.c.h.bf16 %v3247_v11  ;;  %v1146_v59 = vsel %vm3949_vm7, %v1143_v20, %v1140_v40 }
 0x25a   :  { %3087 = vpow2.f32 %v1114_v31  ;;  %v3954_v22 = vpop.eup %3075  ;;  %v1153_v50 = vand.u32 2147483647, %v3913_v13  ;;  %v2577_v63 = vadd.f32 -0.6931472, %v1247_v30  ;;  %v1149_v7 = vmul.f32 0.6931472, %v3074_v52 }
 0x25b   :  { %v1152_v41 = vmul.f32 %v3913_v13, %v1151_v36  ;;  %v1160_v17 = vadd.f32 1.0, %v1159_v62  ;;  %3089 = vpow2.f32 %v1116_v4  ;;  %v1118_v44 = vmul.f32 1.442695, %v1091_v27  ;;  %v3248_v36 = vld [vmem:[%s4725_s1 + $0x8] sm:$0xff]  }
 0x25c   :  { %2387 = vrot.lane.b32.xlu1 %v3558_v12, %s3257_s7  ;;  %3091 = vlog2.f32 %v1183_v46  ;;  %v1192_v16 = vadd.f32 1.0, %v3954_v22  ;;  %vm3969_vm8 = vcmp.lt.f32.partialorder %v1153_v50, 0.0004427343  ;;  %v1162_v11 = vand.u32 2147483647, %v3917_v25 }
 0x25d   :  { %v1155_v40 = vsel %vm3969_vm8, %v1152_v41, %v1149_v7  ;;  %3093 = vpow2.f32 %v1118_v44  ;;  %v1038_v62 = vunpack.c.l.bf16 %v3248_v36  ;;  %v1161_v52 = vmul.f32 %v3917_v25, %v1160_v17 }
 0x25e   :  { %3095 = vlog2.f32 %v1192_v16  ;;  %vm3985_vm9 = vcmp.lt.f32.partialorder %v1162_v11, 0.0004427343  ;;  %v1171_v50 = vand.u32 2147483647, %v3921_v24  ;;  %v1054_v17 = vmax.f32 %v3820_v38, 0.0 }
 0x260   :  { %vm4006_vm10 = vcmp.lt.f32.partialorder %v1171_v50, 0.0004427343 }
 0x261   :  { %v3078_v31 = vpop.eup %3077 }
 0x262   :  { %v1158_v30 = vmul.f32 0.6931472, %v3078_v31 }
 0x264   :  { %v1164_v7 = vsel %vm3985_vm9, %v1161_v52, %v1158_v30 }
 0x265   :  { %v1250_v16 = vadd.f32 %v1164_v7, %v1054_v17  ;;  %v1056_v17 = vmax.f32 %v3830_v29, 0.0 }
 0x27d   :  { %v1345_v0 = vpop.permute.xlu0 %1344 }
 0x27e   :  { %v1386_v35 = vmul.f32 %v2576_v39, %v1345_v0  ;;  %v1168_v0 = vmul.f32 -0.5, %v3921_v24 }
 0x280   :  { %v1400_v34 = vmul.f32 %v1386_v35, %v3526_v43  ;;  %v1248_v43 = vadd.f32 %v1146_v59, %v1052_v23  ;;  %v3963_v35 = vpop.eup %3079  ;;  %v1053_v23 = vmax.f32 %v3816_v8, 0.0  ;;  %v1169_v4 = vadd.f32 1.0, %v1168_v0 }
 0x281   :  { %v1347_v39 = vpop.permute.xlu0 %1346  ;;  %v3082_v20 = vpop.eup %3081 }
 0x282   :  { %v1414_v3 = vadd.f32 %v1400_v34, %v1036_v42  ;;  %v1387_v10 = vmul.f32 %v2577_v63, %v1347_v39  ;;  %v2578_v46 = vadd.f32 -0.6931472, %v1248_v43  ;;  %v1249_v34 = vadd.f32 %v1155_v40, %v1053_v23 }
 0x283   :  { %v1177_v63 = vmul.f32 -0.5, %v3928_v48  ;;  %v1167_v41 = vmul.f32 0.6931472, %v3082_v20  ;;  %v1170_v39 = vmul.f32 %v3921_v24, %v1169_v4  ;;  %v1186_v23 = vmul.f32 -0.5, %v3941_v58 }
 0x284   :  { %1428 = vst.msk [vmem:[%s4731_s13] sm:$0xff] %vm499_vm4, %v1414_v3  ;;  %v1401_v42 = vmul.f32 %v1387_v10, %v3528_v45  ;;  %v1201_v45 = vadd.f32 1.0, %v3963_v35  ;;  %v3983_v10 = vpop.eup %3083  ;;  %v1039_v40 = vunpack.c.h.bf16 %v3248_v36  ;;  %v1055_v20 = vmax.f32 %v3825_v37, 0.0  ;;  %v3249_v37 = vld [vmem:[%s4725_s1 + $0x10] sm:$0xff]  }
 0x285   :  { %v3086_v31 = vpop.eup %3085  ;;  %v1210_v0 = vadd.f32 1.0, %v3983_v10  ;;  %v1178_v38 = vadd.f32 1.0, %v1177_v63  ;;  %v1173_v24 = vsel %vm4006_vm10, %v1170_v39, %v1167_v41  ;;  %v1187_v63 = vadd.f32 1.0, %v1186_v23 }
 0x286   :  { %v1415_v27 = vadd.f32 %v1401_v42, %v1037_v14  ;;  %v1349_v8 = vpop.permute.xlu1 %1348  ;;  %3097 = vlog2.f32 %v1201_v45  ;;  %v4002_v43 = vpop.eup %3087  ;;  %v1180_v42 = vand.u32 2147483647, %v3928_v48  ;;  %v1176_v52 = vmul.f32 0.6931472, %v3086_v31 }
 0x287   :  { %v1388_v14 = vmul.f32 %v2578_v46, %v1349_v8  ;;  %v4015_v4 = vpop.eup %3089  ;;  %3099 = vlog2.f32 %v1210_v0  ;;  %v2580_v45 = vadd.f32 -0.6931472, %v1250_v16  ;;  %v1251_v8 = vadd.f32 %v1173_v24, %v1055_v20 }
 0x288   :  { %1429 = vst.msk [vmem:[%s4731_s13 + $0x8] sm:$0xff] %vm499_vm4, %v1415_v27  ;;  %v1442_v25 = vpack.c.bf16 %v1415_v27, %v1414_v3  ;;  %v2579_v3 = vadd.f32 -0.6931472, %v1249_v34  ;;  %v3092_v27 = vpop.eup %3091  ;;  %v1179_v36 = vmul.f32 %v3928_v48, %v1178_v38  ;;  %v1040_v34 = vunpack.c.l.bf16 %v3249_v37 }
 0x289   :  { %v1402_v44 = vmul.f32 %v1388_v14, %v3530_v47  ;;  %vm4027_vm11 = vcmp.lt.f32.partialorder %v1180_v42, 0.0004427343  ;;  %v1189_v48 = vand.u32 2147483647, %v3941_v58  ;;  %v4035_v41 = vpop.eup %3093  ;;  %v1185_v31 = vmul.f32 0.6931472, %v3092_v27 }
 0x28a   :  { %2832 = vmatmul.mubr.msk.bf16.vlgmr.msra.gmra.mxu0 %vm499_vm4, %v1442_v25  ;;  %v1351_v11 = vpop.permute.xlu1 %1350  ;;  %v1195_v25 = vmul.f32 -0.5, %v3954_v22  ;;  %v3096_v39 = vpop.eup %3095  ;;  %v1041_v16 = vunpack.c.h.bf16 %v3249_v37  ;;  %v2581_v13 = vadd.f32 -0.6931472, %v1251_v8  ;;  %v1188_v24 = vmul.f32 %v3941_v58, %v1187_v63  ;;  %v3250_v27 = vld [vmem:[%s4725_s1 + $0x18] sm:$0xff]  }
 0x28b   :  { %2835 = vmatprep.mubr.msk.bf16.mxu0 %vm3255_vm2, %v4752_v28  ;;  %v1416_v47 = vadd.f32 %v1402_v44, %v1038_v62  ;;  %v1389_v30 = vmul.f32 %v2579_v3, %v1351_v11  ;;  %v1219_v62 = vadd.f32 1.0, %v4002_v43  ;;  %v1228_v44 = vadd.f32 1.0, %v4015_v4 }
 0x28c   :  { %v1196_v29 = vadd.f32 1.0, %v1195_v25  ;;  %v1204_v42 = vmul.f32 -0.5, %v3963_v35  ;;  %vm4047_vm12 = vcmp.lt.f32.partialorder %v1189_v48, 0.0004427343  ;;  %v1194_v58 = vmul.f32 0.6931472, %v3096_v39 }
 0x28d   :  { %1430 = vst.msk [vmem:[%s4731_s13 + $0x10] sm:$0xff] %vm499_vm4, %v1416_v47  ;;  %v1403_v46 = vmul.f32 %v1389_v30, %v3532_v49  ;;  %v1182_v49 = vsel %vm4027_vm11, %v1179_v36, %v1176_v52  ;;  %3101 = vlog2.f32 %v1219_v62  ;;  %v1237_v20 = vadd.f32 1.0, %v4035_v41 }
 0x28e   :  { %v1353_v59 = vpop.permute.xlu0 %1352  ;;  %v1252_v11 = vadd.f32 %v1182_v49, %v1056_v17  ;;  %3103 = vlog2.f32 %v1228_v44  ;;  %v1197_v36 = vmul.f32 %v3954_v22, %v1196_v29  ;;  %v1205_v37 = vadd.f32 1.0, %v1204_v42 }
 0x28f   :  { %v1417_v14 = vadd.f32 %v1403_v46, %v1039_v40  ;;  %v1390_v7 = vmul.f32 %v2580_v45, %v1353_v59  ;;  %v1042_v46 = vunpack.c.l.bf16 %v3250_v27  ;;  %v1057_v45 = vmax.f32 %v3834_v26, 0.0 }
 0x290   :  { %v2582_v8 = vadd.f32 -0.6931472, %v1252_v11  ;;  %3105 = vlog2.f32 %v1237_v20  ;;  %v1058_v48 = vmax.f32 %v3839_v32, 0.0  ;;  %v1222_v39 = vmul.f32 -0.5, %v4002_v43 }
 0x291   :  { %1431 = vst.msk [vmem:[%s4731_s13 + $0x18] sm:$0xff] %vm499_vm4, %v1417_v14  ;;  %v1443_v0 = vpack.c.bf16 %v1417_v14, %v1416_v47  ;;  %v1404_v3 = vmul.f32 %v1390_v7, %v3534_v51  ;;  %v1198_v47 = vand.u32 2147483647, %v3954_v22  ;;  %v1191_v51 = vsel %vm4047_vm12, %v1188_v24, %v1185_v31 }
 0x292   :  { %v1355_v38 = vpop.permute.xlu1 %1354  ;;  %v1253_v63 = vadd.f32 %v1191_v51, %v1057_v45  ;;  %v1206_v31 = vmul.f32 %v3963_v35, %v1205_v37  ;;  %v1043_v24 = vunpack.c.h.bf16 %v3250_v27  ;;  %v1059_v42 = vmax.f32 %v3844_v54, 0.0  ;;  %v3251_v54 = vld [vmem:[%s4725_s1 + $0x20] sm:$0xff]  }
 0x293   :  { %v1418_v23 = vadd.f32 %v1404_v3, %v1040_v34  ;;  %v1391_v40 = vmul.f32 %v2581_v13, %v1355_v38  ;;  %2836 = vmatmul.mubr.msk.bf16.gmra.mxu0 %vm499_vm4, %v1443_v0  ;;  %v3098_v52 = vpop.eup %3097  ;;  %v1213_v34 = vmul.f32 -0.5, %v3983_v10  ;;  %vm4068_vm13 = vcmp.lt.f32.partialorder %v1198_v47, 0.0004427343 }
 0x294   :  { %2839 = vmatprep.mubr.msk.bf16.mxu0 %vm3255_vm2, %v4752_v28  ;;  %v1200_v7 = vsel %vm4068_vm13, %v1197_v36, %v1194_v58  ;;  %v1203_v26 = vmul.f32 0.6931472, %v3098_v52  ;;  %v3100_v49 = vpop.eup %3099  ;;  %v2583_v0 = vadd.f32 -0.6931472, %v1253_v63  ;;  %v1216_v13 = vand.u32 2147483647, %v3983_v10 }
 0x295   :  { %1432 = vst.msk [vmem:[%s4731_s13 + $0x20] sm:$0xff] %vm499_vm4, %v1418_v23  ;;  %v1405_v62 = vmul.f32 %v1391_v40, %v3536_v53  ;;  %v1207_v53 = vand.u32 2147483647, %v3963_v35  ;;  %v1214_v44 = vadd.f32 1.0, %v1213_v34  ;;  %v1254_v3 = vadd.f32 %v1200_v7, %v1058_v48 }
 0x296   :  { %v1212_v32 = vmul.f32 0.6931472, %v3100_v49  ;;  %v1223_v30 = vadd.f32 1.0, %v1222_v39  ;;  %v1231_v47 = vmul.f32 -0.5, %v4015_v4  ;;  %vm4102_vm15 = vcmp.lt.f32.partialorder %v1216_v13, 0.0004427343 }
 0x297   :  { %v1419_v59 = vadd.f32 %v1405_v62, %v1041_v16  ;;  %vm4084_vm14 = vcmp.lt.f32.partialorder %v1207_v53, 0.0004427343  ;;  %v1215_v40 = vmul.f32 %v3983_v10, %v1214_v44  ;;  %v2584_v58 = vadd.f32 -0.6931472, %v1254_v3 }
 0x298   :  { %v1044_v62 = vunpack.c.l.bf16 %v3251_v54  ;;  %v1224_v34 = vmul.f32 %v4002_v43, %v1223_v30  ;;  %v1240_v63 = vmul.f32 -0.5, %v4035_v41  ;;  %v1045_v48 = vunpack.c.h.bf16 %v3251_v54 }
 0x299   :  { %1433 = vst.msk [vmem:[%s4731_s13 + $0x28] sm:$0xff] %vm499_vm4, %v1419_v59  ;;  %v1444_v22 = vpack.c.bf16 %v1419_v59, %v1418_v23  ;;  %v1225_v23 = vand.u32 2147483647, %v4002_v43  ;;  %v1218_v10 = vsel %vm4102_vm15, %v1215_v40, %v1212_v32  ;;  %v1232_v59 = vadd.f32 1.0, %v1231_v47 }
 0x29a   :  { %v1357_v50 = vpop.permute.xlu0 %1356  ;;  %v3102_v35 = vpop.eup %3101  ;;  %v1241_v44 = vadd.f32 1.0, %v1240_v63  ;;  %v1243_v39 = vand.u32 2147483647, %v4035_v41  ;;  %v2953_v63 = vld [vmem:[%s4730_s10 + $0x30] sm:$0xff]  }
 0x29b   :  { %v1392_v14 = vmul.f32 %v2582_v8, %v1357_v50  ;;  %2840 = vmatmul.mubr.msk.bf16.gmra.mxu0 %vm499_vm4, %v1444_v22  ;;  %v3104_v45 = vpop.eup %3103  ;;  %vm4112_vm0 = vcmp.lt.f32.partialorder %v1225_v23, 0.0004427343  ;;  %v1234_v50 = vand.u32 2147483647, %v4015_v4  ;;  %2862 = vmatpush3.bf16.msra.mxu1 %v2953_v63 }
 0x29c   :  { %2843 = vmatprep.mubr.msk.bf16.mxu0 %vm3255_vm2, %v4752_v28  ;;  %v1230_v43 = vmul.f32 0.6931472, %v3104_v45  ;;  %vm4142_vm3 = vcmp.lt.f32.partialorder %v1243_v39, 0.0004427343  ;;  %2863 = vmatprep.subr.bf16.mxu1 %v4752_v28 }
 0x29d   :  { %v1406_v17 = vmul.f32 %v1392_v14, %v3540_v57  ;;  %v1209_v57 = vsel %vm4084_vm14, %v1206_v31, %v1203_v26  ;;  %v3106_v49 = vpop.eup %3105  ;;  %v1061_v31 = vmax.f32 %v3854_v21, 0.0  ;;  %vm1235_vm1 = vcmp.lt.f32.partialorder %v1234_v50, 0.0004427343 }
 0x29e   :  { %v1359_v11 = vpop.permute.xlu1 %1358  ;;  %v1255_v20 = vadd.f32 %v1209_v57, %v1059_v42 }
 0x29f   :  { %v1420_v38 = vadd.f32 %v1406_v17, %v1042_v46  ;;  %v1393_v29 = vmul.f32 %v2583_v0, %v1359_v11  ;;  %v1221_v46 = vmul.f32 0.6931472, %v3102_v35  ;;  %v1062_v35 = vmax.f32 %v3859_v55, 0.0 }
 0x2a1   :  { %1434 = vst.msk [vmem:[%s4731_s13 + $0x30] sm:$0xff] %vm499_vm4, %v1420_v38  ;;  %v1407_v51 = vmul.f32 %v1393_v29, %v3544_v61  ;;  %v1060_v61 = vmax.f32 %v3849_v19, 0.0  ;;  %v2585_v19 = vadd.f32 -0.6931472, %v1255_v20  ;;  %v1227_v26 = vsel %vm4112_vm0, %v1224_v34, %v1221_v46 }
 0x2a2   :  { %v1361_v27 = vpop.permute.xlu0 %1360  ;;  %v1257_v16 = vadd.f32 %v1227_v26, %v1061_v31  ;;  %v2959_v26 = vld [vmem:[%s4730_s10] sm:$0xff]  }
 0x2a3   :  { %v1421_v8 = vadd.f32 %v1407_v51, %v1043_v24  ;;  %v1394_v36 = vmul.f32 %v2584_v58, %v1361_v27  ;;  %v1256_v14 = vadd.f32 %v1218_v10, %v1060_v61  ;;  %v1242_v24 = vmul.f32 %v4035_v41, %v1241_v44  ;;  %v3253_v27 = vld [vmem:[%s4725_s1 + $0x30] sm:$0xff]  }
 0x2a4   :  { %v2587_v23 = vadd.f32 -0.6931472, %v1257_v16  ;;  %v1063_v58 = vmax.f32 %v3864_v33, 0.0  ;;  %v1048_v10 = vunpack.c.l.bf16 %v3253_v27  ;;  %v1049_v61 = vunpack.c.h.bf16 %v3253_v27 }
 0x2a5   :  { %1435 = vst.msk [vmem:[%s4731_s13 + $0x38] sm:$0xff] %vm499_vm4, %v1421_v8  ;;  %v1445_v25 = vpack.c.bf16 %v1421_v8, %v1420_v38  ;;  %v1408_v53 = vmul.f32 %v1394_v36, %v3548_v2  ;;  %v1233_v2 = vmul.f32 %v4015_v4, %v1232_v59  ;;  %v2586_v3 = vadd.f32 -0.6931472, %v1256_v14  ;;  %v3252_v4 = vld [vmem:[%s4725_s1 + $0x28] sm:$0xff]   ;;  %v2957_v14 = vld [vmem:[%s4730_s10 + $0x10] sm:$0xff]  }
 0x2a6   :  { %v1363_v7 = vpop.permute.xlu1 %1362  ;;  %v1239_v38 = vmul.f32 0.6931472, %v3106_v49  ;;  %v1046_v57 = vunpack.c.l.bf16 %v3252_v4  ;;  %v1047_v41 = vunpack.c.h.bf16 %v3252_v4  ;;  %v4213_v49 = vld [vmem:[%s4732_s9] ss:$0 sm:$0xff] }
 0x2a7   :  { %v1422_v22 = vadd.f32 %v1408_v53, %v1044_v62  ;;  %v1395_v17 = vmul.f32 %v2585_v19, %v1363_v7  ;;  %2844 = vmatmul.mubr.msk.bf16.gmra.mxu0 %vm499_vm4, %v1445_v25  ;;  %v1236_v21 = vsel %vm1235_vm1, %v1233_v2, %v1230_v43  ;;  %v2954_v25 = vld [vmem:[%s4730_s10 + $0x28] sm:$0xff]   ;;  %v2955_v53 = vld [vmem:[%s4730_s10 + $0x20] sm:$0xff]   ;;  %v2956_v19 = vld [vmem:[%s4730_s10 + $0x18] sm:$0xff]  }
 0x2a8   :  { %2847 = vmatprep.mubr.msk.bf16.mxu0 %vm3255_vm2, %v4752_v28  ;;  %v1258_v40 = vadd.f32 %v1236_v21, %v1062_v35  ;;  %v1245_v55 = vsel %vm4142_vm3, %v1242_v24, %v1239_v38  ;;  %2864 = vmatpush3.bf16.msra.mxu1 %v2954_v25  ;;  %v2958_v7 = vld [vmem:[%s4730_s10 + $0x8] sm:$0xff]  }
 0x2a9   :  { %1436 = vst.msk [vmem:[%s4731_s13 + $0x40] sm:$0xff] %vm499_vm4, %v1422_v22  ;;  %v1409_v0 = vmul.f32 %v1395_v17, %v3552_v6  ;;  %v1259_v52 = vadd.f32 %v1245_v55, %v1063_v58  ;;  %2865 = vmatprep.subr.bf16.mxu1 %v4752_v28 }
 0x2aa   :  { %v1365_v13 = vpop.permute.xlu0 %1364  ;;  %v2588_v20 = vadd.f32 -0.6931472, %v1258_v40  ;;  %v4784_v40 = vld [vmem:[#allocation2_spill] sm:$0xff] }
 0x2ab   :  { %v1423_v11 = vadd.f32 %v1409_v0, %v1045_v48  ;;  %v1396_v32 = vmul.f32 %v2586_v3, %v1365_v13  ;;  %v2589_v8 = vadd.f32 -0.6931472, %v1259_v52 }
 0x2ac   :  { %2866 = vmatpush3.bf16.msra.mxu1 %v2955_v53 }
 0x2ad   :  { %1437 = vst.msk [vmem:[%s4731_s13 + $0x48] sm:$0xff] %vm499_vm4, %v1423_v11  ;;  %v1446_v6 = vpack.c.bf16 %v1423_v11, %v1422_v22  ;;  %v1410_v42 = vmul.f32 %v1396_v32, %v3554_v9  ;;  %2867 = vmatprep.subr.bf16.mxu1 %v4752_v28 }
 0x2ae   :  { %v1367_v30 = vpop.permute.xlu1 %1366 }
 0x2af   :  { %v1424_v47 = vadd.f32 %v1410_v42, %v1046_v57  ;;  %v1397_v51 = vmul.f32 %v2587_v23, %v1367_v30  ;;  %2848 = vmatmul.mubr.msk.bf16.gmra.mxu0 %vm499_vm4, %v1446_v6 }
 0x2b0   :  { %2851 = vmatprep.mubr.msk.bf16.mxu0 %vm3255_vm2, %v4752_v28  ;;  %2868 = vmatpush3.bf16.msra.mxu1 %v2956_v19  ;;  %v4787_v19 = vld [vmem:[#allocation5_spill] sm:$0xff] }
 0x2b1   :  { %1438 = vst.msk [vmem:[%s4731_s13 + $0x50] sm:$0xff] %vm499_vm4, %v1424_v47  ;;  %v1411_v9 = vmul.f32 %v1397_v51, %v3558_v12  ;;  %2869 = vmatprep.subr.bf16.mxu1 %v4752_v28 }
 0x2b2   :  { %v1369_v54 = vpop.permute.xlu0 %1368 }
 0x2b3   :  { %v1425_v62 = vadd.f32 %v1411_v9, %v1047_v41  ;;  %v1398_v33 = vmul.f32 %v2588_v20, %v1369_v54  ;;  %v4785_v20 = vld [vmem:[#allocation3_spill] sm:$0xff] }
 0x2b4   :  { %2870 = vmatpush3.bf16.msra.mxu1 %v2957_v14 }
 0x2b5   :  { %1439 = vst.msk [vmem:[%s4731_s13 + $0x58] sm:$0xff] %vm499_vm4, %v1425_v62  ;;  %v1447_v46 = vpack.c.bf16 %v1425_v62, %v1424_v47  ;;  %v1412_v45 = vmul.f32 %v1398_v33, %v3560_v15  ;;  %2871 = vmatprep.subr.bf16.mxu1 %v4752_v28 }
 0x2b6   :  { %v1371_v12 = vpop.permute.xlu1 %1370 }
 0x2b7   :  { %v1426_v36 = vadd.f32 %v1412_v45, %v1048_v10  ;;  %v1399_v37 = vmul.f32 %v2589_v8, %v1371_v12  ;;  %2852 = vmatmul.mubr.msk.bf16.gmra.mxu0 %vm499_vm4, %v1447_v46 }
 0x2b8   :  { %2855 = vmatprep.mubr.msk.bf16.mxu0 %vm3255_vm2, %v4752_v28  ;;  %2872 = vmatpush3.bf16.msra.mxu1 %v2958_v7 }
 0x2b9   :  { %1440 = vst.msk [vmem:[%s4731_s13 + $0x60] sm:$0xff] %vm499_vm4, %v1426_v36  ;;  %v1413_v34 = vmul.f32 %v1399_v37, %v3564_v18  ;;  %2873 = vmatprep.subr.bf16.mxu1 %v4752_v28 }
 0x2bb   :  { %v1427_v59 = vadd.f32 %v1413_v34, %v1049_v61  ;;  %v4786_v61 = vld [vmem:[#allocation4_spill] sm:$0xff] }
 0x2bc   :  { %2874 = vmatpush3.bf16.msra.mxu1 %v2959_v26 }
 0x2bd   :  { %1441 = vst.msk [vmem:[%s4731_s13 + $0x68] sm:$0xff] %vm499_vm4, %v1427_v59  ;;  %v1448_v50 = vpack.c.bf16 %v1427_v59, %v1426_v36 }
 0x2bf   :  { %2856 = vmatmul.mubr.msk.bf16.gmra.mxu0 %vm499_vm4, %v1448_v50 }
 0x34a   :  { %v1520_v43 = vpop.f32.mrf.mxu0 }
 0x34b   :  { %v1575_v22 = vadd.f32 %v1520_v43, %v3538_v56 }
 0x34c   :  { %v2833_v48 = vpop.f32.mrf.mxu0 }
 0x34d   :  { %v4217_v17 = vadd.f32 %v4213_v49, %v1575_v22 }
 0x34e   :  { %v1523_v31 = vpop.f32.mrf.mxu0 }
 0x34f   :  { %v1624_v2 = vand.u32 2147483647, %v4217_v17  ;;  %v1576_v44 = vadd.f32 %v1523_v31, %v3542_v60 }
 0x350   :  { %v2834_v39 = vpop.f32.mrf.mxu0 }
 0x351   :  { %v1638_v0 = vsub.f32 0.0, %v1624_v2  ;;  %v4222_v3 = vadd.f32 %v4213_v49, %v1576_v44 }
 0x353   :  { %v1652_v16 = vmul.f32 1.442695, %v1638_v0  ;;  %v1625_v13 = vand.u32 2147483647, %v4222_v3  ;;  %v1528_v56 = vpop.f32.mrf.mxu0 }
 0x354   :  { %v1577_v38 = vadd.f32 %v1528_v56, %v3546_v1 }
 0x355   :  { %3107 = vpow2.f32 %v1652_v16  ;;  %v1639_v21 = vsub.f32 0.0, %v1625_v13  ;;  %v2837_v4 = vpop.f32.mrf.mxu0  ;;  %v4788_v13 = vld [vmem:[#allocation6_spill] sm:$0xff] }
 0x356   :  { %v4227_v57 = vadd.f32 %v4213_v49, %v1577_v38 }
 0x357   :  { %v1654_v11 = vmul.f32 1.442695, %v1639_v21  ;;  %v1531_v60 = vpop.f32.mrf.mxu0 }
 0x358   :  { %v1626_v32 = vand.u32 2147483647, %v4227_v57  ;;  %v1578_v35 = vadd.f32 %v1531_v60, %v3550_v5 }
 0x359   :  { %3109 = vpow2.f32 %v1654_v11  ;;  %v2838_v24 = vpop.f32.mrf.mxu0 }
 0x35a   :  { %v1640_v29 = vsub.f32 0.0, %v1626_v32  ;;  %v4232_v6 = vadd.f32 %v4213_v49, %v1578_v35 }
 0x35b   :  { %v1536_v42 = vpop.f32.mrf.mxu0 }
 0x35c   :  { %v1656_v23 = vmul.f32 1.442695, %v1640_v29  ;;  %v1627_v1 = vand.u32 2147483647, %v4232_v6  ;;  %v1579_v30 = vadd.f32 %v1536_v42, %v4784_v40 }
 0x35d   :  { %v2841_v55 = vpop.f32.mrf.mxu0 }
 0x35e   :  { %3111 = vpow2.f32 %v1656_v23  ;;  %v1641_v47 = vsub.f32 0.0, %v1627_v1  ;;  %v4237_v41 = vadd.f32 %v4213_v49, %v1579_v30  ;;  %v4791_v55 = vld [vmem:[#allocation7_spill] sm:$0xff] }
 0x35f   :  { %v1539_v51 = vpop.f32.mrf.mxu0 }
 0x360   :  { %v1658_v5 = vmul.f32 1.442695, %v1641_v47  ;;  %v1628_v9 = vand.u32 2147483647, %v4237_v41  ;;  %v1580_v52 = vadd.f32 %v1539_v51, %v4785_v20 }
 0x361   :  { %v2842_v62 = vpop.f32.mrf.mxu0 }
 0x362   :  { %v3108_v58 = vpop.eup %3107  ;;  %3113 = vpow2.f32 %v1658_v5  ;;  %v1642_v27 = vsub.f32 0.0, %v1628_v9  ;;  %v4242_v10 = vadd.f32 %v4213_v49, %v1580_v52  ;;  %v1610_v5 = vmax.f32 %v4217_v17, 0.0 }
 0x363   :  { %v1680_v54 = vadd.f32 1.0, %v3108_v58  ;;  %v1683_v63 = vmul.f32 -0.5, %v3108_v58  ;;  %v1686_v2 = vand.u32 2147483647, %v3108_v58  ;;  %v1611_v52 = vmax.f32 %v4222_v3, 0.0 }
 0x364   :  { %v1660_v46 = vmul.f32 1.442695, %v1642_v27  ;;  %v1629_v45 = vand.u32 2147483647, %v4242_v10 }
 0x365   :  { %3115 = vlog2.f32 %v1680_v54  ;;  %v1684_v31 = vadd.f32 1.0, %v1683_v63  ;;  %vm4265_vm4 = vcmp.lt.f32.partialorder %v1686_v2, 0.0004427343 }
 0x366   :  { %v3110_v33 = vpop.eup %3109  ;;  %3117 = vpow2.f32 %v1660_v46  ;;  %v1643_v36 = vsub.f32 0.0, %v1629_v45 }
 0x367   :  { %v1689_v8 = vadd.f32 1.0, %v3110_v33  ;;  %v1544_v12 = vpop.f32.mrf.mxu0  ;;  %v1692_v44 = vmul.f32 -0.5, %v3110_v33  ;;  %v1685_v24 = vmul.f32 %v3108_v58, %v1684_v31  ;;  %v1695_v1 = vand.u32 2147483647, %v3110_v33 }
 0x368   :  { %v1581_v37 = vadd.f32 %v1544_v12, %v4786_v61  ;;  %v1662_v59 = vmul.f32 1.442695, %v1643_v36  ;;  %v4792_v61 = vld [vmem:[#allocation8_spill] sm:$0xff] }
 0x369   :  { %3119 = vlog2.f32 %v1689_v8  ;;  %v2845_v34 = vpop.f32.mrf.mxu0  ;;  %v1693_v42 = vadd.f32 1.0, %v1692_v44  ;;  %vm1696_vm5 = vcmp.lt.f32.partialorder %v1695_v1, 0.0004427343 }
 0x36a   :  { %v4247_v50 = vadd.f32 %v4213_v49, %v1581_v37  ;;  %3121 = vpow2.f32 %v1662_v59 }
 0x36b   :  { %v1547_v25 = vpop.f32.mrf.mxu0  ;;  %v4251_v7 = vpop.eup %3111  ;;  %v1694_v45 = vmul.f32 %v3110_v33, %v1693_v42 }
 0x36c   :  { %v1630_v53 = vand.u32 2147483647, %v4247_v50  ;;  %v1582_v14 = vadd.f32 %v1547_v25, %v4787_v19  ;;  %v1698_v48 = vadd.f32 1.0, %v4251_v7  ;;  %v1701_v27 = vmul.f32 -0.5, %v4251_v7 }
 0x36d   :  { %v2846_v26 = vpop.f32.mrf.mxu0  ;;  %v1612_v19 = vmax.f32 %v4227_v57, 0.0 }
 0x36e   :  { %v1644_v43 = vsub.f32 0.0, %v1630_v53  ;;  %v4254_v22 = vadd.f32 %v4213_v49, %v1582_v14  ;;  %3123 = vlog2.f32 %v1698_v48  ;;  %v1702_v53 = vadd.f32 1.0, %v1701_v27 }
 0x36f   :  { %v1552_v39 = vpop.f32.mrf.mxu0  ;;  %v4259_v56 = vpop.eup %3113 }
 0x370   :  { %v1664_v0 = vmul.f32 1.442695, %v1644_v43  ;;  %v1631_v16 = vand.u32 2147483647, %v4254_v22  ;;  %v1583_v21 = vadd.f32 %v1552_v39, %v4788_v13  ;;  %v1707_v32 = vadd.f32 1.0, %v4259_v56  ;;  %v4793_v39 = vld [vmem:[#allocation9_spill] sm:$0xff] }
 0x371   :  { %v2849_v38 = vpop.f32.mrf.mxu0  ;;  %v1710_v43 = vmul.f32 -0.5, %v4259_v56 }
 0x372   :  { %v3116_v11 = vpop.eup %3115  ;;  %3125 = vpow2.f32 %v1664_v0  ;;  %v1645_v4 = vsub.f32 0.0, %v1631_v16  ;;  %v4262_v60 = vadd.f32 %v4213_v49, %v1583_v21  ;;  %v1613_v16 = vmax.f32 %v4232_v6, 0.0 }
 0x373   :  { %v1682_v35 = vmul.f32 0.6931472, %v3116_v11  ;;  %v1555_v23 = vpop.f32.mrf.mxu0  ;;  %v4271_v51 = vpop.eup %3117  ;;  %3127 = vlog2.f32 %v1707_v32  ;;  %v1704_v38 = vand.u32 2147483647, %v4251_v7 }
 0x374   :  { %v1666_v40 = vmul.f32 1.442695, %v1645_v4  ;;  %v1632_v30 = vand.u32 2147483647, %v4262_v60  ;;  %v1584_v47 = vadd.f32 %v1555_v23, %v4791_v55  ;;  %v1716_v17 = vadd.f32 1.0, %v4271_v51 }
 0x375   :  { %v1688_v9 = vsel %vm4265_vm4, %v1685_v24, %v1682_v35  ;;  %v2850_v58 = vpop.f32.mrf.mxu0  ;;  %v1703_v35 = vmul.f32 %v4251_v7, %v1702_v53  ;;  %v1711_v23 = vadd.f32 1.0, %v1710_v43  ;;  %v1719_v6 = vmul.f32 -0.5, %v4271_v51 }
 0x376   :  { %v3120_v20 = vpop.eup %3119  ;;  %v1646_v54 = vsub.f32 0.0, %v1632_v30  ;;  %v4278_v62 = vadd.f32 %v4213_v49, %v1584_v47  ;;  %3129 = vpow2.f32 %v1666_v40  ;;  %v1806_v12 = vadd.f32 %v1688_v9, %v1610_v5  ;;  %v4794_v30 = vld [vmem:[#allocation10_spill] sm:$0xff] }
 0x377   :  { %v1691_v46 = vmul.f32 0.6931472, %v3120_v20  ;;  %v1560_v8 = vpop.f32.mrf.mxu0  ;;  %v4283_v34 = vpop.eup %3121  ;;  %3131 = vlog2.f32 %v1716_v17  ;;  %v1713_v47 = vand.u32 2147483647, %v4259_v56  ;;  %vm4308_vm6 = vcmp.lt.f32.partialorder %v1704_v38, 0.0004427343 }
 0x378   :  { %v1668_v36 = vmul.f32 1.442695, %v1646_v54  ;;  %v1585_v37 = vadd.f32 %v1560_v8, %v4792_v61  ;;  %v1633_v59 = vand.u32 2147483647, %v4278_v62  ;;  %v1725_v48 = vadd.f32 1.0, %v4283_v34 }
 0x379   :  { %v1697_v3 = vsel %vm1696_vm5, %v1694_v45, %v1691_v46  ;;  %v2853_v63 = vpop.f32.mrf.mxu0  ;;  %v2600_v31 = vadd.f32 -0.6931472, %v1806_v12  ;;  %v1722_v9 = vand.u32 2147483647, %v4271_v51  ;;  %v1728_v58 = vmul.f32 -0.5, %v4283_v34 }
 0x37a   :  { %v1807_v25 = vadd.f32 %v1697_v3, %v1611_v52  ;;  %3133 = vpow2.f32 %v1668_v36  ;;  %v4287_v33 = vadd.f32 %v4213_v49, %v1585_v37  ;;  %v1647_v14 = vsub.f32 0.0, %v1633_v59  ;;  %v4797_v3 = vld [vmem:[#allocation11_spill] sm:$0xff] }
 0x37b   :  { %v1563_v26 = vpop.f32.mrf.mxu0  ;;  %3135 = vlog2.f32 %v1725_v48  ;;  %v3124_v57 = vpop.eup %3123  ;;  %v1712_v17 = vmul.f32 %v4259_v56, %v1711_v23  ;;  %v1720_v12 = vadd.f32 1.0, %v1719_v6  ;;  %vm1714_vm7 = vcmp.lt.f32.partialorder %v1713_v47, 0.0004427343 }
 0x37c   :  { %v2601_v2 = vadd.f32 -0.6931472, %v1807_v25  ;;  %v1634_v44 = vand.u32 2147483647, %v4287_v33  ;;  %v1586_v0 = vadd.f32 %v1563_v26, %v4793_v39  ;;  %v1670_v13 = vmul.f32 1.442695, %v1647_v14 }
 0x37d   :  { %v2854_v21 = vpop.f32.mrf.mxu0  ;;  %v1700_v42 = vmul.f32 0.6931472, %v3124_v57  ;;  %vm4325_vm8 = vcmp.lt.f32.partialorder %v1722_v9, 0.0004427343  ;;  %v1729_v26 = vadd.f32 1.0, %v1728_v58  ;;  %v1721_v39 = vmul.f32 %v4271_v51, %v1720_v12 }
 0x37e   :  { %v1834_v11 = vpack.c.bf16 %v2601_v2, %v2600_v31  ;;  %v1648_v4 = vsub.f32 0.0, %v1634_v44  ;;  %v4297_v32 = vadd.f32 %v4213_v49, %v1586_v0  ;;  %3137 = vpow2.f32 %v1670_v13 }
 0x37f   :  { %v4300_v24 = vpop.eup %3125  ;;  %v1568_v29 = vpop.f32.mrf.mxu0  ;;  %v1706_v46 = vsel %vm4308_vm6, %v1703_v35, %v1700_v42  ;;  %v1731_v0 = vand.u32 2147483647, %v4283_v34  ;;  %v1730_v35 = vmul.f32 %v4283_v34, %v1729_v26  ;;  %v1616_v14 = vmax.f32 %v4247_v50, 0.0 }
 0x380   :  { %v1672_v1 = vmul.f32 1.442695, %v1648_v4  ;;  %v1635_v40 = vand.u32 2147483647, %v4297_v32  ;;  %v1587_v55 = vadd.f32 %v1568_v29, %v4794_v30  ;;  %2876 = vmatmul.mubr.bf16.vlgmr.msra.gmra.mxu1 %v1834_v11  ;;  %v1734_v20 = vadd.f32 1.0, %v4300_v24  ;;  %v3128_v52 = vpop.eup %3127 }
 0x381   :  { %v2857_v5 = vpop.f32.mrf.mxu0  ;;  %2879 = vmatprep.mubr.msk.bf16.mxu1 %vm3255_vm2, %v4752_v28  ;;  %v1709_v8 = vmul.f32 0.6931472, %v3128_v52  ;;  %v1808_v53 = vadd.f32 %v1706_v46, %v1612_v19  ;;  %v1614_v4 = vmax.f32 %v4237_v41, 0.0  ;;  %v1737_v23 = vmul.f32 -0.5, %v4300_v24 }
 0x382   :  { %3139 = vpow2.f32 %v1672_v1  ;;  %v1649_v54 = vsub.f32 0.0, %v1635_v40  ;;  %v4316_v27 = vadd.f32 %v4213_v49, %v1587_v55  ;;  %v1615_v1 = vmax.f32 %v4242_v10, 0.0 }
 0x383   :  { %v1571_v45 = vpop.f32.mrf.mxu0  ;;  %3141 = vlog2.f32 %v1734_v20  ;;  %v4321_v36 = vpop.eup %3129  ;;  %v1715_v25 = vsel %vm1714_vm7, %v1712_v17, %v1709_v8  ;;  %v2602_v57 = vadd.f32 -0.6931472, %v1808_v53  ;;  %vm1732_vm9 = vcmp.lt.f32.partialorder %v1731_v0, 0.0004427343 }
 0x384   :  { %v1674_v61 = vmul.f32 1.442695, %v1649_v54  ;;  %v1636_v37 = vand.u32 2147483647, %v4316_v27  ;;  %v1588_v59 = vadd.f32 %v1571_v45, %v4797_v3  ;;  %v3132_v43 = vpop.eup %3131  ;;  %v1809_v31 = vadd.f32 %v1715_v25, %v1613_v16 }
 0x385   :  { %v2858_v63 = vpop.f32.mrf.mxu0  ;;  %v1718_v44 = vmul.f32 0.6931472, %v3132_v43  ;;  %v1743_v19 = vadd.f32 1.0, %v4321_v36  ;;  %v1738_v5 = vadd.f32 1.0, %v1737_v23  ;;  %v1740_v7 = vand.u32 2147483647, %v4300_v24 }
 0x386   :  { %3143 = vpow2.f32 %v1674_v61  ;;  %v1650_v56 = vsub.f32 0.0, %v1636_v37  ;;  %v4330_v48 = vadd.f32 %v4213_v49, %v1588_v59  ;;  %v2603_v11 = vadd.f32 -0.6931472, %v1809_v31 }
 0x387   :  { %v4332_v2 = vpop.eup %3133  ;;  %v1724_v49 = vsel %vm4325_vm8, %v1721_v39, %v1718_v44  ;;  %3145 = vlog2.f32 %v1743_v19  ;;  %v1746_v9 = vmul.f32 -0.5, %v4321_v36  ;;  %v1739_v17 = vmul.f32 %v4300_v24, %v1738_v5 }
 0x388   :  { %v1676_v13 = vmul.f32 1.442695, %v1650_v56  ;;  %v1637_v21 = vand.u32 2147483647, %v4330_v48  ;;  %v1752_v38 = vadd.f32 1.0, %v4332_v2  ;;  %v3136_v16 = vpop.eup %3135  ;;  %v1835_v29 = vpack.c.bf16 %v2603_v11, %v2602_v57 }
 0x389   :  { %v1727_v42 = vmul.f32 0.6931472, %v3136_v16  ;;  %v1810_v30 = vadd.f32 %v1724_v49, %v1614_v4  ;;  %v1755_v46 = vmul.f32 -0.5, %v4332_v2  ;;  %v1747_v12 = vadd.f32 1.0, %v1746_v9 }
 0x38a   :  { %3147 = vpow2.f32 %v1676_v13  ;;  %v1651_v51 = vsub.f32 0.0, %v1637_v21  ;;  %2880 = vmatmul.mubr.bf16.gmra.mxu1 %v1835_v29  ;;  %v1749_v61 = vand.u32 2147483647, %v4321_v36  ;;  %vm4360_vm10 = vcmp.lt.f32.partialorder %v1740_v7, 0.0004427343 }
 0x38b   :  { %3149 = vlog2.f32 %v1752_v38  ;;  %v4344_v6 = vpop.eup %3137  ;;  %v1733_v55 = vsel %vm1732_vm9, %v1730_v35, %v1727_v42  ;;  %2883 = vmatprep.mubr.msk.bf16.mxu1 %vm3255_vm2, %v4752_v28  ;;  %v2604_v58 = vadd.f32 -0.6931472, %v1810_v30  ;;  %v1756_v25 = vadd.f32 1.0, %v1755_v46 }
 0x38c   :  { %v1678_v40 = vmul.f32 1.442695, %v1651_v51  ;;  %v1761_v41 = vadd.f32 1.0, %v4344_v6  ;;  %v1811_v34 = vadd.f32 %v1733_v55, %v1615_v1  ;;  %v1764_v3 = vmul.f32 -0.5, %v4344_v6 }
 0x38d   :  { %v1758_v24 = vand.u32 2147483647, %v4332_v2  ;;  %v1617_v43 = vmax.f32 %v4254_v22, 0.0  ;;  %v1748_v31 = vmul.f32 %v4321_v36, %v1747_v12  ;;  %vm1750_vm11 = vcmp.lt.f32.partialorder %v1749_v61, 0.0004427343 }
 0x38e   :  { %3151 = vpow2.f32 %v1678_v40  ;;  %v2605_v20 = vadd.f32 -0.6931472, %v1811_v34  ;;  %v1765_v0 = vadd.f32 1.0, %v1764_v3  ;;  %v1767_v19 = vand.u32 2147483647, %v4344_v6 }
 0x38f   :  { %v4350_v47 = vpop.eup %3139  ;;  %3153 = vlog2.f32 %v1761_v41  ;;  %v1757_v38 = vmul.f32 %v4332_v2, %v1756_v25  ;;  %vm4380_vm12 = vcmp.lt.f32.partialorder %v1758_v24, 0.0004427343  ;;  %v1618_v49 = vmax.f32 %v4262_v60, 0.0 }
 0x390   :  { %v3142_v10 = vpop.eup %3141  ;;  %v1770_v52 = vadd.f32 1.0, %v4350_v47  ;;  %v1836_v45 = vpack.c.bf16 %v2605_v20, %v2604_v58  ;;  %v1773_v57 = vmul.f32 -0.5, %v4350_v47  ;;  %v1619_v16 = vmax.f32 %v4278_v62, 0.0 }
 0x391   :  { %v1736_v54 = vmul.f32 0.6931472, %v3142_v10  ;;  %v1766_v1 = vmul.f32 %v4344_v6, %v1765_v0  ;;  %vm1768_vm13 = vcmp.lt.f32.partialorder %v1767_v19, 0.0004427343  ;;  %v1776_v60 = vand.u32 2147483647, %v4350_v47 }
 0x392   :  { %3155 = vlog2.f32 %v1770_v52  ;;  %2884 = vmatmul.mubr.bf16.gmra.mxu1 %v1836_v45  ;;  %v1774_v40 = vadd.f32 1.0, %v1773_v57  ;;  %v1621_v37 = vmax.f32 %v4297_v32, 0.0  ;;  %vm2477_vm4 = vcmask 257024  }
 0x393   :  { %v4356_v8 = vpop.eup %3143  ;;  %v1742_v63 = vsel %vm4360_vm10, %v1739_v17, %v1736_v54  ;;  %2887 = vmatprep.mubr.msk.bf16.mxu1 %vm3255_vm2, %v4752_v28  ;;  %vm1777_vm14 = vcmp.lt.f32.partialorder %v1776_v60, 0.0004427343  ;;  %v1620_v54 = vmax.f32 %v4287_v33, 0.0 }
 0x394   :  { %v1779_v59 = vadd.f32 1.0, %v4356_v8  ;;  %v3146_v53 = vpop.eup %3145  ;;  %v1812_v39 = vadd.f32 %v1742_v63, %v1616_v14  ;;  %v1782_v2 = vmul.f32 -0.5, %v4356_v8  ;;  %v1775_v9 = vmul.f32 %v4350_v47, %v1774_v40 }
 0x395   :  { %v1745_v56 = vmul.f32 0.6931472, %v3146_v53  ;;  %v1785_v6 = vand.u32 2147483647, %v4356_v8 }
 0x396   :  { %3157 = vlog2.f32 %v1779_v59  ;;  %v2606_v35 = vadd.f32 -0.6931472, %v1812_v39  ;;  %v1783_v7 = vadd.f32 1.0, %v1782_v2 }
 0x397   :  { %v4372_v26 = vpop.eup %3147  ;;  %v1751_v13 = vsel %vm1750_vm11, %v1748_v31, %v1745_v56  ;;  %vm1786_vm15 = vcmp.lt.f32.partialorder %v1785_v6, 0.0004427343 }
 0x398   :  { %v3150_v44 = vpop.eup %3149  ;;  %v1788_v50 = vadd.f32 1.0, %v4372_v26  ;;  %v1813_v11 = vadd.f32 %v1751_v13, %v1617_v43  ;;  %v1791_v10 = vmul.f32 -0.5, %v4372_v26  ;;  %v1784_v12 = vmul.f32 %v4356_v8, %v1783_v7 }
 0x399   :  { %v1754_v21 = vmul.f32 0.6931472, %v3150_v44  ;;  %v1794_v63 = vand.u32 2147483647, %v4372_v26  ;;  %v1622_v44 = vmax.f32 %v4316_v27, 0.0 }
 0x39a   :  { %3159 = vlog2.f32 %v1788_v50  ;;  %v2607_v29 = vadd.f32 -0.6931472, %v1813_v11  ;;  %v1792_v47 = vadd.f32 1.0, %v1791_v10  ;;  %v1623_v50 = vmax.f32 %v4330_v48, 0.0  ;;  %v4410_v27 = vld [vmem:[%s4733_s11] ss:$0 sm:$0xff] }
 0x39b   :  { %v3152_v36 = vpop.eup %3151  ;;  %v1760_v4 = vsel %vm4380_vm12, %v1757_v38, %v1754_v21  ;;  %vm1795_vm0 = vcmp.lt.f32.partialorder %v1794_v63, 0.0004427343 }
 0x39c   :  { %v3154_v51 = vpop.eup %3153  ;;  %v1797_v42 = vadd.f32 1.0, %v3152_v36  ;;  %v1837_v30 = vpack.c.bf16 %v2607_v29, %v2606_v35  ;;  %v1814_v55 = vadd.f32 %v1760_v4, %v1618_v49  ;;  %v1800_v61 = vmul.f32 -0.5, %v3152_v36 }
 0x39d   :  { %v1763_v23 = vmul.f32 0.6931472, %v3154_v51  ;;  %v1793_v8 = vmul.f32 %v4372_v26, %v1792_v47  ;;  %v1803_v43 = vand.u32 2147483647, %v3152_v36 }
 0x39e   :  { %3161 = vlog2.f32 %v1797_v42  ;;  %2888 = vmatmul.mubr.bf16.gmra.mxu1 %v1837_v30  ;;  %v2608_v58 = vadd.f32 -0.6931472, %v1814_v55  ;;  %v1801_v24 = vadd.f32 1.0, %v1800_v61 }
 0x39f   :  { %v3156_v62 = vpop.eup %3155  ;;  %v1769_v41 = vsel %vm1768_vm13, %v1766_v1, %v1763_v23  ;;  %2891 = vmatprep.mubr.msk.bf16.mxu1 %vm3255_vm2, %v4752_v28  ;;  %vm1804_vm1 = vcmp.lt.f32.partialorder %v1803_v43, 0.0004427343 }
 0x3a0   :  { %v1815_v34 = vadd.f32 %v1769_v41, %v1619_v16  ;;  %v1772_v5 = vmul.f32 0.6931472, %v3156_v62  ;;  %v1802_v19 = vmul.f32 %v3152_v36, %v1801_v24 }
 0x3a2   :  { %v2609_v20 = vadd.f32 -0.6931472, %v1815_v34  ;;  %v1778_v46 = vsel %vm1777_vm14, %v1775_v9, %v1772_v5 }
 0x3a3   :  { %v3158_v52 = vpop.eup %3157  ;;  %v1816_v59 = vadd.f32 %v1778_v46, %v1620_v54 }
 0x3a4   :  { %v1838_v45 = vpack.c.bf16 %v2609_v20, %v2608_v58  ;;  %v1781_v17 = vmul.f32 0.6931472, %v3158_v52 }
 0x3a5   :  { %v2610_v56 = vadd.f32 -0.6931472, %v1816_v59 }
 0x3a6   :  { %v1787_v3 = vsel %vm1786_vm15, %v1784_v12, %v1781_v17  ;;  %2892 = vmatmul.mubr.bf16.gmra.mxu1 %v1838_v45 }
 0x3a7   :  { %v3160_v25 = vpop.eup %3159  ;;  %v1817_v53 = vadd.f32 %v1787_v3, %v1621_v37  ;;  %2895 = vmatprep.mubr.msk.bf16.mxu1 %vm3255_vm2, %v4752_v28 }
 0x3a8   :  { %v1790_v14 = vmul.f32 0.6931472, %v3160_v25 }
 0x3a9   :  { %v2611_v33 = vadd.f32 -0.6931472, %v1817_v53 }
 0x3aa   :  { %v1796_v31 = vsel %vm1795_vm0, %v1793_v8, %v1790_v14 }
 0x3ab   :  { %v3162_v32 = vpop.eup %3161  ;;  %v1839_v39 = vpack.c.bf16 %v2611_v33, %v2610_v56  ;;  %v1818_v21 = vadd.f32 %v1796_v31, %v1622_v44 }
 0x3ac   :  { %v1799_v0 = vmul.f32 0.6931472, %v3162_v32 }
 0x3ad   :  { %v2612_v57 = vadd.f32 -0.6931472, %v1818_v21 }
 0x3ae   :  { %v1805_v13 = vsel %vm1804_vm1, %v1802_v19, %v1799_v0  ;;  %2896 = vmatmul.mubr.bf16.gmra.mxu1 %v1839_v39 }
 0x3af   :  { %v1819_v38 = vadd.f32 %v1805_v13, %v1623_v50  ;;  %2899 = vmatprep.mubr.msk.bf16.mxu1 %vm3255_vm2, %v4752_v28 }
 0x3b1   :  { %v2613_v26 = vadd.f32 -0.6931472, %v1819_v38 }
 0x3b3   :  { %v1840_v11 = vpack.c.bf16 %v2613_v26, %v2612_v57 }
 0x3b6   :  { %2900 = vmatmul.mubr.bf16.gmra.mxu1 %v1840_v11 }
 0x440   :  { %v1946_v22 = vpop.f32.mrf.mxu1 }
 0x441   :  { %v4413_v48 = vadd.f32 %v4410_v27, %v1946_v22 }
 0x442   :  { %v2877_v36 = vpop.f32.mrf.mxu1 }
 0x443   :  { %v2225_v49 = vmul.f32 0.5, %v4413_v48 }
 0x444   :  { %v1949_v16 = vpop.f32.mrf.mxu1 }
 0x445   :  { %3163 = vtanh.f32 %v2225_v49  ;;  %v4417_v28 = vadd.f32 %v4410_v27, %v1949_v16 }
 0x446   :  { %v2878_v4 = vpop.f32.mrf.mxu1 }
 0x447   :  { %v2226_v51 = vmul.f32 0.5, %v4417_v28 }
 0x449   :  { %3165 = vtanh.f32 %v2226_v51 }
 0x44a   :  { %v1954_v35 = vpop.f32.mrf.mxu1 }
 0x44b   :  { %v4421_v29 = vadd.f32 %v4410_v27, %v1954_v35 }
 0x44c   :  { %v2881_v2 = vpop.f32.mrf.mxu1 }
 0x44d   :  { %v2227_v42 = vmul.f32 0.5, %v4421_v29 }
 0x44e   :  { %v1957_v23 = vpop.f32.mrf.mxu1 }
 0x44f   :  { %3167 = vtanh.f32 %v2227_v42  ;;  %v4425_v40 = vadd.f32 %v4410_v27, %v1957_v23 }
 0x450   :  { %v2882_v30 = vpop.f32.mrf.mxu1 }
 0x451   :  { %v2228_v60 = vmul.f32 0.5, %v4425_v40 }
 0x452   :  { %v3164_v1 = vpop.eup %3163  ;;  %v1962_v62 = vpop.f32.mrf.mxu1 }
 0x453   :  { %v2253_v55 = vmul.f32 0.5, %v3164_v1  ;;  %v4429_v34 = vadd.f32 %v4410_v27, %v1962_v62  ;;  %3169 = vtanh.f32 %v2228_v60 }
 0x454   :  { %v2885_v7 = vpop.f32.mrf.mxu1 }
 0x455   :  { %v2267_v41 = vadd.f32 0.5, %v2253_v55  ;;  %v2229_v9 = vmul.f32 0.5, %v4429_v34 }
 0x456   :  { %v3166_v5 = vpop.eup %3165  ;;  %v1965_v10 = vpop.f32.mrf.mxu1 }
 0x457   :  { %2295 = vrot.lane.b32.xlu0 %v2267_v41, %s3257_s7  ;;  %v2254_v6 = vmul.f32 0.5, %v3166_v5  ;;  %v4434_v58 = vadd.f32 %v4410_v27, %v1965_v10  ;;  %3171 = vtanh.f32 %v2229_v9 }
 0x458   :  { %v2886_v52 = vpop.f32.mrf.mxu1 }
 0x459   :  { %v2268_v20 = vadd.f32 0.5, %v2254_v6  ;;  %v2230_v54 = vmul.f32 0.5, %v4434_v58 }
 0x45b   :  { %2297 = vrot.lane.b32.xlu1 %v2268_v20, %s3257_s7  ;;  %3173 = vtanh.f32 %v2230_v54 }
 0x45c   :  { %v3168_v46 = vpop.eup %3167 }
 0x45d   :  { %v2255_v17 = vmul.f32 0.5, %v3168_v46 }
 0x45e   :  { %v1970_v45 = vpop.f32.mrf.mxu1 }
 0x45f   :  { %v4439_v12 = vadd.f32 %v4410_v27, %v1970_v45  ;;  %v2269_v37 = vadd.f32 0.5, %v2255_v17 }
 0x460   :  { %v2889_v61 = vpop.f32.mrf.mxu1  ;;  %v3170_v3 = vpop.eup %3169 }
 0x461   :  { %v2231_v47 = vmul.f32 0.5, %v4439_v12  ;;  %2299 = vrot.lane.b32.xlu0 %v2269_v37, %s3257_s7  ;;  %v2256_v25 = vmul.f32 0.5, %v3170_v3 }
 0x462   :  { %v1973_v59 = vpop.f32.mrf.mxu1 }
 0x463   :  { %3175 = vtanh.f32 %v2231_v47  ;;  %v4444_v63 = vadd.f32 %v4410_v27, %v1973_v59  ;;  %v2270_v24 = vadd.f32 0.5, %v2256_v25  ;;  %v2015_v25 = vand.u32 2147483647, %v4413_v48 }
 0x464   :  { %v2890_v53 = vpop.f32.mrf.mxu1  ;;  %v3172_v33 = vpop.eup %3171 }
 0x465   :  { %v2232_v14 = vmul.f32 0.5, %v4444_v63  ;;  %2301 = vrot.lane.b32.xlu1 %v2270_v24, %s3257_s7  ;;  %v2257_v56 = vmul.f32 0.5, %v3172_v33  ;;  %v2029_v33 = vsub.f32 0.0, %v2015_v25 }
 0x466   :  { %v1978_v8 = vpop.f32.mrf.mxu1 }
 0x467   :  { %v4448_v43 = vadd.f32 %v4410_v27, %v1978_v8  ;;  %3177 = vtanh.f32 %v2232_v14  ;;  %v2271_v44 = vadd.f32 0.5, %v2257_v56  ;;  %v2016_v8 = vand.u32 2147483647, %v4417_v28 }
 0x468   :  { %v2893_v32 = vpop.f32.mrf.mxu1  ;;  %v3174_v39 = vpop.eup %3173 }
 0x469   :  { %v2233_v31 = vmul.f32 0.5, %v4448_v43  ;;  %2303 = vrot.lane.b32.xlu0 %v2271_v44, %s3257_s7  ;;  %v2258_v50 = vmul.f32 0.5, %v3174_v39  ;;  %v2043_v32 = vmul.f32 1.442695, %v2029_v33  ;;  %v2017_v39 = vand.u32 2147483647, %v4421_v29 }
 0x46a   :  { %v1981_v0 = vpop.f32.mrf.mxu1 }
 0x46b   :  { %v4453_v19 = vadd.f32 %v4410_v27, %v1981_v0  ;;  %3179 = vtanh.f32 %v2233_v31  ;;  %v2272_v38 = vadd.f32 0.5, %v2258_v50  ;;  %v2030_v31 = vsub.f32 0.0, %v2016_v8 }
 0x46c   :  { %v2894_v13 = vpop.f32.mrf.mxu1  ;;  %v2031_v0 = vsub.f32 0.0, %v2017_v39  ;;  %v2018_v50 = vand.u32 2147483647, %v4425_v40 }
 0x46d   :  { %v2234_v21 = vmul.f32 0.5, %v4453_v19  ;;  %2305 = vrot.lane.b32.xlu1 %v2272_v38, %s3257_s7  ;;  %v2045_v44 = vmul.f32 1.442695, %v2030_v31 }
 0x46e   :  { %v1986_v26 = vpop.f32.mrf.mxu1  ;;  %v2047_v13 = vmul.f32 1.442695, %v2031_v0  ;;  %v2032_v38 = vsub.f32 0.0, %v2018_v50  ;;  %v2001_v50 = vmax.f32 %v4413_v48, 0.0 }
 0x46f   :  { %v4458_v57 = vadd.f32 %v4410_v27, %v1986_v26  ;;  %3181 = vtanh.f32 %v2234_v21  ;;  %v2019_v21 = vand.u32 2147483647, %v4429_v34 }
 0x470   :  { %v3176_v11 = vpop.eup %3175  ;;  %v2897_v22 = vpop.f32.mrf.mxu1 }
 0x471   :  { %v2235_v36 = vmul.f32 0.5, %v4458_v57  ;;  %v2259_v49 = vmul.f32 0.5, %v3176_v11  ;;  %v2033_v26 = vsub.f32 0.0, %v2019_v21  ;;  %v4491_v11 = vpop.permute.xlu0 %2365  ;;  %v2049_v22 = vmul.f32 1.442695, %v2032_v38 }
 0x472   :  { %v1989_v16 = vpop.f32.mrf.mxu1 }
 0x473   :  { %v4463_v4 = vadd.f32 %v4410_v27, %v1989_v16  ;;  %v2273_v51 = vadd.f32 0.5, %v2259_v49  ;;  %3183 = vtanh.f32 %v2235_v36  ;;  %v2051_v16 = vmul.f32 1.442695, %v2033_v26 }
 0x474   :  { %v2898_v35 = vpop.f32.mrf.mxu1  ;;  %v3178_v2 = vpop.eup %3177 }
 0x475   :  { %v2236_v42 = vmul.f32 0.5, %v4463_v4  ;;  %2307 = vrot.lane.b32.xlu0 %v2273_v51, %s3257_s7  ;;  %v2260_v1 = vmul.f32 0.5, %v3178_v2  ;;  %v4496_v35 = vpop.permute.xlu1 %2367  ;;  %v4498_v2 = vpop.permute.xlu0 %2369 }
 0x476   :  { %v1994_v23 = vpop.f32.mrf.mxu1 }
 0x477   :  { %v4468_v30 = vadd.f32 %v4410_v27, %v1994_v23  ;;  %3185 = vtanh.f32 %v2236_v42  ;;  %v2274_v60 = vadd.f32 0.5, %v2260_v1  ;;  %v2021_v42 = vand.u32 2147483647, %v4439_v12 }
 0x478   :  { %v2901_v55 = vpop.f32.mrf.mxu1  ;;  %v3180_v62 = vpop.eup %3179 }
 0x479   :  { %v2237_v41 = vmul.f32 0.5, %v4468_v30  ;;  %2309 = vrot.lane.b32.xlu1 %v2274_v60, %s3257_s7  ;;  %v2261_v7 = vmul.f32 0.5, %v3180_v62  ;;  %v2035_v55 = vsub.f32 0.0, %v2021_v42  ;;  %v4502_v60 = vpop.permute.xlu1 %2371  ;;  %v2022_v62 = vand.u32 2147483647, %v4444_v63 }
 0x47a   :  { %v1997_v5 = vpop.f32.mrf.mxu1 }
 0x47b   :  { %v4473_v9 = vadd.f32 %v4410_v27, %v1997_v5  ;;  %3187 = vtanh.f32 %v2237_v41  ;;  %v2275_v10 = vadd.f32 0.5, %v2261_v7  ;;  %v4507_v5 = vpop.permute.xlu0 %2373  ;;  %v2055_v7 = vmul.f32 1.442695, %v2035_v55 }
 0x47c   :  { %v2902_v6 = vpop.f32.mrf.mxu1  ;;  %v3182_v20 = vpop.eup %3181 }
 0x47d   :  { %v2238_v52 = vmul.f32 0.5, %v4473_v9  ;;  %2311 = vrot.lane.b32.xlu0 %v2275_v10, %s3257_s7  ;;  %v2262_v54 = vmul.f32 0.5, %v3182_v20  ;;  %v2023_v6 = vand.u32 2147483647, %v4448_v43  ;;  %v2036_v10 = vsub.f32 0.0, %v2022_v62 }
 0x47f   :  { %3189 = vtanh.f32 %v2238_v52  ;;  %v2276_v46 = vadd.f32 0.5, %v2262_v54 }
 0x480   :  { %v3184_v45 = vpop.eup %3183  ;;  %3191 = vpow2.f32 %v2043_v32  ;;  %v2025_v32 = vand.u32 2147483647, %v4458_v57 }
 0x481   :  { %2313 = vrot.lane.b32.xlu1 %v2276_v46, %s3257_s7  ;;  %v2263_v17 = vmul.f32 0.5, %v3184_v45  ;;  %3193 = vpow2.f32 %v2045_v44  ;;  %v4513_v46 = vpop.permute.xlu1 %2375  ;;  %v4515_v45 = vpop.permute.xlu0 %2377 }
 0x482   :  { %3195 = vpow2.f32 %v2047_v13 }
 0x483   :  { %v2277_v61 = vadd.f32 0.5, %v2263_v17  ;;  %3197 = vpow2.f32 %v2049_v22  ;;  %v2037_v17 = vsub.f32 0.0, %v2023_v6 }
 0x484   :  { %v3186_v37 = vpop.eup %3185 }
 0x485   :  { %2315 = vrot.lane.b32.xlu0 %v2277_v61, %s3257_s7  ;;  %v2264_v27 = vmul.f32 0.5, %v3186_v37  ;;  %v2057_v37 = vmul.f32 1.442695, %v2036_v10  ;;  %v4522_v8 = vpop.permute.xlu1 %2379  ;;  %v4526_v44 = vpop.permute.xlu0 %2381  ;;  %v2002_v10 = vmax.f32 %v4417_v28, 0.0 }
 0x487   :  { %v2278_v47 = vadd.f32 0.5, %v2264_v27  ;;  %v2024_v27 = vand.u32 2147483647, %v4453_v19 }
 0x488   :  { %v3188_v3 = vpop.eup %3187 }
 0x489   :  { %2317 = vrot.lane.b32.xlu1 %v2278_v47, %s3257_s7  ;;  %v2265_v59 = vmul.f32 0.5, %v3188_v3 }
 0x48b   :  { %v2279_v53 = vadd.f32 0.5, %v2265_v59 }
 0x48c   :  { %v3190_v14 = vpop.eup %3189 }
 0x48d   :  { %2319 = vrot.lane.b32.xlu0 %v2279_v53, %s3257_s7  ;;  %v2266_v24 = vmul.f32 0.5, %v3190_v14  ;;  %v2059_v14 = vmul.f32 1.442695, %v2037_v17  ;;  %v2027_v17 = vand.u32 2147483647, %v4468_v30 }
 0x48f   :  { %v2280_v56 = vadd.f32 0.5, %v2266_v24 }
 0x491   :  { %2389 = vrot.lane.b32.xlu0 %v3560_v15, %s3257_s7  ;;  %2321 = vrot.lane.b32.xlu1 %v2280_v56, %s3257_s7  ;;  %v3192_v15 = vpop.eup %3191  ;;  %v2038_v56 = vsub.f32 0.0, %v2024_v27 }
 0x492   :  { %v2071_v36 = vadd.f32 1.0, %v3192_v15  ;;  %v4494_v49 = vpop.eup %3193  ;;  %v2074_v52 = vmul.f32 -0.5, %v3192_v15  ;;  %v2077_v25 = vand.u32 2147483647, %v3192_v15 }
 0x493   :  { %v2080_v23 = vadd.f32 1.0, %v4494_v49  ;;  %v4505_v41 = vpop.eup %3195  ;;  %v2083_v53 = vmul.f32 -0.5, %v4494_v49  ;;  %v2086_v26 = vand.u32 2147483647, %v4494_v49  ;;  %v2061_v22 = vmul.f32 1.442695, %v2038_v56 }
 0x494   :  { %3199 = vlog2.f32 %v2071_v36  ;;  %v2089_v20 = vadd.f32 1.0, %v4505_v41  ;;  %v4511_v54 = vpop.eup %3197  ;;  %v2075_v3 = vadd.f32 1.0, %v2074_v52  ;;  %vm2078_vm2 = vcmp.lt.f32.partialorder %v2077_v25, 0.0004427343 }
 0x495   :  { %2391 = vrot.lane.b32.xlu1 %v3564_v18, %s3257_s7  ;;  %v2020_v18 = vand.u32 2147483647, %v4434_v58  ;;  %3201 = vpow2.f32 %v2051_v16  ;;  %v2098_v59 = vadd.f32 1.0, %v4511_v54  ;;  %v2084_v13 = vadd.f32 1.0, %v2083_v53 }
 0x496   :  { %3203 = vlog2.f32 %v2080_v23  ;;  %v2076_v39 = vmul.f32 %v3192_v15, %v2075_v3  ;;  %v2026_v36 = vand.u32 2147483647, %v4463_v4  ;;  %v2092_v16 = vmul.f32 -0.5, %v4505_v41  ;;  %v4538_v23 = vpop.permute.xlu0 %2385 }
 0x497   :  { %v2034_v51 = vsub.f32 0.0, %v2020_v18  ;;  %v2039_v18 = vsub.f32 0.0, %v2025_v32  ;;  %v2085_v48 = vmul.f32 %v4494_v49, %v2084_v13  ;;  %vm2087_vm3 = vcmp.lt.f32.partialorder %v2086_v26, 0.0004427343 }
 0x498   :  { %v2040_v62 = vsub.f32 0.0, %v2026_v36  ;;  %v2095_v52 = vand.u32 2147483647, %v4505_v41  ;;  %v2101_v27 = vmul.f32 -0.5, %v4511_v54  ;;  %v2041_v32 = vsub.f32 0.0, %v2027_v17 }
 0x499   :  { %v2053_v1 = vmul.f32 1.442695, %v2034_v51  ;;  %v4535_v51 = vpop.permute.xlu1 %2383  ;;  %v2063_v55 = vmul.f32 1.442695, %v2039_v18 }
 0x49a   :  { %v2065_v25 = vmul.f32 1.442695, %v2040_v62  ;;  %vm4552_vm5 = vcmp.lt.f32.partialorder %v2095_v52, 0.0004427343 }
 0x49b   :  { %3205 = vpow2.f32 %v2053_v1 }
 0x49c   :  { %3207 = vpow2.f32 %v2055_v7 }
 0x49d   :  { %3209 = vlog2.f32 %v2089_v20  ;;  %v2093_v20 = vadd.f32 1.0, %v2092_v16 }
 0x49e   :  { %3211 = vpow2.f32 %v2057_v37 }
 0x49f   :  { %3213 = vlog2.f32 %v2098_v59  ;;  %v4547_v59 = vpop.permute.xlu1 %2387 }
 0x4a0   :  { %3215 = vpow2.f32 %v2059_v14 }
 0x4a1   :  { %v3200_v61 = vpop.eup %3199 }
 0x4a2   :  { %v4518_v47 = vpop.eup %3201  ;;  %v2073_v24 = vmul.f32 0.6931472, %v3200_v61 }
 0x4a3   :  { %v3204_v33 = vpop.eup %3203  ;;  %v2107_v31 = vadd.f32 1.0, %v4518_v47 }
 0x4a4   :  { %v2079_v21 = vsel %vm2078_vm2, %v2076_v39, %v2073_v24  ;;  %v2082_v38 = vmul.f32 0.6931472, %v3204_v33  ;;  %v2094_v24 = vmul.f32 %v4505_v41, %v2093_v20 }
 0x4a5   :  { %3217 = vlog2.f32 %v2107_v31  ;;  %v2197_v42 = vadd.f32 %v2079_v21, %v2001_v50  ;;  %v2028_v31 = vand.u32 2147483647, %v4473_v9  ;;  %v2110_v50 = vmul.f32 -0.5, %v4518_v47 }
 0x4a6   :  { %3219 = vpow2.f32 %v2061_v22  ;;  %v2088_v7 = vsel %vm2087_vm3, %v2085_v48, %v2082_v38  ;;  %v2102_v21 = vadd.f32 1.0, %v2101_v27  ;;  %v2104_v38 = vand.u32 2147483647, %v4511_v54 }
 0x4a7   :  { %v2623_v61 = vadd.f32 -0.6931472, %v2197_v42  ;;  %v2198_v37 = vadd.f32 %v2088_v7, %v2002_v10  ;;  %v2067_v48 = vmul.f32 1.442695, %v2041_v32  ;;  %v2111_v62 = vadd.f32 1.0, %v2110_v50 }
 0x4a8   :  { %v4528_v0 = vpop.eup %3205  ;;  %v2113_v7 = vand.u32 2147483647, %v4518_v47  ;;  %v2103_v20 = vmul.f32 %v4511_v54, %v2102_v21  ;;  %vm4574_vm6 = vcmp.lt.f32.partialorder %v2104_v38, 0.0004427343  ;;  %v2004_v27 = vmax.f32 %v4425_v40, 0.0 }
 0x4a9   :  { %v2116_v15 = vadd.f32 1.0, %v4528_v0  ;;  %v4540_v1 = vpop.eup %3207  ;;  %v2624_v13 = vadd.f32 -0.6931472, %v2198_v37  ;;  %v2119_v52 = vmul.f32 -0.5, %v4528_v0  ;;  %v2122_v40 = vand.u32 2147483647, %v4528_v0 }
 0x4aa   :  { %v3210_v6 = vpop.eup %3209  ;;  %v2125_v3 = vadd.f32 1.0, %v4540_v1  ;;  %vm4585_vm7 = vcmp.lt.f32.partialorder %v2113_v7, 0.0004427343  ;;  %v2005_v50 = vmax.f32 %v4429_v34, 0.0  ;;  %v2128_v21 = vmul.f32 -0.5, %v4540_v1 }
 0x4ab   :  { %3221 = vlog2.f32 %v2116_v15  ;;  %v2091_v14 = vmul.f32 0.6931472, %v3210_v6  ;;  %v4549_v28 = vpop.eup %3211  ;;  %vm4603_vm8 = vcmp.lt.f32.partialorder %v2122_v40, 0.0004427343  ;;  %v2131_v7 = vand.u32 2147483647, %v4540_v1 }
 0x4ac   :  { %3223 = vpow2.f32 %v2063_v55  ;;  %v3214_v56 = vpop.eup %3213  ;;  %v2134_v36 = vadd.f32 1.0, %v4549_v28  ;;  %v2042_v55 = vsub.f32 0.0, %v2028_v31 }
 0x4ad   :  { %3225 = vlog2.f32 %v2125_v3  ;;  %v4560_v26 = vpop.eup %3215  ;;  %v2097_v18 = vsel %vm4552_vm5, %v2094_v24, %v2091_v14  ;;  %v2100_v42 = vmul.f32 0.6931472, %v3214_v56  ;;  %v2120_v24 = vadd.f32 1.0, %v2119_v52 }
 0x4ae   :  { %3227 = vpow2.f32 %v2065_v25  ;;  %v2069_v54 = vmul.f32 1.442695, %v2042_v55  ;;  %v2112_v25 = vmul.f32 %v4518_v47, %v2111_v62  ;;  %v2137_v55 = vmul.f32 -0.5, %v4549_v28 }
 0x4af   :  { %3229 = vlog2.f32 %v2134_v36  ;;  %v2006_v62 = vmax.f32 %v4434_v58, 0.0  ;;  %vm4623_vm9 = vcmp.lt.f32.partialorder %v2131_v7, 0.0004427343 }
 0x4b0   :  { %3231 = vpow2.f32 %v2067_v48  ;;  %v2138_v58 = vadd.f32 1.0, %v2137_v55 }
 0x4b2   :  { %v3218_v16 = vpop.eup %3217 }
 0x4b3   :  { %v2109_v17 = vmul.f32 0.6931472, %v3218_v16  ;;  %v2008_v16 = vmax.f32 %v4444_v63, 0.0 }
 0x4b5   :  { %v2115_v32 = vsel %vm4585_vm7, %v2112_v25, %v2109_v17 }
 0x4c9   :  { %v2296_v49 = vpop.permute.xlu0 %2295 }
 0x4ca   :  { %v2337_v53 = vmul.f32 %v2623_v61, %v2296_v49  ;;  %v2143_v61 = vadd.f32 1.0, %v4560_v26  ;;  %v4579_v49 = vpop.eup %3219 }
 0x4cb   :  { %v3222_v3 = vpop.eup %3221  ;;  %v2152_v47 = vadd.f32 1.0, %v4579_v49 }
 0x4cc   :  { %v2407_v39 = vmul.f32 %v4491_v11, %v2337_v53  ;;  %v2003_v11 = vmax.f32 %v4421_v29, 0.0  ;;  %3233 = vlog2.f32 %v2143_v61  ;;  %v4597_v31 = vpop.eup %3223 }
 0x4cd   :  { %v2298_v22 = vpop.permute.xlu1 %2297  ;;  %3235 = vpow2.f32 %v2069_v54 }
 0x4ce   :  { %v2651_v41 = vpack.c.bf16 %v2407_v39, %v2407_v39  ;;  %v2338_v15 = vmul.f32 %v2624_v13, %v2298_v22  ;;  %v2199_v10 = vadd.f32 %v2097_v18, %v2003_v11  ;;  %v2118_v13 = vmul.f32 0.6931472, %v3222_v3  ;;  %v3226_v18 = vpop.eup %3225 }
 0x4cf   :  { %v2121_v22 = vmul.f32 %v4528_v0, %v2120_v24  ;;  %3237 = vlog2.f32 %v2152_v47  ;;  %v4608_v11 = vpop.eup %3227  ;;  %v2155_v47 = vmul.f32 -0.5, %v4579_v49 }
 0x4d0   :  { %2478 = vst.msk [vmem:[%s4734_s14] sm:$0xf] %vm2477_vm4, %v2651_v41  ;;  %v2408_v6 = vmul.f32 %v4496_v35, %v2338_v15  ;;  %v2106_v35 = vsel %vm4574_vm6, %v2103_v20, %v2100_v42  ;;  %v2625_v14 = vadd.f32 -0.6931472, %v2199_v10  ;;  %v2201_v41 = vadd.f32 %v2115_v32, %v2005_v50  ;;  %v3230_v17 = vpop.eup %3229 }
 0x4d1   :  { %v2200_v56 = vadd.f32 %v2106_v35, %v2004_v27  ;;  %v2161_v15 = vadd.f32 1.0, %v4597_v31  ;;  %v2124_v48 = vsel %vm4603_vm8, %v2121_v22, %v2118_v13  ;;  %v2127_v10 = vmul.f32 0.6931472, %v3226_v18  ;;  %v4627_v25 = vpop.eup %3231 }
 0x4d2   :  { %v2652_v37 = vpack.c.bf16 %v2408_v6, %v2408_v6  ;;  %v2627_v6 = vadd.f32 -0.6931472, %v2201_v41  ;;  %v2202_v52 = vadd.f32 %v2124_v48, %v2006_v62  ;;  %v2170_v29 = vadd.f32 1.0, %v4608_v11 }
 0x4d3   :  { %v2300_v33 = vpop.permute.xlu0 %2299  ;;  %v2626_v36 = vadd.f32 -0.6931472, %v2200_v56  ;;  %3239 = vlog2.f32 %v2161_v15  ;;  %v2146_v27 = vmul.f32 -0.5, %v4560_v26  ;;  %v2136_v40 = vmul.f32 0.6931472, %v3230_v17 }
 0x4d4   :  { %2479 = vst.msk [vmem:[%s4734_s14 + $0x4] sm:$0xf] %vm2477_vm4, %v2652_v37  ;;  %v2339_v39 = vmul.f32 %v2625_v14, %v2300_v33  ;;  %v2140_v14 = vand.u32 2147483647, %v4549_v28  ;;  %v2628_v24 = vadd.f32 -0.6931472, %v2202_v52  ;;  %3241 = vlog2.f32 %v2170_v29 }
 0x4d5   :  { %v2139_v32 = vmul.f32 %v4549_v28, %v2138_v58  ;;  %v2173_v17 = vmul.f32 -0.5, %v4608_v11  ;;  %v2167_v58 = vand.u32 2147483647, %v4597_v31 }
 0x4d6   :  { %v2409_v38 = vmul.f32 %v4498_v2, %v2339_v39  ;;  %v2129_v2 = vadd.f32 1.0, %v2128_v21  ;;  %v2179_v21 = vadd.f32 1.0, %v4627_v25  ;;  %vm4643_vm10 = vcmp.lt.f32.partialorder %v2140_v14, 0.0004427343 }
 0x4d7   :  { %v2302_v42 = vpop.permute.xlu1 %2301  ;;  %v2142_v22 = vsel %vm4643_vm10, %v2139_v32, %v2136_v40  ;;  %v2176_v14 = vand.u32 2147483647, %v4608_v11  ;;  %vm2168_vm13 = vcmp.lt.f32.partialorder %v2167_v58, 0.0004427343 }
 0x4d8   :  { %v2653_v34 = vpack.c.bf16 %v2409_v38, %v2409_v38  ;;  %v2340_v0 = vmul.f32 %v2626_v36, %v2302_v42  ;;  %v2130_v37 = vmul.f32 %v4540_v1, %v2129_v2  ;;  %v2164_v42 = vmul.f32 -0.5, %v4597_v31 }
 0x4d9   :  { %v3234_v33 = vpop.eup %3233  ;;  %3243 = vlog2.f32 %v2179_v21  ;;  %v2204_v62 = vadd.f32 %v2142_v22, %v2008_v16  ;;  %vm2177_vm14 = vcmp.lt.f32.partialorder %v2176_v14, 0.0004427343 }
 0x4da   :  { %2480 = vst.msk [vmem:[%s4734_s14 + $0x8] sm:$0xf] %vm2477_vm4, %v2653_v34  ;;  %v2410_v20 = vmul.f32 %v4502_v60, %v2340_v0  ;;  %v2007_v60 = vmax.f32 %v4439_v12, 0.0  ;;  %v2133_v53 = vsel %vm4623_vm9, %v2130_v37, %v2127_v10  ;;  %v2147_v12 = vadd.f32 1.0, %v2146_v27  ;;  %v4641_v38 = vpop.eup %3235 }
 0x4db   :  { %v2304_v61 = vpop.permute.xlu0 %2303  ;;  %v2145_v18 = vmul.f32 0.6931472, %v3234_v33  ;;  %v2156_v34 = vadd.f32 1.0, %v2155_v47  ;;  %v2188_v55 = vadd.f32 1.0, %v4641_v38  ;;  %v2009_v10 = vmax.f32 %v4448_v43, 0.0 }
 0x4dc   :  { %v2654_v35 = vpack.c.bf16 %v2410_v20, %v2410_v20  ;;  %v2341_v3 = vmul.f32 %v2627_v6, %v2304_v61  ;;  %v2203_v13 = vadd.f32 %v2133_v53, %v2007_v60  ;;  %v3238_v36 = vpop.eup %3237  ;;  %v2148_v15 = vmul.f32 %v4560_v26, %v2147_v12 }
 0x4dd   :  { %v2154_v7 = vmul.f32 0.6931472, %v3238_v36  ;;  %v2157_v20 = vmul.f32 %v4579_v49, %v2156_v34  ;;  %v2165_v29 = vadd.f32 1.0, %v2164_v42  ;;  %3245 = vlog2.f32 %v2188_v55 }
 0x4de   :  { %2481 = vst.msk [vmem:[%s4734_s14 + $0xc] sm:$0xf] %vm2477_vm4, %v2654_v35  ;;  %v2411_v1 = vmul.f32 %v4507_v5, %v2341_v3  ;;  %v2149_v5 = vand.u32 2147483647, %v4560_v26  ;;  %v2629_v2 = vadd.f32 -0.6931472, %v2203_v13 }
 0x4df   :  { %v2306_v56 = vpop.permute.xlu1 %2305  ;;  %v2630_v61 = vadd.f32 -0.6931472, %v2204_v62  ;;  %v2010_v43 = vmax.f32 %v4453_v19, 0.0  ;;  %v2182_v19 = vmul.f32 -0.5, %v4627_v25  ;;  %v2191_v22 = vmul.f32 -0.5, %v4641_v38 }
 0x4e0   :  { %v2655_v39 = vpack.c.bf16 %v2411_v1, %v2411_v1  ;;  %v2342_v50 = vmul.f32 %v2628_v24, %v2306_v56  ;;  %vm2150_vm11 = vcmp.lt.f32.partialorder %v2149_v5, 0.0004427343  ;;  %v3240_v6 = vpop.eup %3239  ;;  %v2185_v36 = vand.u32 2147483647, %v4627_v25 }
 0x4e1   :  { %v2151_v26 = vsel %vm2150_vm11, %v2148_v15, %v2145_v18  ;;  %v2163_v54 = vmul.f32 0.6931472, %v3240_v6  ;;  %v3242_v60 = vpop.eup %3241  ;;  %v2192_v55 = vadd.f32 1.0, %v2191_v22 }
 0x4e2   :  { %2482 = vst.msk [vmem:[%s4734_s14 + $0x10] sm:$0xf] %vm2477_vm4, %v2655_v39  ;;  %v2412_v28 = vmul.f32 %v4513_v46, %v2342_v50  ;;  %v2158_v46 = vand.u32 2147483647, %v4579_v49  ;;  %v2205_v37 = vadd.f32 %v2151_v26, %v2009_v10  ;;  %v2174_v49 = vadd.f32 1.0, %v2173_v17 }
 0x4e3   :  { %v2172_v32 = vmul.f32 0.6931472, %v3242_v60  ;;  %v2011_v39 = vmax.f32 %v4458_v57, 0.0  ;;  %vm2186_vm15 = vcmp.lt.f32.partialorder %v2185_v36, 0.0004427343 }
 0x4e4   :  { %v2656_v48 = vpack.c.bf16 %v2412_v28, %v2412_v28  ;;  %vm2159_vm12 = vcmp.lt.f32.partialorder %v2158_v46, 0.0004427343  ;;  %v2631_v24 = vadd.f32 -0.6931472, %v2205_v37  ;;  %v2175_v50 = vmul.f32 %v4608_v11, %v2174_v49 }
 0x4e5   :  { %v2160_v3 = vsel %vm2159_vm12, %v2157_v20, %v2154_v7  ;;  %v2183_v28 = vadd.f32 1.0, %v2182_v19  ;;  %v2012_v11 = vmax.f32 %v4463_v4, 0.0  ;;  %v2194_v4 = vand.u32 2147483647, %v4641_v38 }
 0x4e6   :  { %2483 = vst.msk [vmem:[%s4734_s14 + $0x14] sm:$0xf] %vm2477_vm4, %v2656_v48  ;;  %v2206_v40 = vadd.f32 %v2160_v3, %v2010_v43  ;;  %v2178_v5 = vsel %vm2177_vm14, %v2175_v50, %v2172_v32  ;;  %v2013_v7 = vmax.f32 %v4468_v30, 0.0 }
 0x4e7   :  { %v2308_v0 = vpop.permute.xlu0 %2307  ;;  %v2208_v42 = vadd.f32 %v2178_v5, %v2012_v11  ;;  %vm2195_vm0 = vcmp.lt.f32.partialorder %v2194_v4, 0.0004427343 }
 0x4e8   :  { %v2343_v63 = vmul.f32 %v2629_v2, %v2308_v0  ;;  %v2632_v13 = vadd.f32 -0.6931472, %v2206_v40  ;;  %v2184_v2 = vmul.f32 %v4627_v25, %v2183_v28  ;;  %v2193_v25 = vmul.f32 %v4641_v38, %v2192_v55 }
 0x4e9   :  { %v2634_v26 = vadd.f32 -0.6931472, %v2208_v42 }
 0x4ea   :  { %v2413_v52 = vmul.f32 %v4515_v45, %v2343_v63  ;;  %v2166_v45 = vmul.f32 %v4597_v31, %v2165_v29  ;;  %v3244_v31 = vpop.eup %3243 }
 0x4eb   :  { %v2310_v35 = vpop.permute.xlu1 %2309  ;;  %v2181_v16 = vmul.f32 0.6931472, %v3244_v31  ;;  %v3246_v15 = vpop.eup %3245 }
 0x4ec   :  { %v2657_v27 = vpack.c.bf16 %v2413_v52, %v2413_v52  ;;  %v2344_v53 = vmul.f32 %v2630_v61, %v2310_v35  ;;  %v2169_v56 = vsel %vm2168_vm13, %v2166_v45, %v2163_v54  ;;  %v2190_v63 = vmul.f32 0.6931472, %v3246_v15 }
 0x4ed   :  { %v2207_v21 = vadd.f32 %v2169_v56, %v2011_v39  ;;  %v2187_v46 = vsel %vm2186_vm15, %v2184_v2, %v2181_v16 }
 0x4ee   :  { %2484 = vst.msk [vmem:[%s4734_s14 + $0x18] sm:$0xf] %vm2477_vm4, %v2657_v27  ;;  %v2414_v1 = vmul.f32 %v4522_v8, %v2344_v53  ;;  %v2209_v52 = vadd.f32 %v2187_v46, %v2013_v7  ;;  %v2196_v29 = vsel %vm2195_vm0, %v2193_v25, %v2190_v63 }
 0x4ef   :  { %v2312_v33 = vpop.permute.xlu0 %2311  ;;  %v2633_v34 = vadd.f32 -0.6931472, %v2207_v21 }
 0x4f0   :  { %v2658_v12 = vpack.c.bf16 %v2414_v1, %v2414_v1  ;;  %v2345_v47 = vmul.f32 %v2631_v24, %v2312_v33  ;;  %v2635_v30 = vadd.f32 -0.6931472, %v2209_v52 }
 0x4f2   :  { %2485 = vst.msk [vmem:[%s4734_s14 + $0x1c] sm:$0xf] %vm2477_vm4, %v2658_v12  ;;  %v2415_v8 = vmul.f32 %v4526_v44, %v2345_v47 }
 0x4f3   :  { %v2314_v41 = vpop.permute.xlu1 %2313 }
 0x4f4   :  { %v2659_v18 = vpack.c.bf16 %v2415_v8, %v2415_v8  ;;  %v2346_v57 = vmul.f32 %v2632_v13, %v2314_v41 }
 0x4f6   :  { %2486 = vst.msk [vmem:[%s4734_s14 + $0x20] sm:$0xf] %vm2477_vm4, %v2659_v18  ;;  %v2416_v44 = vmul.f32 %v4535_v51, %v2346_v57 }
 0x4f7   :  { %v2316_v48 = vpop.permute.xlu0 %2315 }
 0x4f8   :  { %v2660_v0 = vpack.c.bf16 %v2416_v44, %v2416_v44  ;;  %v2347_v62 = vmul.f32 %v2633_v34, %v2316_v48 }
 0x4fa   :  { %2487 = vst.msk [vmem:[%s4734_s14 + $0x24] sm:$0xf] %vm2477_vm4, %v2660_v0  ;;  %v2417_v51 = vmul.f32 %v4538_v23, %v2347_v62  ;;  %v2014_v23 = vmax.f32 %v4473_v9, 0.0 }
 0x4fb   :  { %v2318_v6 = vpop.permute.xlu1 %2317 }
 0x4fc   :  { %v2661_v10 = vpack.c.bf16 %v2417_v51, %v2417_v51  ;;  %v2348_v20 = vmul.f32 %v2634_v26, %v2318_v6  ;;  %v2210_v58 = vadd.f32 %v2196_v29, %v2014_v23 }
 0x4fe   :  { %2488 = vst.msk [vmem:[%s4734_s14 + $0x28] sm:$0xf] %vm2477_vm4, %v2661_v10  ;;  %v2418_v17 = vmul.f32 %v4547_v59, %v2348_v20  ;;  %v2636_v54 = vadd.f32 -0.6931472, %v2210_v58 }
 0x4ff   :  { %v2320_v61 = vpop.permute.xlu0 %2319 }
 0x500   :  { %v2662_v37 = vpack.c.bf16 %v2418_v17, %v2418_v17  ;;  %v2349_v38 = vmul.f32 %v2635_v30, %v2320_v61 }
 0x502   :  { %2489 = vst.msk [vmem:[%s4734_s14 + $0x2c] sm:$0xf] %vm2477_vm4, %v2662_v37 }
 0x503   :  { %v2390_v27 = vpop.permute.xlu0 %2389  ;;  %v2322_v35 = vpop.permute.xlu1 %2321 }
 0x504   :  { %v2419_v3 = vmul.f32 %v2390_v27, %v2349_v38  ;;  %v2350_v53 = vmul.f32 %v2636_v54, %v2322_v35 }
 0x506   :  { %v2663_v60 = vpack.c.bf16 %v2419_v3, %v2419_v3 }
 0x507   :  { %v2392_v43 = vpop.permute.xlu1 %2391 }
 0x508   :  { %2490 = vst.msk [vmem:[%s4734_s14 + $0x30] sm:$0xf] %vm2477_vm4, %v2663_v60  ;;  %v2420_v9 = vmul.f32 %v2392_v43, %v2350_v53 }
 0x50a   :  { %v2664_v59 = vpack.c.bf16 %v2420_v9, %v2420_v9 }
 0x50c   :  { %2491 = vst.msk [vmem:[%s4734_s14 + $0x34] sm:$0xf] %vm2477_vm4, %v2664_v59 }

</bundles_post_ra>
